<compile_context>
chip_gen: v7x
topology: tpu7x:2x2x1
jax: 0.10.0
libtpu: 0.0.40
codegen_flags: <defaults>
</compile_context>

<pallas_src>
import math
import functools

import jax
import jax.numpy as jnp
from jax.experimental import pallas as pl
from jax.experimental.pallas import tpu as pltpu

_VMEM_LIMIT = 64 * 1024 * 1024  # scoped VMEM cap (safe on v5e/v6e/v7x)


def _pick_tile(m, cap=512):
    """Largest row tile <= cap that divides m (keeps row blocks 8-aligned)."""
    if m <= cap:
        return m
    for t in (512, 256, 128, 64, 32, 16, 8):
        if t <= cap and m % t == 0:
            return t
    return m  # fall back to one big block (fine at demo scale)


# ----------------------- fused LayerNorm + Linear kernel ----------------------

def _ln_linear_kernel(x_ref, g_ref, beta_ref, w_ref, bias_ref, o_ref):
    x = x_ref[...].astype(jnp.float32)                          # (tm, D)
    mean = jnp.mean(x, axis=-1, keepdims=True)
    var = jnp.mean((x - mean) ** 2, axis=-1, keepdims=True)
    xn = (x - mean) * jax.lax.rsqrt(var + 1e-5) * g_ref[...] + beta_ref[...]
    y = jnp.dot(xn, w_ref[...].astype(jnp.float32),
                preferred_element_type=jnp.float32) + bias_ref[...]
    o_ref[...] = y.astype(o_ref.dtype)


def ln_linear(x2d, gamma, beta, w, b, *, tile=512):
    M, D = x2d.shape
    N = w.shape[1]
    tm = _pick_tile(M, tile)
    return pl.pallas_call(
        _ln_linear_kernel,
        out_shape=jax.ShapeDtypeStruct((M, N), x2d.dtype),
        grid=(M // tm,),
        in_specs=[pl.BlockSpec((tm, D), lambda i: (i, 0)),
                  pl.BlockSpec((1, D), lambda i: (0, 0)),
                  pl.BlockSpec((1, D), lambda i: (0, 0)),
                  pl.BlockSpec((D, N), lambda i: (0, 0)),   # weight stays resident
                  pl.BlockSpec((1, N), lambda i: (0, 0))],
        out_specs=pl.BlockSpec((tm, N), lambda i: (i, 0)),
        compiler_params=pltpu.CompilerParams(
            dimension_semantics=("parallel",),
            vmem_limit_bytes=_VMEM_LIMIT),
    )(x2d, gamma.reshape(1, D), beta.reshape(1, D), w, b.reshape(1, N))


# ------------------------------ plain Linear kernel ---------------------------

def _linear_kernel(x_ref, w_ref, b_ref, o_ref):
    y = jnp.dot(x_ref[...].astype(jnp.float32), w_ref[...].astype(jnp.float32),
                preferred_element_type=jnp.float32) + b_ref[...]
    o_ref[...] = y.astype(o_ref.dtype)


def linear(x2d, w, b, *, tile=512):
    M, K = x2d.shape
    N = w.shape[1]
    tm = _pick_tile(M, tile)
    return pl.pallas_call(
        _linear_kernel,
        out_shape=jax.ShapeDtypeStruct((M, N), x2d.dtype),
        grid=(M // tm,),
        in_specs=[pl.BlockSpec((tm, K), lambda i: (i, 0)),
                  pl.BlockSpec((K, N), lambda i: (0, 0)),
                  pl.BlockSpec((1, N), lambda i: (0, 0))],
        out_specs=pl.BlockSpec((tm, N), lambda i: (i, 0)),
        compiler_params=pltpu.CompilerParams(
            dimension_semantics=("parallel",),
            vmem_limit_bytes=_VMEM_LIMIT),
    )(x2d, w, b.reshape(1, N))


# ----------------- fused attention (+ output proj + residual) ----------------
# TODO(synk): for long sequences (T, S >> 512) switch these to a flash-style
#             kv-tiled online-softmax grid; at decoder-layer demo scale the
#             whole (T, S) score tile fits comfortably in VMEM.

def _self_attn_kernel(qkv_ref, mask_ref, wo_ref, bo_ref, res_ref, o_ref, *, heads):
    # qkv is [Q|K|V] packed along the channel axis; Q is already pre-scaled.
    qkv = qkv_ref[0].astype(jnp.float32)                        # (T, 3D)
    D = qkv.shape[1] // 3
    dk = D // heads
    mask = mask_ref[0] > 0                                      # (T, T) bool
    wo = wo_ref[...].astype(jnp.float32)                        # (D, D)
    out = res_ref[0].astype(jnp.float32) + bo_ref[...]          # residual + bias

    for h in range(heads):                                      # static unroll
        q_h = qkv[:, h * dk:(h + 1) * dk]
        k_h = qkv[:, D + h * dk:D + (h + 1) * dk]
        v_h = qkv[:, 2 * D + h * dk:2 * D + (h + 1) * dk]
        s = jax.lax.dot_general(q_h, k_h, (((1,), (1,)), ((), ())),
                                preferred_element_type=jnp.float32)   # (T, T)
        s = jnp.where(mask, s, -1e9)
        s = s - jnp.max(s, axis=-1, keepdims=True)
        p = jnp.exp(s)
        p = p * pl.reciprocal(jnp.sum(p, axis=-1, keepdims=True), approx=True)
        ctx_h = jnp.dot(p, v_h, preferred_element_type=jnp.float32)   # (T, dk)
        # fold the output projection in per-head: ctx @ Wo = sum_h ctx_h @ Wo[h]
        out = out + jnp.dot(ctx_h, wo[h * dk:(h + 1) * dk, :],
                            preferred_element_type=jnp.float32)
    o_ref[0] = out.astype(o_ref.dtype)


def _cross_attn_kernel(q_ref, kv_ref, mask_ref, wo_ref, bo_ref, res_ref,
                       o_ref, a_ref, *, heads):
    q = q_ref[0].astype(jnp.float32)                            # (T, D), pre-scaled
    kv = kv_ref[0].astype(jnp.float32)                          # (S, 2D)
    D = q.shape[1]
    dk = D // heads
    mask = mask_ref[0] > 0                                      # (T, S) bool
    wo = wo_ref[...].astype(jnp.float32)
    out = res_ref[0].astype(jnp.float32) + bo_ref[...]

    for h in range(heads):
        q_h = q[:, h * dk:(h + 1) * dk]
        k_h = kv[:, h * dk:(h + 1) * dk]
        v_h = kv[:, D + h * dk:D + (h + 1) * dk]
        s = jax.lax.dot_general(q_h, k_h, (((1,), (1,)), ((), ())),
                                preferred_element_type=jnp.float32)   # (T, S)
        s = jnp.where(mask, s, -1e9)
        s = s - jnp.max(s, axis=-1, keepdims=True)
        p = jnp.exp(s)
        p = p * pl.reciprocal(jnp.sum(p, axis=-1, keepdims=True), approx=True)
        a_ref[0, h] = p.astype(a_ref.dtype)                     # returned attn probs
        ctx_h = jnp.dot(p, v_h, preferred_element_type=jnp.float32)
        out = out + jnp.dot(ctx_h, wo[h * dk:(h + 1) * dk, :],
                            preferred_element_type=jnp.float32)
    o_ref[0] = out.astype(o_ref.dtype)


def self_attention_block(trg, trg_mask, ln_g, ln_b, p, heads):
    """trg + SelfAttn(LN(trg)) with projections, softmax and residual fused."""
    B, T, D = trg.shape
    scale = 1.0 / math.sqrt(D // heads)
    # fold the 1/sqrt(dk) score scale into the Q projection (weights + bias)
    wqkv = jnp.concatenate([p["wq"] * scale, p["wk"], p["wv"]], axis=1)   # (D, 3D)
    bqkv = jnp.concatenate([p["bq"] * scale, p["bk"], p["bv"]], axis=0)   # (3D,)

    qkv = ln_linear(trg.reshape(B * T, D), ln_g, ln_b, wqkv, bqkv)
    qkv = qkv.reshape(B, T, 3 * D)

    return pl.pallas_call(
        functools.partial(_self_attn_kernel, heads=heads),
        out_shape=jax.ShapeDtypeStruct((B, T, D), trg.dtype),
        grid=(B,),
        in_specs=[pl.BlockSpec((1, T, 3 * D), lambda b: (b, 0, 0)),
                  pl.BlockSpec((1, T, T), lambda b: (b, 0, 0)),
                  pl.BlockSpec((D, D), lambda b: (0, 0)),
                  pl.BlockSpec((1, D), lambda b: (0, 0)),
                  pl.BlockSpec((1, T, D), lambda b: (b, 0, 0))],
        out_specs=pl.BlockSpec((1, T, D), lambda b: (b, 0, 0)),
        compiler_params=pltpu.CompilerParams(
            dimension_semantics=("parallel",),
            vmem_limit_bytes=_VMEM_LIMIT),
    )(qkv, trg_mask, p["wo"], p["bo"].reshape(1, D), trg)


def cross_attention_block(trg, memory, src_mask, ln_g, ln_b, p, heads):
    """trg + EncDecAttn(LN(trg), memory) fused; also returns attn probs."""
    B, T, D = trg.shape
    S = memory.shape[1]
    scale = 1.0 / math.sqrt(D // heads)

    q = ln_linear(trg.reshape(B * T, D), ln_g, ln_b,
                  p["wq"] * scale, p["bq"] * scale).reshape(B, T, D)
    wkv = jnp.concatenate([p["wk"], p["wv"]], axis=1)                     # (D, 2D)
    bkv = jnp.concatenate([p["bk"], p["bv"]], axis=0)                     # (2D,)
    kv = linear(memory.reshape(B * S, D), wkv, bkv).reshape(B, S, 2 * D)

    out, attn = pl.pallas_call(
        functools.partial(_cross_attn_kernel, heads=heads),
        out_shape=(jax.ShapeDtypeStruct((B, T, D), trg.dtype),
                   jax.ShapeDtypeStruct((B, heads, T, S), jnp.float32)),
        grid=(B,),
        in_specs=[pl.BlockSpec((1, T, D), lambda b: (b, 0, 0)),
                  pl.BlockSpec((1, S, 2 * D), lambda b: (b, 0, 0)),
                  pl.BlockSpec((1, T, S), lambda b: (b, 0, 0)),
                  pl.BlockSpec((D, D), lambda b: (0, 0)),
                  pl.BlockSpec((1, D), lambda b: (0, 0)),
                  pl.BlockSpec((1, T, D), lambda b: (b, 0, 0))],
        out_specs=(pl.BlockSpec((1, T, D), lambda b: (b, 0, 0)),
                   pl.BlockSpec((1, heads, T, S), lambda b: (b, 0, 0, 0))),
        compiler_params=pltpu.CompilerParams(
            dimension_semantics=("parallel",),
            vmem_limit_bytes=_VMEM_LIMIT),
    )(q, kv, src_mask, p["wo"], p["bo"].reshape(1, D), trg)
    return out, attn


# ------------------- fused LayerNorm + FeedForward + residual -----------------

def _ln_ff_res_kernel(x_ref, g_ref, beta_ref, w1_ref, b1_ref, w2_ref, b2_ref, o_ref):
    x = x_ref[...].astype(jnp.float32)                          # (tm, D) residual
    mean = jnp.mean(x, axis=-1, keepdims=True)
    var = jnp.mean((x - mean) ** 2, axis=-1, keepdims=True)
    xn = (x - mean) * jax.lax.rsqrt(var + 1e-5) * g_ref[...] + beta_ref[...]
    h = jnp.dot(xn, w1_ref[...].astype(jnp.float32),
                preferred_element_type=jnp.float32) + b1_ref[...]
    h = jnp.maximum(h, 0.0)                                     # ReLU
    y = jnp.dot(h, w2_ref[...].astype(jnp.float32),
                preferred_element_type=jnp.float32) + b2_ref[...]
    o_ref[...] = (x + y).astype(o_ref.dtype)                    # residual add


def ln_ff_residual(x2d, gamma, beta, w1, b1, w2, b2, *, tile=512):
    # TODO(synk): for d_model >= 2048 on v7x (64 MiB VMEM), tile d_ff with an
    #             extra grid axis + f32 accumulator instead of keeping both
    #             full weight slabs resident.
    M, D = x2d.shape
    F = w1.shape[1]
    tm = _pick_tile(M, tile)
    return pl.pallas_call(
        _ln_ff_res_kernel,
        out_shape=jax.ShapeDtypeStruct((M, D), x2d.dtype),
        grid=(M // tm,),
        in_specs=[pl.BlockSpec((tm, D), lambda i: (i, 0)),
                  pl.BlockSpec((1, D), lambda i: (0, 0)),
                  pl.BlockSpec((1, D), lambda i: (0, 0)),
                  pl.BlockSpec((D, F), lambda i: (0, 0)),
                  pl.BlockSpec((1, F), lambda i: (0, 0)),
                  pl.BlockSpec((F, D), lambda i: (0, 0)),
                  pl.BlockSpec((1, D), lambda i: (0, 0))],
        out_specs=pl.BlockSpec((tm, D), lambda i: (i, 0)),
        compiler_params=pltpu.CompilerParams(
            dimension_semantics=("parallel",),
            vmem_limit_bytes=_VMEM_LIMIT),
    )(x2d, gamma.reshape(1, D), beta.reshape(1, D),
      w1, b1.reshape(1, F), w2, b2.reshape(1, D))


# ---------------------------------- DecoderLayer ------------------------------

def decoder_layer(trg, memory, src_mask, trg_mask, params, heads):
    B, T, D = trg.shape
    ln_g, ln_b = params["ln_g"], params["ln_b"]

    # norm -> self-attention -> out-proj -> residual   (dropout = identity)
    trg = self_attention_block(trg, trg_mask, ln_g, ln_b, params["self_attn"], heads)

    # norm -> encoder-decoder attention -> out-proj -> residual
    trg, attn = cross_attention_block(trg, memory, src_mask, ln_g, ln_b,
                                      params["enc_attn"], heads)

    # norm -> feed-forward -> residual (fully fused)
    ff = params["ff"]
    trg = ln_ff_residual(trg.reshape(B * T, D), ln_g, ln_b,
                         ff["w1"], ff["b1"], ff["w2"], ff["b2"]).reshape(B, T, D)
    return trg, attn


# ----------------------------------- Param init -------------------------------

def init_params(key, d_model, heads, d_ff):
    keys = jax.random.split(key, 16)
    idx = iter(range(16))

    def w(shape):
        return jax.random.normal(keys[next(idx)], shape, jnp.float32) * 0.02

    def mha_params():
        return {"wq": w((d_model, d_model)), "bq": jnp.zeros((d_model,), jnp.float32),
                "wk": w((d_model, d_model)), "bk": jnp.zeros((d_model,), jnp.float32),
                "wv": w((d_model, d_model)), "bv": jnp.zeros((d_model,), jnp.float32),
                "wo": w((d_model, d_model)), "bo": jnp.zeros((d_model,), jnp.float32)}

    return {
        "ln_g": jnp.ones((d_model,), jnp.float32),
        "ln_b": jnp.zeros((d_model,), jnp.float32),
        "self_attn": mha_params(),
        "enc_attn": mha_params(),
        "ff": {"w1": w((d_model, d_ff)), "b1": jnp.zeros((d_ff,), jnp.float32),
               "w2": w((d_ff, d_model)), "b2": jnp.zeros((d_model,), jnp.float32)},
    }


# -------------------------------------- Main ----------------------------------

if __name__ == "__main__":
    B, T, S, D, H = 2, 8, 8, 32, 4
    d_ff = 4 * D

    key = jax.random.PRNGKey(0)
    k_trg, k_mem, k_par = jax.random.split(key, 3)

    trg = jax.random.normal(k_trg, (B, T, D), jnp.float32)
    memory = jax.random.normal(k_mem, (B, S, D), jnp.float32)

    # causal target mask (B, T, T), all-ones source mask (B, T, S)
    trg_mask = jnp.broadcast_to(
        jnp.tril(jnp.ones((T, T), jnp.float32))[None], (B, T, T))
    src_mask = jnp.ones((B, T, S), jnp.float32)

    params = init_params(k_par, D, H, d_ff)

    fn = jax.jit(functools.partial(decoder_layer, heads=H))
    out, attn = fn(trg, memory, src_mask, trg_mask, params)
    jax.block_until_ready((out, attn))

    assert out.shape == (B, T, D) and attn.shape == (B, H, T, S)
    assert bool(jnp.all(jnp.isfinite(out))) and bool(jnp.all(jnp.isfinite(attn)))
    print("KERNEL_OK")
</pallas_src>

<mosaic_0001>
module attributes {stable_mosaic.version = 11 : i64} {
  func.func @_linear_kernel(%arg0: i32, %arg1: memref<16x32xf32, #tpu.memory_space<vmem>>, %arg2: memref<32x64xf32, #tpu.memory_space<vmem>>, %arg3: memref<1x64xf32, #tpu.memory_space<vmem>>, %arg4: memref<16x64xf32, #tpu.memory_space<vmem>>) attributes {dimension_semantics = [#tpu.dimension_semantics<parallel>], iteration_bounds = array<i64: 1>, scalar_prefetch = 0 : i64, scratch_operands = 0 : i64, tpu.core_type = #tpu.core_type<tc>, window_params = [{transform_indices = @transform_0, window_bounds = array<i64: 16, 32>}, {pipeline_mode = #tpu.pipeline_mode<synchronous>, transform_indices = @transform_1, window_bounds = array<i64: 32, 64>}, {pipeline_mode = #tpu.pipeline_mode<synchronous>, transform_indices = @transform_2, window_bounds = array<i64: 1, 64>}, {transform_indices = @transform_3, window_bounds = array<i64: 16, 64>}]} {
    %c0 = arith.constant 0 : index
    %c0_0 = arith.constant 0 : index
    %0 = vector.load %arg1[%c0, %c0_0] : memref<16x32xf32, #tpu.memory_space<vmem>>, vector<16x32xf32>
    %c0_1 = arith.constant 0 : index
    %c0_2 = arith.constant 0 : index
    %1 = vector.load %arg2[%c0_1, %c0_2] : memref<32x64xf32, #tpu.memory_space<vmem>>, vector<32x64xf32>
    %cst = arith.constant dense<0.000000e+00> : vector<16x64xf32>
    %2 = tpu.matmul %0, %1, %cst {dimension_numbers = #tpu.dot_dimension_numbers<[1], [0], [0], [1], [0, 0, 1, 1], [], []>} : vector<16x32xf32>, vector<32x64xf32>, vector<16x64xf32> -> vector<16x64xf32>
    %c0_3 = arith.constant 0 : index
    %c0_4 = arith.constant 0 : index
    %3 = vector.load %arg3[%c0_3, %c0_4] : memref<1x64xf32, #tpu.memory_space<vmem>>, vector<1x64xf32>
    %4 = vector.broadcast %3 : vector<1x64xf32> to vector<16x64xf32>
    %5 = arith.addf %2, %4 : vector<16x64xf32>
    %c0_5 = arith.constant 0 : index
    %c0_6 = arith.constant 0 : index
    %6 = vector.load %arg4[%c0_5, %c0_6] : memref<16x64xf32, #tpu.memory_space<vmem>>, vector<16x64xf32>
    tpu.vector_store %arg4[%c0_5, %c0_6], %5 {strides = array<i32>} : memref<16x64xf32, #tpu.memory_space<vmem>>, vector<16x64xf32>,
    return
  }
  func.func @transform_0(%arg0: i32) -> (i32, i32) {
    %c0_i32 = arith.constant 0 : i32
    %c0_i32_0 = arith.constant 0 : i32
    return %arg0, %c0_i32 : i32, i32
  }
  func.func @transform_1(%arg0: i32) -> (i32, i32) {
    %c0_i32 = arith.constant 0 : i32
    %c0_i32_0 = arith.constant 0 : i32
    %c0_i32_1 = arith.constant 0 : i32
    return %c0_i32, %c0_i32_0 : i32, i32
  }
  func.func @transform_2(%arg0: i32) -> (i32, i32) {
    %c0_i32 = arith.constant 0 : i32
    %c0_i32_0 = arith.constant 0 : i32
    %c0_i32_1 = arith.constant 0 : i32
    return %c0_i32, %c0_i32_0 : i32, i32
  }
  func.func @transform_3(%arg0: i32) -> (i32, i32) {
    %c0_i32 = arith.constant 0 : i32
    %c0_i32_0 = arith.constant 0 : i32
    return %arg0, %c0_i32 : i32, i32
  }
}

module attributes {stable_mosaic.version = 11 : i64} {
  func.func @_self_attn_kernel(%arg0: i32, %arg1: memref<1x8x96xf32, #tpu.memory_space<vmem>>, %arg2: memref<1x8x8xf32, #tpu.memory_space<vmem>>, %arg3: memref<32x32xf32, #tpu.memory_space<vmem>>, %arg4: memref<1x32xf32, #tpu.memory_space<vmem>>, %arg5: memref<1x8x32xf32, #tpu.memory_space<vmem>>, %arg6: memref<1x8x32xf32, #tpu.memory_space<vmem>>) attributes {dimension_semantics = [#tpu.dimension_semantics<parallel>], iteration_bounds = array<i64: 2>, scalar_prefetch = 0 : i64, scratch_operands = 0 : i64, tpu.core_type = #tpu.core_type<tc>, window_params = [{transform_indices = @transform_0, window_bounds = array<i64: 1, 8, 96>}, {transform_indices = @transform_1, window_bounds = array<i64: 1, 8, 8>}, {pipeline_mode = #tpu.pipeline_mode<synchronous>, transform_indices = @transform_2, window_bounds = array<i64: 32, 32>}, {pipeline_mode = #tpu.pipeline_mode<synchronous>, transform_indices = @transform_3, window_bounds = array<i64: 1, 32>}, {transform_indices = @transform_4, window_bounds = array<i64: 1, 8, 32>}, {transform_indices = @transform_5, window_bounds = array<i64: 1, 8, 32>}]} {
    %c0 = arith.constant 0 : index
    %c0_0 = arith.constant 0 : index
    %c0_1 = arith.constant 0 : index
    %0 = vector.load %arg1[%c0, %c0_0, %c0_1] : memref<1x8x96xf32, #tpu.memory_space<vmem>>, vector<1x8x96xf32>
    %1 = vector.shape_cast %0 : vector<1x8x96xf32> to vector<8x96xf32>
    %c0_2 = arith.constant 0 : index
    %c0_3 = arith.constant 0 : index
    %c0_4 = arith.constant 0 : index
    %2 = vector.load %arg2[%c0_2, %c0_3, %c0_4] : memref<1x8x8xf32, #tpu.memory_space<vmem>>, vector<1x8x8xf32>
    %3 = vector.shape_cast %2 : vector<1x8x8xf32> to vector<8x8xf32>
    %cst = arith.constant 0.000000e+00 : f32
    %4 = vector.broadcast %cst : f32 to vector<8x8xf32>
    %5 = arith.cmpf ogt, %3, %4 : vector<8x8xf32>
    %c0_5 = arith.constant 0 : index
    %c0_6 = arith.constant 0 : index
    %6 = vector.load %arg3[%c0_5, %c0_6] : memref<32x32xf32, #tpu.memory_space<vmem>>, vector<32x32xf32>
    %c0_7 = arith.constant 0 : index
    %c0_8 = arith.constant 0 : index
    %c0_9 = arith.constant 0 : index
    %7 = vector.load %arg5[%c0_7, %c0_8, %c0_9] : memref<1x8x32xf32, #tpu.memory_space<vmem>>, vector<1x8x32xf32>
    %8 = vector.shape_cast %7 : vector<1x8x32xf32> to vector<8x32xf32>
    %c0_10 = arith.constant 0 : index
    %c0_11 = arith.constant 0 : index
    %9 = vector.load %arg4[%c0_10, %c0_11] : memref<1x32xf32, #tpu.memory_space<vmem>>, vector<1x32xf32>
    %10 = vector.broadcast %9 : vector<1x32xf32> to vector<8x32xf32>
    %11 = arith.addf %8, %10 : vector<8x32xf32>
    %12 = vector.extract_strided_slice %1 {offsets = [0, 0], sizes = [8, 8], strides = [1, 1]} : vector<8x96xf32> to vector<8x8xf32>
    %13 = vector.extract_strided_slice %1 {offsets = [0, 32], sizes = [8, 8], strides = [1, 1]} : vector<8x96xf32> to vector<8x8xf32>
    %14 = vector.extract_strided_slice %1 {offsets = [0, 64], sizes = [8, 8], strides = [1, 1]} : vector<8x96xf32> to vector<8x8xf32>
    %cst_12 = arith.constant dense<0.000000e+00> : vector<8x8xf32>
    %15 = tpu.matmul %12, %13, %cst_12 {dimension_numbers = #tpu.dot_dimension_numbers<[1], [1], [0], [0], [0, 0, 1, 0], [], []>} : vector<8x8xf32>, vector<8x8xf32>, vector<8x8xf32> -> vector<8x8xf32>
    %cst_13 = arith.constant -1.000000e+09 : f32
    %16 = vector.broadcast %cst_13 : f32 to vector<8x8xf32>
    %17 = arith.select %5, %15, %16 : vector<8x8xi1>, vector<8x8xf32>
    %cst_14 = arith.constant dense<0xFF800000> : vector<8xf32>
    %18 = vector.multi_reduction <maximumf>, %17, %cst_14 [1] : vector<8x8xf32> to vector<8xf32>
    %19 = vector.shape_cast %18 : vector<8xf32> to vector<8x1xf32>
    %20 = vector.broadcast %19 : vector<8x1xf32> to vector<8x8xf32>
    %21 = arith.subf %17, %20 : vector<8x8xf32>
    %22 = math.exp %21 : vector<8x8xf32>
    %cst_15 = arith.constant dense<0.000000e+00> : vector<8xf32>
    %23 = vector.multi_reduction <add>, %22, %cst_15 [1] : vector<8x8xf32> to vector<8xf32>
    %24 = vector.shape_cast %23 : vector<8xf32> to vector<8x1xf32>
    %25 = tpu.reciprocal %24 {approx = true} : vector<8x1xf32> -> vector<8x1xf32>
    %26 = vector.broadcast %25 : vector<8x1xf32> to vector<8x8xf32>
    %27 = arith.mulf %22, %26 : vector<8x8xf32>
    %cst_16 = arith.constant dense<0.000000e+00> : vector<8x8xf32>
    %28 = tpu.matmul %27, %14, %cst_16 {dimension_numbers = #tpu.dot_dimension_numbers<[1], [0], [0], [1], [0, 0, 1, 1], [], []>} : vector<8x8xf32>, vector<8x8xf32>, vector<8x8xf32> -> vector<8x8xf32>
    %29 = vector.extract_strided_slice %6 {offsets = [0, 0], sizes = [8, 32], strides = [1, 1]} : vector<32x32xf32> to vector<8x32xf32>
    %cst_17 = arith.constant dense<0.000000e+00> : vector<8x32xf32>
    %30 = tpu.matmul %28, %29, %cst_17 {dimension_numbers = #tpu.dot_dimension_numbers<[1], [0], [0], [1], [0, 0, 1, 1], [], []>} : vector<8x8xf32>, vector<8x32xf32>, vector<8x32xf32> -> vector<8x32xf32>
    %31 = arith.addf %11, %30 : vector<8x32xf32>
    %32 = vector.extract_strided_slice %1 {offsets = [0, 8], sizes = [8, 8], strides = [1, 1]} : vector<8x96xf32> to vector<8x8xf32>
    %33 = vector.extract_strided_slice %1 {offsets = [0, 40], sizes = [8, 8], strides = [1, 1]} : vector<8x96xf32> to vector<8x8xf32>
    %34 = vector.extract_strided_slice %1 {offsets = [0, 72], sizes = [8, 8], strides = [1, 1]} : vector<8x96xf32> to vector<8x8xf32>
    %cst_18 = arith.constant dense<0.000000e+00> : vector<8x8xf32>
    %35 = tpu.matmul %32, %33, %cst_18 {dimension_numbers = #tpu.dot_dimension_numbers<[1], [1], [0], [0], [0, 0, 1, 0], [], []>} : vector<8x8xf32>, vector<8x8xf32>, vector<8x8xf32> -> vector<8x8xf32>
    %cst_19 = arith.constant -1.000000e+09 : f32
    %36 = vector.broadcast %cst_19 : f32 to vector<8x8xf32>
    %37 = arith.select %5, %35, %36 : vector<8x8xi1>, vector<8x8xf32>
    %cst_20 = arith.constant dense<0xFF800000> : vector<8xf32>
    %38 = vector.multi_reduction <maximumf>, %37, %cst_20 [1] : vector<8x8xf32> to vector<8xf32>
    %39 = vector.shape_cast %38 : vector<8xf32> to vector<8x1xf32>
    %40 = vector.broadcast %39 : vector<8x1xf32> to vector<8x8xf32>
    %41 = arith.subf %37, %40 : vector<8x8xf32>
    %42 = math.exp %41 : vector<8x8xf32>
    %cst_21 = arith.constant dense<0.000000e+00> : vector<8xf32>
    %43 = vector.multi_reduction <add>, %42, %cst_21 [1] : vector<8x8xf32> to vector<8xf32>
    %44 = vector.shape_cast %43 : vector<8xf32> to vector<8x1xf32>
    %45 = tpu.reciprocal %44 {approx = true} : vector<8x1xf32> -> vector<8x1xf32>
    %46 = vector.broadcast %45 : vector<8x1xf32> to vector<8x8xf32>
    %47 = arith.mulf %42, %46 : vector<8x8xf32>
    %cst_22 = arith.constant dense<0.000000e+00> : vector<8x8xf32>
    %48 = tpu.matmul %47, %34, %cst_22 {dimension_numbers = #tpu.dot_dimension_numbers<[1], [0], [0], [1], [0, 0, 1, 1], [], []>} : vector<8x8xf32>, vector<8x8xf32>, vector<8x8xf32> -> vector<8x8xf32>
    %49 = vector.extract_strided_slice %6 {offsets = [8, 0], sizes = [8, 32], strides = [1, 1]} : vector<32x32xf32> to vector<8x32xf32>
    %cst_23 = arith.constant dense<0.000000e+00> : vector<8x32xf32>
    %50 = tpu.matmul %48, %49, %cst_23 {dimension_numbers = #tpu.dot_dimension_numbers<[1], [0], [0], [1], [0, 0, 1, 1], [], []>} : vector<8x8xf32>, vector<8x32xf32>, vector<8x32xf32> -> vector<8x32xf32>
    %51 = arith.addf %31, %50 : vector<8x32xf32>
    %52 = vector.extract_strided_slice %1 {offsets = [0, 16], sizes = [8, 8], strides = [1, 1]} : vector<8x96xf32> to vector<8x8xf32>
    %53 = vector.extract_strided_slice %1 {offsets = [0, 48], sizes = [8, 8], strides = [1, 1]} : vector<8x96xf32> to vector<8x8xf32>
    %54 = vector.extract_strided_slice %1 {offsets = [0, 80], sizes = [8, 8], strides = [1, 1]} : vector<8x96xf32> to vector<8x8xf32>
    %cst_24 = arith.constant dense<0.000000e+00> : vector<8x8xf32>
    %55 = tpu.matmul %52, %53, %cst_24 {dimension_numbers = #tpu.dot_dimension_numbers<[1], [1], [0], [0], [0, 0, 1, 0], [], []>} : vector<8x8xf32>, vector<8x8xf32>, vector<8x8xf32> -> vector<8x8xf32>
    %cst_25 = arith.constant -1.000000e+09 : f32
    %56 = vector.broadcast %cst_25 : f32 to vector<8x8xf32>
    %57 = arith.select %5, %55, %56 : vector<8x8xi1>, vector<8x8xf32>
    %cst_26 = arith.constant dense<0xFF800000> : vector<8xf32>
    %58 = vector.multi_reduction <maximumf>, %57, %cst_26 [1] : vector<8x8xf32> to vector<8xf32>
    %59 = vector.shape_cast %58 : vector<8xf32> to vector<8x1xf32>
    %60 = vector.broadcast %59 : vector<8x1xf32> to vector<8x8xf32>
    %61 = arith.subf %57, %60 : vector<8x8xf32>
    %62 = math.exp %61 : vector<8x8xf32>
    %cst_27 = arith.constant dense<0.000000e+00> : vector<8xf32>
    %63 = vector.multi_reduction <add>, %62, %cst_27 [1] : vector<8x8xf32> to vector<8xf32>
    %64 = vector.shape_cast %63 : vector<8xf32> to vector<8x1xf32>
    %65 = tpu.reciprocal %64 {approx = true} : vector<8x1xf32> -> vector<8x1xf32>
    %66 = vector.broadcast %65 : vector<8x1xf32> to vector<8x8xf32>
    %67 = arith.mulf %62, %66 : vector<8x8xf32>
    %cst_28 = arith.constant dense<0.000000e+00> : vector<8x8xf32>
    %68 = tpu.matmul %67, %54, %cst_28 {dimension_numbers = #tpu.dot_dimension_numbers<[1], [0], [0], [1], [0, 0, 1, 1], [], []>} : vector<8x8xf32>, vector<8x8xf32>, vector<8x8xf32> -> vector<8x8xf32>
    %69 = vector.extract_strided_slice %6 {offsets = [16, 0], sizes = [8, 32], strides = [1, 1]} : vector<32x32xf32> to vector<8x32xf32>
    %cst_29 = arith.constant dense<0.000000e+00> : vector<8x32xf32>
    %70 = tpu.matmul %68, %69, %cst_29 {dimension_numbers = #tpu.dot_dimension_numbers<[1], [0], [0], [1], [0, 0, 1, 1], [], []>} : vector<8x8xf32>, vector<8x32xf32>, vector<8x32xf32> -> vector<8x32xf32>
    %71 = arith.addf %51, %70 : vector<8x32xf32>
    %72 = vector.extract_strided_slice %1 {offsets = [0, 24], sizes = [8, 8], strides = [1, 1]} : vector<8x96xf32> to vector<8x8xf32>
    %73 = vector.extract_strided_slice %1 {offsets = [0, 56], sizes = [8, 8], strides = [1, 1]} : vector<8x96xf32> to vector<8x8xf32>
    %74 = vector.extract_strided_slice %1 {offsets = [0, 88], sizes = [8, 8], strides = [1, 1]} : vector<8x96xf32> to vector<8x8xf32>
    %cst_30 = arith.constant dense<0.000000e+00> : vector<8x8xf32>
    %75 = tpu.matmul %72, %73, %cst_30 {dimension_numbers = #tpu.dot_dimension_numbers<[1], [1], [0], [0], [0, 0, 1, 0], [], []>} : vector<8x8xf32>, vector<8x8xf32>, vector<8x8xf32> -> vector<8x8xf32>
    %cst_31 = arith.constant -1.000000e+09 : f32
    %76 = vector.broadcast %cst_31 : f32 to vector<8x8xf32>
    %77 = arith.select %5, %75, %76 : vector<8x8xi1>, vector<8x8xf32>
    %cst_32 = arith.constant dense<0xFF800000> : vector<8xf32>
    %78 = vector.multi_reduction <maximumf>, %77, %cst_32 [1] : vector<8x8xf32> to vector<8xf32>
    %79 = vector.shape_cast %78 : vector<8xf32> to vector<8x1xf32>
    %80 = vector.broadcast %79 : vector<8x1xf32> to vector<8x8xf32>
    %81 = arith.subf %77, %80 : vector<8x8xf32>
    %82 = math.exp %81 : vector<8x8xf32>
    %cst_33 = arith.constant dense<0.000000e+00> : vector<8xf32>
    %83 = vector.multi_reduction <add>, %82, %cst_33 [1] : vector<8x8xf32> to vector<8xf32>
    %84 = vector.shape_cast %83 : vector<8xf32> to vector<8x1xf32>
    %85 = tpu.reciprocal %84 {approx = true} : vector<8x1xf32> -> vector<8x1xf32>
    %86 = vector.broadcast %85 : vector<8x1xf32> to vector<8x8xf32>
    %87 = arith.mulf %82, %86 : vector<8x8xf32>
    %cst_34 = arith.constant dense<0.000000e+00> : vector<8x8xf32>
    %88 = tpu.matmul %87, %74, %cst_34 {dimension_numbers = #tpu.dot_dimension_numbers<[1], [0], [0], [1], [0, 0, 1, 1], [], []>} : vector<8x8xf32>, vector<8x8xf32>, vector<8x8xf32> -> vector<8x8xf32>
    %89 = vector.extract_strided_slice %6 {offsets = [24, 0], sizes = [8, 32], strides = [1, 1]} : vector<32x32xf32> to vector<8x32xf32>
    %cst_35 = arith.constant dense<0.000000e+00> : vector<8x32xf32>
    %90 = tpu.matmul %88, %89, %cst_35 {dimension_numbers = #tpu.dot_dimension_numbers<[1], [0], [0], [1], [0, 0, 1, 1], [], []>} : vector<8x8xf32>, vector<8x32xf32>, vector<8x32xf32> -> vector<8x32xf32>
    %91 = arith.addf %71, %90 : vector<8x32xf32>
    %c0_36 = arith.constant 0 : index
    %c0_37 = arith.constant 0 : index
    %c0_38 = arith.constant 0 : index
    %92 = vector.load %arg6[%c0_36, %c0_37, %c0_38] : memref<1x8x32xf32, #tpu.memory_space<vmem>>, vector<1x8x32xf32>
    %93 = vector.shape_cast %92 : vector<1x8x32xf32> to vector<8x32xf32>
    %94 = vector.shape_cast %91 : vector<8x32xf32> to vector<1x8x32xf32>
    tpu.vector_store %arg6[%c0_36, %c0_37, %c0_38], %94 {strides = array<i32>} : memref<1x8x32xf32, #tpu.memory_space<vmem>>, vector<1x8x32xf32>,
    return
  }
  func.func @transform_0(%arg0: i32) -> (i32, i32, i32) {
    %c0_i32 = arith.constant 0 : i32
    %c0_i32_0 = arith.constant 0 : i32
    %c0_i32_1 = arith.constant 0 : i32
    return %arg0, %c0_i32, %c0_i32_0 : i32, i32, i32
  }
  func.func @transform_1(%arg0: i32) -> (i32, i32, i32) {
    %c0_i32 = arith.constant 0 : i32
    %c0_i32_0 = arith.constant 0 : i32
    %c0_i32_1 = arith.constant 0 : i32
    return %arg0, %c0_i32, %c0_i32_0 : i32, i32, i32
  }
  func.func @transform_2(%arg0: i32) -> (i32, i32) {
    %c0_i32 = arith.constant 0 : i32
    %c0_i32_0 = arith.constant 0 : i32
    %c0_i32_1 = arith.constant 0 : i32
    return %c0_i32, %c0_i32_0 : i32, i32
  }
  func.func @transform_3(%arg0: i32) -> (i32, i32) {
    %c0_i32 = arith.constant 0 : i32
    %c0_i32_0 = arith.constant 0 : i32
    %c0_i32_1 = arith.constant 0 : i32
    return %c0_i32, %c0_i32_0 : i32, i32
  }
  func.func @transform_4(%arg0: i32) -> (i32, i32, i32) {
    %c0_i32 = arith.constant 0 : i32
    %c0_i32_0 = arith.constant 0 : i32
    %c0_i32_1 = arith.constant 0 : i32
    return %arg0, %c0_i32, %c0_i32_0 : i32, i32, i32
  }
  func.func @transform_5(%arg0: i32) -> (i32, i32, i32) {
    %c0_i32 = arith.constant 0 : i32
    %c0_i32_0 = arith.constant 0 : i32
    %c0_i32_1 = arith.constant 0 : i32
    return %arg0, %c0_i32, %c0_i32_0 : i32, i32, i32
  }
}

module attributes {stable_mosaic.version = 11 : i64} {
  func.func @_ln_linear_kernel(%arg0: i32, %arg1: memref<16x32xf32, #tpu.memory_space<vmem>>, %arg2: memref<1x32xf32, #tpu.memory_space<vmem>>, %arg3: memref<1x32xf32, #tpu.memory_space<vmem>>, %arg4: memref<32x32xf32, #tpu.memory_space<vmem>>, %arg5: memref<1x32xf32, #tpu.memory_space<vmem>>, %arg6: memref<16x32xf32, #tpu.memory_space<vmem>>) attributes {dimension_semantics = [#tpu.dimension_semantics<parallel>], iteration_bounds = array<i64: 1>, scalar_prefetch = 0 : i64, scratch_operands = 0 : i64, tpu.core_type = #tpu.core_type<tc>, window_params = [{transform_indices = @transform_0, window_bounds = array<i64: 16, 32>}, {pipeline_mode = #tpu.pipeline_mode<synchronous>, transform_indices = @transform_1, window_bounds = array<i64: 1, 32>}, {pipeline_mode = #tpu.pipeline_mode<synchronous>, transform_indices = @transform_2, window_bounds = array<i64: 1, 32>}, {pipeline_mode = #tpu.pipeline_mode<synchronous>, transform_indices = @transform_3, window_bounds = array<i64: 32, 32>}, {pipeline_mode = #tpu.pipeline_mode<synchronous>, transform_indices = @transform_4, window_bounds = array<i64: 1, 32>}, {transform_indices = @transform_5, window_bounds = array<i64: 16, 32>}]} {
    %c0 = arith.constant 0 : index
    %c0_0 = arith.constant 0 : index
    %0 = vector.load %arg1[%c0, %c0_0] : memref<16x32xf32, #tpu.memory_space<vmem>>, vector<16x32xf32>
    %cst = arith.constant dense<0.000000e+00> : vector<16xf32>
    %1 = vector.multi_reduction <add>, %0, %cst [1] : vector<16x32xf32> to vector<16xf32>
    %2 = vector.shape_cast %1 : vector<16xf32> to vector<16x1xf32>
    %cst_1 = arith.constant 3.200000e+01 : f32
    %3 = vector.broadcast %cst_1 : f32 to vector<16x1xf32>
    %4 = arith.divf %2, %3 : vector<16x1xf32>
    %5 = vector.broadcast %4 : vector<16x1xf32> to vector<16x32xf32>
    %6 = arith.subf %0, %5 : vector<16x32xf32>
    %7 = arith.mulf %6, %6 : vector<16x32xf32>
    %cst_2 = arith.constant dense<0.000000e+00> : vector<16xf32>
    %8 = vector.multi_reduction <add>, %7, %cst_2 [1] : vector<16x32xf32> to vector<16xf32>
    %9 = vector.shape_cast %8 : vector<16xf32> to vector<16x1xf32>
    %cst_3 = arith.constant 3.200000e+01 : f32
    %10 = vector.broadcast %cst_3 : f32 to vector<16x1xf32>
    %11 = arith.divf %9, %10 : vector<16x1xf32>
    %12 = vector.broadcast %4 : vector<16x1xf32> to vector<16x32xf32>
    %13 = arith.subf %0, %12 : vector<16x32xf32>
    %cst_4 = arith.constant 9.99999974E-6 : f32
    %14 = vector.broadcast %cst_4 : f32 to vector<16x1xf32>
    %15 = arith.addf %11, %14 : vector<16x1xf32>
    %16 = math.rsqrt %15 : vector<16x1xf32>
    %17 = vector.broadcast %16 : vector<16x1xf32> to vector<16x32xf32>
    %18 = arith.mulf %13, %17 : vector<16x32xf32>
    %c0_5 = arith.constant 0 : index
    %c0_6 = arith.constant 0 : index
    %19 = vector.load %arg2[%c0_5, %c0_6] : memref<1x32xf32, #tpu.memory_space<vmem>>, vector<1x32xf32>
    %20 = vector.broadcast %19 : vector<1x32xf32> to vector<16x32xf32>
    %21 = arith.mulf %18, %20 : vector<16x32xf32>
    %c0_7 = arith.constant 0 : index
    %c0_8 = arith.constant 0 : index
    %22 = vector.load %arg3[%c0_7, %c0_8] : memref<1x32xf32, #tpu.memory_space<vmem>>, vector<1x32xf32>
    %23 = vector.broadcast %22 : vector<1x32xf32> to vector<16x32xf32>
    %24 = arith.addf %21, %23 : vector<16x32xf32>
    %c0_9 = arith.constant 0 : index
    %c0_10 = arith.constant 0 : index
    %25 = vector.load %arg4[%c0_9, %c0_10] : memref<32x32xf32, #tpu.memory_space<vmem>>, vector<32x32xf32>
    %cst_11 = arith.constant dense<0.000000e+00> : vector<16x32xf32>
    %26 = tpu.matmul %24, %25, %cst_11 {dimension_numbers = #tpu.dot_dimension_numbers<[1], [0], [0], [1], [0, 0, 1, 1], [], []>} : vector<16x32xf32>, vector<32x32xf32>, vector<16x32xf32> -> vector<16x32xf32>
    %c0_12 = arith.constant 0 : index
    %c0_13 = arith.constant 0 : index
    %27 = vector.load %arg5[%c0_12, %c0_13] : memref<1x32xf32, #tpu.memory_space<vmem>>, vector<1x32xf32>
    %28 = vector.broadcast %27 : vector<1x32xf32> to vector<16x32xf32>
    %29 = arith.addf %26, %28 : vector<16x32xf32>
    %c0_14 = arith.constant 0 : index
    %c0_15 = arith.constant 0 : index
    %30 = vector.load %arg6[%c0_14, %c0_15] : memref<16x32xf32, #tpu.memory_space<vmem>>, vector<16x32xf32>
    tpu.vector_store %arg6[%c0_14, %c0_15], %29 {strides = array<i32>} : memref<16x32xf32, #tpu.memory_space<vmem>>, vector<16x32xf32>,
    return
  }
  func.func @transform_0(%arg0: i32) -> (i32, i32) {
    %c0_i32 = arith.constant 0 : i32
    %c0_i32_0 = arith.constant 0 : i32
    return %arg0, %c0_i32 : i32, i32
  }
  func.func @transform_1(%arg0: i32) -> (i32, i32) {
    %c0_i32 = arith.constant 0 : i32
    %c0_i32_0 = arith.constant 0 : i32
    %c0_i32_1 = arith.constant 0 : i32
    return %c0_i32, %c0_i32_0 : i32, i32
  }
  func.func @transform_2(%arg0: i32) -> (i32, i32) {
    %c0_i32 = arith.constant 0 : i32
    %c0_i32_0 = arith.constant 0 : i32
    %c0_i32_1 = arith.constant 0 : i32
    return %c0_i32, %c0_i32_0 : i32, i32
  }
  func.func @transform_3(%arg0: i32) -> (i32, i32) {
    %c0_i32 = arith.constant 0 : i32
    %c0_i32_0 = arith.constant 0 : i32
    %c0_i32_1 = arith.constant 0 : i32
    return %c0_i32, %c0_i32_0 : i32, i32
  }
  func.func @transform_4(%arg0: i32) -> (i32, i32) {
    %c0_i32 = arith.constant 0 : i32
    %c0_i32_0 = arith.constant 0 : i32
    %c0_i32_1 = arith.constant 0 : i32
    return %c0_i32, %c0_i32_0 : i32, i32
  }
  func.func @transform_5(%arg0: i32) -> (i32, i32) {
    %c0_i32 = arith.constant 0 : i32
    %c0_i32_0 = arith.constant 0 : i32
    return %arg0, %c0_i32 : i32, i32
  }
}

module attributes {stable_mosaic.version = 11 : i64} {
  func.func @_ln_linear_kernel(%arg0: i32, %arg1: memref<16x32xf32, #tpu.memory_space<vmem>>, %arg2: memref<1x32xf32, #tpu.memory_space<vmem>>, %arg3: memref<1x32xf32, #tpu.memory_space<vmem>>, %arg4: memref<32x96xf32, #tpu.memory_space<vmem>>, %arg5: memref<1x96xf32, #tpu.memory_space<vmem>>, %arg6: memref<16x96xf32, #tpu.memory_space<vmem>>) attributes {dimension_semantics = [#tpu.dimension_semantics<parallel>], iteration_bounds = array<i64: 1>, scalar_prefetch = 0 : i64, scratch_operands = 0 : i64, tpu.core_type = #tpu.core_type<tc>, window_params = [{transform_indices = @transform_0, window_bounds = array<i64: 16, 32>}, {pipeline_mode = #tpu.pipeline_mode<synchronous>, transform_indices = @transform_1, window_bounds = array<i64: 1, 32>}, {pipeline_mode = #tpu.pipeline_mode<synchronous>, transform_indices = @transform_2, window_bounds = array<i64: 1, 32>}, {pipeline_mode = #tpu.pipeline_mode<synchronous>, transform_indices = @transform_3, window_bounds = array<i64: 32, 96>}, {pipeline_mode = #tpu.pipeline_mode<synchronous>, transform_indices = @transform_4, window_bounds = array<i64: 1, 96>}, {transform_indices = @transform_5, window_bounds = array<i64: 16, 96>}]} {
    %c0 = arith.constant 0 : index
    %c0_0 = arith.constant 0 : index
    %0 = vector.load %arg1[%c0, %c0_0] : memref<16x32xf32, #tpu.memory_space<vmem>>, vector<16x32xf32>
    %cst = arith.constant dense<0.000000e+00> : vector<16xf32>
    %1 = vector.multi_reduction <add>, %0, %cst [1] : vector<16x32xf32> to vector<16xf32>
    %2 = vector.shape_cast %1 : vector<16xf32> to vector<16x1xf32>
    %cst_1 = arith.constant 3.200000e+01 : f32
    %3 = vector.broadcast %cst_1 : f32 to vector<16x1xf32>
    %4 = arith.divf %2, %3 : vector<16x1xf32>
    %5 = vector.broadcast %4 : vector<16x1xf32> to vector<16x32xf32>
    %6 = arith.subf %0, %5 : vector<16x32xf32>
    %7 = arith.mulf %6, %6 : vector<16x32xf32>
    %cst_2 = arith.constant dense<0.000000e+00> : vector<16xf32>
    %8 = vector.multi_reduction <add>, %7, %cst_2 [1] : vector<16x32xf32> to vector<16xf32>
    %9 = vector.shape_cast %8 : vector<16xf32> to vector<16x1xf32>
    %cst_3 = arith.constant 3.200000e+01 : f32
    %10 = vector.broadcast %cst_3 : f32 to vector<16x1xf32>
    %11 = arith.divf %9, %10 : vector<16x1xf32>
    %12 = vector.broadcast %4 : vector<16x1xf32> to vector<16x32xf32>
    %13 = arith.subf %0, %12 : vector<16x32xf32>
    %cst_4 = arith.constant 9.99999974E-6 : f32
    %14 = vector.broadcast %cst_4 : f32 to vector<16x1xf32>
    %15 = arith.addf %11, %14 : vector<16x1xf32>
    %16 = math.rsqrt %15 : vector<16x1xf32>
    %17 = vector.broadcast %16 : vector<16x1xf32> to vector<16x32xf32>
    %18 = arith.mulf %13, %17 : vector<16x32xf32>
    %c0_5 = arith.constant 0 : index
    %c0_6 = arith.constant 0 : index
    %19 = vector.load %arg2[%c0_5, %c0_6] : memref<1x32xf32, #tpu.memory_space<vmem>>, vector<1x32xf32>
    %20 = vector.broadcast %19 : vector<1x32xf32> to vector<16x32xf32>
    %21 = arith.mulf %18, %20 : vector<16x32xf32>
    %c0_7 = arith.constant 0 : index
    %c0_8 = arith.constant 0 : index
    %22 = vector.load %arg3[%c0_7, %c0_8] : memref<1x32xf32, #tpu.memory_space<vmem>>, vector<1x32xf32>
    %23 = vector.broadcast %22 : vector<1x32xf32> to vector<16x32xf32>
    %24 = arith.addf %21, %23 : vector<16x32xf32>
    %c0_9 = arith.constant 0 : index
    %c0_10 = arith.constant 0 : index
    %25 = vector.load %arg4[%c0_9, %c0_10] : memref<32x96xf32, #tpu.memory_space<vmem>>, vector<32x96xf32>
    %cst_11 = arith.constant dense<0.000000e+00> : vector<16x96xf32>
    %26 = tpu.matmul %24, %25, %cst_11 {dimension_numbers = #tpu.dot_dimension_numbers<[1], [0], [0], [1], [0, 0, 1, 1], [], []>} : vector<16x32xf32>, vector<32x96xf32>, vector<16x96xf32> -> vector<16x96xf32>
    %c0_12 = arith.constant 0 : index
    %c0_13 = arith.constant 0 : index
    %27 = vector.load %arg5[%c0_12, %c0_13] : memref<1x96xf32, #tpu.memory_space<vmem>>, vector<1x96xf32>
    %28 = vector.broadcast %27 : vector<1x96xf32> to vector<16x96xf32>
    %29 = arith.addf %26, %28 : vector<16x96xf32>
    %c0_14 = arith.constant 0 : index
    %c0_15 = arith.constant 0 : index
    %30 = vector.load %arg6[%c0_14, %c0_15] : memref<16x96xf32, #tpu.memory_space<vmem>>, vector<16x96xf32>
    tpu.vector_store %arg6[%c0_14, %c0_15], %29 {strides = array<i32>} : memref<16x96xf32, #tpu.memory_space<vmem>>, vector<16x96xf32>,
    return
  }
  func.func @transform_0(%arg0: i32) -> (i32, i32) {
    %c0_i32 = arith.constant 0 : i32
    %c0_i32_0 = arith.constant 0 : i32
    return %arg0, %c0_i32 : i32, i32
  }
  func.func @transform_1(%arg0: i32) -> (i32, i32) {
    %c0_i32 = arith.constant 0 : i32
    %c0_i32_0 = arith.constant 0 : i32
    %c0_i32_1 = arith.constant 0 : i32
    return %c0_i32, %c0_i32_0 : i32, i32
  }
  func.func @transform_2(%arg0: i32) -> (i32, i32) {
    %c0_i32 = arith.constant 0 : i32
    %c0_i32_0 = arith.constant 0 : i32
    %c0_i32_1 = arith.constant 0 : i32
    return %c0_i32, %c0_i32_0 : i32, i32
  }
  func.func @transform_3(%arg0: i32) -> (i32, i32) {
    %c0_i32 = arith.constant 0 : i32
    %c0_i32_0 = arith.constant 0 : i32
    %c0_i32_1 = arith.constant 0 : i32
    return %c0_i32, %c0_i32_0 : i32, i32
  }
  func.func @transform_4(%arg0: i32) -> (i32, i32) {
    %c0_i32 = arith.constant 0 : i32
    %c0_i32_0 = arith.constant 0 : i32
    %c0_i32_1 = arith.constant 0 : i32
    return %c0_i32, %c0_i32_0 : i32, i32
  }
  func.func @transform_5(%arg0: i32) -> (i32, i32) {
    %c0_i32 = arith.constant 0 : i32
    %c0_i32_0 = arith.constant 0 : i32
    return %arg0, %c0_i32 : i32, i32
  }
}

module attributes {stable_mosaic.version = 11 : i64} {
  func.func @_ln_ff_res_kernel(%arg0: i32, %arg1: memref<16x32xf32, #tpu.memory_space<vmem>>, %arg2: memref<1x32xf32, #tpu.memory_space<vmem>>, %arg3: memref<1x32xf32, #tpu.memory_space<vmem>>, %arg4: memref<32x128xf32, #tpu.memory_space<vmem>>, %arg5: memref<1x128xf32, #tpu.memory_space<vmem>>, %arg6: memref<128x32xf32, #tpu.memory_space<vmem>>, %arg7: memref<1x32xf32, #tpu.memory_space<vmem>>, %arg8: memref<16x32xf32, #tpu.memory_space<vmem>>) attributes {dimension_semantics = [#tpu.dimension_semantics<parallel>], iteration_bounds = array<i64: 1>, scalar_prefetch = 0 : i64, scratch_operands = 0 : i64, tpu.core_type = #tpu.core_type<tc>, window_params = [{transform_indices = @transform_0, window_bounds = array<i64: 16, 32>}, {pipeline_mode = #tpu.pipeline_mode<synchronous>, transform_indices = @transform_1, window_bounds = array<i64: 1, 32>}, {pipeline_mode = #tpu.pipeline_mode<synchronous>, transform_indices = @transform_2, window_bounds = array<i64: 1, 32>}, {pipeline_mode = #tpu.pipeline_mode<synchronous>, transform_indices = @transform_3, window_bounds = array<i64: 32, 128>}, {pipeline_mode = #tpu.pipeline_mode<synchronous>, transform_indices = @transform_4, window_bounds = array<i64: 1, 128>}, {pipeline_mode = #tpu.pipeline_mode<synchronous>, transform_indices = @transform_5, window_bounds = array<i64: 128, 32>}, {pipeline_mode = #tpu.pipeline_mode<synchronous>, transform_indices = @transform_6, window_bounds = array<i64: 1, 32>}, {transform_indices = @transform_7, window_bounds = array<i64: 16, 32>}]} {
    %c0 = arith.constant 0 : index
    %c0_0 = arith.constant 0 : index
    %0 = vector.load %arg1[%c0, %c0_0] : memref<16x32xf32, #tpu.memory_space<vmem>>, vector<16x32xf32>
    %cst = arith.constant dense<0.000000e+00> : vector<16xf32>
    %1 = vector.multi_reduction <add>, %0, %cst [1] : vector<16x32xf32> to vector<16xf32>
    %2 = vector.shape_cast %1 : vector<16xf32> to vector<16x1xf32>
    %cst_1 = arith.constant 3.200000e+01 : f32
    %3 = vector.broadcast %cst_1 : f32 to vector<16x1xf32>
    %4 = arith.divf %2, %3 : vector<16x1xf32>
    %5 = vector.broadcast %4 : vector<16x1xf32> to vector<16x32xf32>
    %6 = arith.subf %0, %5 : vector<16x32xf32>
    %7 = arith.mulf %6, %6 : vector<16x32xf32>
    %cst_2 = arith.constant dense<0.000000e+00> : vector<16xf32>
    %8 = vector.multi_reduction <add>, %7, %cst_2 [1] : vector<16x32xf32> to vector<16xf32>
    %9 = vector.shape_cast %8 : vector<16xf32> to vector<16x1xf32>
    %cst_3 = arith.constant 3.200000e+01 : f32
    %10 = vector.broadcast %cst_3 : f32 to vector<16x1xf32>
    %11 = arith.divf %9, %10 : vector<16x1xf32>
    %12 = vector.broadcast %4 : vector<16x1xf32> to vector<16x32xf32>
    %13 = arith.subf %0, %12 : vector<16x32xf32>
    %cst_4 = arith.constant 9.99999974E-6 : f32
    %14 = vector.broadcast %cst_4 : f32 to vector<16x1xf32>
    %15 = arith.addf %11, %14 : vector<16x1xf32>
    %16 = math.rsqrt %15 : vector<16x1xf32>
    %17 = vector.broadcast %16 : vector<16x1xf32> to vector<16x32xf32>
    %18 = arith.mulf %13, %17 : vector<16x32xf32>
    %c0_5 = arith.constant 0 : index
    %c0_6 = arith.constant 0 : index
    %19 = vector.load %arg2[%c0_5, %c0_6] : memref<1x32xf32, #tpu.memory_space<vmem>>, vector<1x32xf32>
    %20 = vector.broadcast %19 : vector<1x32xf32> to vector<16x32xf32>
    %21 = arith.mulf %18, %20 : vector<16x32xf32>
    %c0_7 = arith.constant 0 : index
    %c0_8 = arith.constant 0 : index
    %22 = vector.load %arg3[%c0_7, %c0_8] : memref<1x32xf32, #tpu.memory_space<vmem>>, vector<1x32xf32>
    %23 = vector.broadcast %22 : vector<1x32xf32> to vector<16x32xf32>
    %24 = arith.addf %21, %23 : vector<16x32xf32>
    %c0_9 = arith.constant 0 : index
    %c0_10 = arith.constant 0 : index
    %25 = vector.load %arg4[%c0_9, %c0_10] : memref<32x128xf32, #tpu.memory_space<vmem>>, vector<32x128xf32>
    %cst_11 = arith.constant dense<0.000000e+00> : vector<16x128xf32>
    %26 = tpu.matmul %24, %25, %cst_11 {dimension_numbers = #tpu.dot_dimension_numbers<[1], [0], [0], [1], [0, 0, 1, 1], [], []>} : vector<16x32xf32>, vector<32x128xf32>, vector<16x128xf32> -> vector<16x128xf32>
    %c0_12 = arith.constant 0 : index
    %c0_13 = arith.constant 0 : index
    %27 = vector.load %arg5[%c0_12, %c0_13] : memref<1x128xf32, #tpu.memory_space<vmem>>, vector<1x128xf32>
    %28 = vector.broadcast %27 : vector<1x128xf32> to vector<16x128xf32>
    %29 = arith.addf %26, %28 : vector<16x128xf32>
    %cst_14 = arith.constant 0.000000e+00 : f32
    %30 = vector.broadcast %cst_14 : f32 to vector<16x128xf32>
    %31 = arith.maximumf %29, %30 : vector<16x128xf32>
    %c0_15 = arith.constant 0 : index
    %c0_16 = arith.constant 0 : index
    %32 = vector.load %arg6[%c0_15, %c0_16] : memref<128x32xf32, #tpu.memory_space<vmem>>, vector<128x32xf32>
    %cst_17 = arith.constant dense<0.000000e+00> : vector<16x32xf32>
    %33 = tpu.matmul %31, %32, %cst_17 {dimension_numbers = #tpu.dot_dimension_numbers<[1], [0], [0], [1], [0, 0, 1, 1], [], []>} : vector<16x128xf32>, vector<128x32xf32>, vector<16x32xf32> -> vector<16x32xf32>
    %c0_18 = arith.constant 0 : index
    %c0_19 = arith.constant 0 : index
    %34 = vector.load %arg7[%c0_18, %c0_19] : memref<1x32xf32, #tpu.memory_space<vmem>>, vector<1x32xf32>
    %35 = vector.broadcast %34 : vector<1x32xf32> to vector<16x32xf32>
    %36 = arith.addf %33, %35 : vector<16x32xf32>
    %37 = arith.addf %0, %36 : vector<16x32xf32>
    %c0_20 = arith.constant 0 : index
    %c0_21 = arith.constant 0 : index
    %38 = vector.load %arg8[%c0_20, %c0_21] : memref<16x32xf32, #tpu.memory_space<vmem>>, vector<16x32xf32>
    tpu.vector_store %arg8[%c0_20, %c0_21], %37 {strides = array<i32>} : memref<16x32xf32, #tpu.memory_space<vmem>>, vector<16x32xf32>,
    return
  }
  func.func @transform_0(%arg0: i32) -> (i32, i32) {
    %c0_i32 = arith.constant 0 : i32
    %c0_i32_0 = arith.constant 0 : i32
    return %arg0, %c0_i32 : i32, i32
  }
  func.func @transform_1(%arg0: i32) -> (i32, i32) {
    %c0_i32 = arith.constant 0 : i32
    %c0_i32_0 = arith.constant 0 : i32
    %c0_i32_1 = arith.constant 0 : i32
    return %c0_i32, %c0_i32_0 : i32, i32
  }
  func.func @transform_2(%arg0: i32) -> (i32, i32) {
    %c0_i32 = arith.constant 0 : i32
    %c0_i32_0 = arith.constant 0 : i32
    %c0_i32_1 = arith.constant 0 : i32
    return %c0_i32, %c0_i32_0 : i32, i32
  }
  func.func @transform_3(%arg0: i32) -> (i32, i32) {
    %c0_i32 = arith.constant 0 : i32
    %c0_i32_0 = arith.constant 0 : i32
    %c0_i32_1 = arith.constant 0 : i32
    return %c0_i32, %c0_i32_0 : i32, i32
  }
  func.func @transform_4(%arg0: i32) -> (i32, i32) {
    %c0_i32 = arith.constant 0 : i32
    %c0_i32_0 = arith.constant 0 : i32
    %c0_i32_1 = arith.constant 0 : i32
    return %c0_i32, %c0_i32_0 : i32, i32
  }
  func.func @transform_5(%arg0: i32) -> (i32, i32) {
    %c0_i32 = arith.constant 0 : i32
    %c0_i32_0 = arith.constant 0 : i32
    %c0_i32_1 = arith.constant 0 : i32
    return %c0_i32, %c0_i32_0 : i32, i32
  }
  func.func @transform_6(%arg0: i32) -> (i32, i32) {
    %c0_i32 = arith.constant 0 : i32
    %c0_i32_0 = arith.constant 0 : i32
    %c0_i32_1 = arith.constant 0 : i32
    return %c0_i32, %c0_i32_0 : i32, i32
  }
  func.func @transform_7(%arg0: i32) -> (i32, i32) {
    %c0_i32 = arith.constant 0 : i32
    %c0_i32_0 = arith.constant 0 : i32
    return %arg0, %c0_i32 : i32, i32
  }
}

module attributes {stable_mosaic.version = 11 : i64} {
  func.func @_cross_attn_kernel(%arg0: i32, %arg1: memref<1x8x32xf32, #tpu.memory_space<vmem>>, %arg2: memref<1x8x64xf32, #tpu.memory_space<vmem>>, %arg3: memref<1x8x8xf32, #tpu.memory_space<vmem>>, %arg4: memref<32x32xf32, #tpu.memory_space<vmem>>, %arg5: memref<1x32xf32, #tpu.memory_space<vmem>>, %arg6: memref<1x8x32xf32, #tpu.memory_space<vmem>>, %arg7: memref<1x8x32xf32, #tpu.memory_space<vmem>>, %arg8: memref<1x4x8x8xf32, #tpu.memory_space<vmem>>) attributes {dimension_semantics = [#tpu.dimension_semantics<parallel>], iteration_bounds = array<i64: 2>, scalar_prefetch = 0 : i64, scratch_operands = 0 : i64, tpu.core_type = #tpu.core_type<tc>, window_params = [{transform_indices = @transform_0, window_bounds = array<i64: 1, 8, 32>}, {transform_indices = @transform_1, window_bounds = array<i64: 1, 8, 64>}, {transform_indices = @transform_2, window_bounds = array<i64: 1, 8, 8>}, {pipeline_mode = #tpu.pipeline_mode<synchronous>, transform_indices = @transform_3, window_bounds = array<i64: 32, 32>}, {pipeline_mode = #tpu.pipeline_mode<synchronous>, transform_indices = @transform_4, window_bounds = array<i64: 1, 32>}, {transform_indices = @transform_5, window_bounds = array<i64: 1, 8, 32>}, {transform_indices = @transform_6, window_bounds = array<i64: 1, 8, 32>}, {transform_indices = @transform_7, window_bounds = array<i64: 1, 4, 8, 8>}]} {
    %c0 = arith.constant 0 : index
    %c0_0 = arith.constant 0 : index
    %c0_1 = arith.constant 0 : index
    %0 = vector.load %arg1[%c0, %c0_0, %c0_1] : memref<1x8x32xf32, #tpu.memory_space<vmem>>, vector<1x8x32xf32>
    %1 = vector.shape_cast %0 : vector<1x8x32xf32> to vector<8x32xf32>
    %c0_2 = arith.constant 0 : index
    %c0_3 = arith.constant 0 : index
    %c0_4 = arith.constant 0 : index
    %2 = vector.load %arg2[%c0_2, %c0_3, %c0_4] : memref<1x8x64xf32, #tpu.memory_space<vmem>>, vector<1x8x64xf32>
    %3 = vector.shape_cast %2 : vector<1x8x64xf32> to vector<8x64xf32>
    %c0_5 = arith.constant 0 : index
    %c0_6 = arith.constant 0 : index
    %c0_7 = arith.constant 0 : index
    %4 = vector.load %arg3[%c0_5, %c0_6, %c0_7] : memref<1x8x8xf32, #tpu.memory_space<vmem>>, vector<1x8x8xf32>
    %5 = vector.shape_cast %4 : vector<1x8x8xf32> to vector<8x8xf32>
    %cst = arith.constant 0.000000e+00 : f32
    %6 = vector.broadcast %cst : f32 to vector<8x8xf32>
    %7 = arith.cmpf ogt, %5, %6 : vector<8x8xf32>
    %c0_8 = arith.constant 0 : index
    %c0_9 = arith.constant 0 : index
    %8 = vector.load %arg4[%c0_8, %c0_9] : memref<32x32xf32, #tpu.memory_space<vmem>>, vector<32x32xf32>
    %c0_10 = arith.constant 0 : index
    %c0_11 = arith.constant 0 : index
    %c0_12 = arith.constant 0 : index
    %9 = vector.load %arg6[%c0_10, %c0_11, %c0_12] : memref<1x8x32xf32, #tpu.memory_space<vmem>>, vector<1x8x32xf32>
    %10 = vector.shape_cast %9 : vector<1x8x32xf32> to vector<8x32xf32>
    %c0_13 = arith.constant 0 : index
    %c0_14 = arith.constant 0 : index
    %11 = vector.load %arg5[%c0_13, %c0_14] : memref<1x32xf32, #tpu.memory_space<vmem>>, vector<1x32xf32>
    %12 = vector.broadcast %11 : vector<1x32xf32> to vector<8x32xf32>
    %13 = arith.addf %10, %12 : vector<8x32xf32>
    %14 = vector.extract_strided_slice %1 {offsets = [0, 0], sizes = [8, 8], strides = [1, 1]} : vector<8x32xf32> to vector<8x8xf32>
    %15 = vector.extract_strided_slice %3 {offsets = [0, 0], sizes = [8, 8], strides = [1, 1]} : vector<8x64xf32> to vector<8x8xf32>
    %16 = vector.extract_strided_slice %3 {offsets = [0, 32], sizes = [8, 8], strides = [1, 1]} : vector<8x64xf32> to vector<8x8xf32>
    %cst_15 = arith.constant dense<0.000000e+00> : vector<8x8xf32>
    %17 = tpu.matmul %14, %15, %cst_15 {dimension_numbers = #tpu.dot_dimension_numbers<[1], [1], [0], [0], [0, 0, 1, 0], [], []>} : vector<8x8xf32>, vector<8x8xf32>, vector<8x8xf32> -> vector<8x8xf32>
    %cst_16 = arith.constant -1.000000e+09 : f32
    %18 = vector.broadcast %cst_16 : f32 to vector<8x8xf32>
    %19 = arith.select %7, %17, %18 : vector<8x8xi1>, vector<8x8xf32>
    %cst_17 = arith.constant dense<0xFF800000> : vector<8xf32>
    %20 = vector.multi_reduction <maximumf>, %19, %cst_17 [1] : vector<8x8xf32> to vector<8xf32>
    %21 = vector.shape_cast %20 : vector<8xf32> to vector<8x1xf32>
    %22 = vector.broadcast %21 : vector<8x1xf32> to vector<8x8xf32>
    %23 = arith.subf %19, %22 : vector<8x8xf32>
    %24 = math.exp %23 : vector<8x8xf32>
    %cst_18 = arith.constant dense<0.000000e+00> : vector<8xf32>
    %25 = vector.multi_reduction <add>, %24, %cst_18 [1] : vector<8x8xf32> to vector<8xf32>
    %26 = vector.shape_cast %25 : vector<8xf32> to vector<8x1xf32>
    %27 = tpu.reciprocal %26 {approx = true} : vector<8x1xf32> -> vector<8x1xf32>
    %28 = vector.broadcast %27 : vector<8x1xf32> to vector<8x8xf32>
    %29 = arith.mulf %24, %28 : vector<8x8xf32>
    %c0_19 = arith.constant 0 : index
    %c0_20 = arith.constant 0 : index
    %c0_21 = arith.constant 0 : index
    %c0_22 = arith.constant 0 : index
    %30 = vector.load %arg8[%c0_19, %c0_20, %c0_21, %c0_22] : memref<1x4x8x8xf32, #tpu.memory_space<vmem>>, vector<1x1x8x8xf32>
    %31 = vector.shape_cast %30 : vector<1x1x8x8xf32> to vector<8x8xf32>
    %32 = vector.shape_cast %29 : vector<8x8xf32> to vector<1x1x8x8xf32>
    tpu.vector_store %arg8[%c0_19, %c0_20, %c0_21, %c0_22], %32 {strides = array<i32>} : memref<1x4x8x8xf32, #tpu.memory_space<vmem>>, vector<1x1x8x8xf32>,
    %cst_23 = arith.constant dense<0.000000e+00> : vector<8x8xf32>
    %33 = tpu.matmul %29, %16, %cst_23 {dimension_numbers = #tpu.dot_dimension_numbers<[1], [0], [0], [1], [0, 0, 1, 1], [], []>} : vector<8x8xf32>, vector<8x8xf32>, vector<8x8xf32> -> vector<8x8xf32>
    %34 = vector.extract_strided_slice %8 {offsets = [0, 0], sizes = [8, 32], strides = [1, 1]} : vector<32x32xf32> to vector<8x32xf32>
    %cst_24 = arith.constant dense<0.000000e+00> : vector<8x32xf32>
    %35 = tpu.matmul %33, %34, %cst_24 {dimension_numbers = #tpu.dot_dimension_numbers<[1], [0], [0], [1], [0, 0, 1, 1], [], []>} : vector<8x8xf32>, vector<8x32xf32>, vector<8x32xf32> -> vector<8x32xf32>
    %36 = arith.addf %13, %35 : vector<8x32xf32>
    %37 = vector.extract_strided_slice %1 {offsets = [0, 8], sizes = [8, 8], strides = [1, 1]} : vector<8x32xf32> to vector<8x8xf32>
    %38 = vector.extract_strided_slice %3 {offsets = [0, 8], sizes = [8, 8], strides = [1, 1]} : vector<8x64xf32> to vector<8x8xf32>
    %39 = vector.extract_strided_slice %3 {offsets = [0, 40], sizes = [8, 8], strides = [1, 1]} : vector<8x64xf32> to vector<8x8xf32>
    %cst_25 = arith.constant dense<0.000000e+00> : vector<8x8xf32>
    %40 = tpu.matmul %37, %38, %cst_25 {dimension_numbers = #tpu.dot_dimension_numbers<[1], [1], [0], [0], [0, 0, 1, 0], [], []>} : vector<8x8xf32>, vector<8x8xf32>, vector<8x8xf32> -> vector<8x8xf32>
    %cst_26 = arith.constant -1.000000e+09 : f32
    %41 = vector.broadcast %cst_26 : f32 to vector<8x8xf32>
    %42 = arith.select %7, %40, %41 : vector<8x8xi1>, vector<8x8xf32>
    %cst_27 = arith.constant dense<0xFF800000> : vector<8xf32>
    %43 = vector.multi_reduction <maximumf>, %42, %cst_27 [1] : vector<8x8xf32> to vector<8xf32>
    %44 = vector.shape_cast %43 : vector<8xf32> to vector<8x1xf32>
    %45 = vector.broadcast %44 : vector<8x1xf32> to vector<8x8xf32>
    %46 = arith.subf %42, %45 : vector<8x8xf32>
    %47 = math.exp %46 : vector<8x8xf32>
    %cst_28 = arith.constant dense<0.000000e+00> : vector<8xf32>
    %48 = vector.multi_reduction <add>, %47, %cst_28 [1] : vector<8x8xf32> to vector<8xf32>
    %49 = vector.shape_cast %48 : vector<8xf32> to vector<8x1xf32>
    %50 = tpu.reciprocal %49 {approx = true} : vector<8x1xf32> -> vector<8x1xf32>
    %51 = vector.broadcast %50 : vector<8x1xf32> to vector<8x8xf32>
    %52 = arith.mulf %47, %51 : vector<8x8xf32>
    %c0_29 = arith.constant 0 : index
    %c1 = arith.constant 1 : index
    %c0_30 = arith.constant 0 : index
    %c0_31 = arith.constant 0 : index
    %53 = vector.load %arg8[%c0_29, %c1, %c0_30, %c0_31] : memref<1x4x8x8xf32, #tpu.memory_space<vmem>>, vector<1x1x8x8xf32>
    %54 = vector.shape_cast %53 : vector<1x1x8x8xf32> to vector<8x8xf32>
    %55 = vector.shape_cast %52 : vector<8x8xf32> to vector<1x1x8x8xf32>
    tpu.vector_store %arg8[%c0_29, %c1, %c0_30, %c0_31], %55 {strides = array<i32>} : memref<1x4x8x8xf32, #tpu.memory_space<vmem>>, vector<1x1x8x8xf32>,
    %cst_32 = arith.constant dense<0.000000e+00> : vector<8x8xf32>
    %56 = tpu.matmul %52, %39, %cst_32 {dimension_numbers = #tpu.dot_dimension_numbers<[1], [0], [0], [1], [0, 0, 1, 1], [], []>} : vector<8x8xf32>, vector<8x8xf32>, vector<8x8xf32> -> vector<8x8xf32>
    %57 = vector.extract_strided_slice %8 {offsets = [8, 0], sizes = [8, 32], strides = [1, 1]} : vector<32x32xf32> to vector<8x32xf32>
    %cst_33 = arith.constant dense<0.000000e+00> : vector<8x32xf32>
    %58 = tpu.matmul %56, %57, %cst_33 {dimension_numbers = #tpu.dot_dimension_numbers<[1], [0], [0], [1], [0, 0, 1, 1], [], []>} : vector<8x8xf32>, vector<8x32xf32>, vector<8x32xf32> -> vector<8x32xf32>
    %59 = arith.addf %36, %58 : vector<8x32xf32>
    %60 = vector.extract_strided_slice %1 {offsets = [0, 16], sizes = [8, 8], strides = [1, 1]} : vector<8x32xf32> to vector<8x8xf32>
    %61 = vector.extract_strided_slice %3 {offsets = [0, 16], sizes = [8, 8], strides = [1, 1]} : vector<8x64xf32> to vector<8x8xf32>
    %62 = vector.extract_strided_slice %3 {offsets = [0, 48], sizes = [8, 8], strides = [1, 1]} : vector<8x64xf32> to vector<8x8xf32>
    %cst_34 = arith.constant dense<0.000000e+00> : vector<8x8xf32>
    %63 = tpu.matmul %60, %61, %cst_34 {dimension_numbers = #tpu.dot_dimension_numbers<[1], [1], [0], [0], [0, 0, 1, 0], [], []>} : vector<8x8xf32>, vector<8x8xf32>, vector<8x8xf32> -> vector<8x8xf32>
    %cst_35 = arith.constant -1.000000e+09 : f32
    %64 = vector.broadcast %cst_35 : f32 to vector<8x8xf32>
    %65 = arith.select %7, %63, %64 : vector<8x8xi1>, vector<8x8xf32>
    %cst_36 = arith.constant dense<0xFF800000> : vector<8xf32>
    %66 = vector.multi_reduction <maximumf>, %65, %cst_36 [1] : vector<8x8xf32> to vector<8xf32>
    %67 = vector.shape_cast %66 : vector<8xf32> to vector<8x1xf32>
    %68 = vector.broadcast %67 : vector<8x1xf32> to vector<8x8xf32>
    %69 = arith.subf %65, %68 : vector<8x8xf32>
    %70 = math.exp %69 : vector<8x8xf32>
    %cst_37 = arith.constant dense<0.000000e+00> : vector<8xf32>
    %71 = vector.multi_reduction <add>, %70, %cst_37 [1] : vector<8x8xf32> to vector<8xf32>
    %72 = vector.shape_cast %71 : vector<8xf32> to vector<8x1xf32>
    %73 = tpu.reciprocal %72 {approx = true} : vector<8x1xf32> -> vector<8x1xf32>
    %74 = vector.broadcast %73 : vector<8x1xf32> to vector<8x8xf32>
    %75 = arith.mulf %70, %74 : vector<8x8xf32>
    %c0_38 = arith.constant 0 : index
    %c2 = arith.constant 2 : index
    %c0_39 = arith.constant 0 : index
    %c0_40 = arith.constant 0 : index
    %76 = vector.load %arg8[%c0_38, %c2, %c0_39, %c0_40] : memref<1x4x8x8xf32, #tpu.memory_space<vmem>>, vector<1x1x8x8xf32>
    %77 = vector.shape_cast %76 : vector<1x1x8x8xf32> to vector<8x8xf32>
    %78 = vector.shape_cast %75 : vector<8x8xf32> to vector<1x1x8x8xf32>
    tpu.vector_store %arg8[%c0_38, %c2, %c0_39, %c0_40], %78 {strides = array<i32>} : memref<1x4x8x8xf32, #tpu.memory_space<vmem>>, vector<1x1x8x8xf32>,
    %cst_41 = arith.constant dense<0.000000e+00> : vector<8x8xf32>
    %79 = tpu.matmul %75, %62, %cst_41 {dimension_numbers = #tpu.dot_dimension_numbers<[1], [0], [0], [1], [0, 0, 1, 1], [], []>} : vector<8x8xf32>, vector<8x8xf32>, vector<8x8xf32> -> vector<8x8xf32>
    %80 = vector.extract_strided_slice %8 {offsets = [16, 0], sizes = [8, 32], strides = [1, 1]} : vector<32x32xf32> to vector<8x32xf32>
    %cst_42 = arith.constant dense<0.000000e+00> : vector<8x32xf32>
    %81 = tpu.matmul %79, %80, %cst_42 {dimension_numbers = #tpu.dot_dimension_numbers<[1], [0], [0], [1], [0, 0, 1, 1], [], []>} : vector<8x8xf32>, vector<8x32xf32>, vector<8x32xf32> -> vector<8x32xf32>
    %82 = arith.addf %59, %81 : vector<8x32xf32>
    %83 = vector.extract_strided_slice %1 {offsets = [0, 24], sizes = [8, 8], strides = [1, 1]} : vector<8x32xf32> to vector<8x8xf32>
    %84 = vector.extract_strided_slice %3 {offsets = [0, 24], sizes = [8, 8], strides = [1, 1]} : vector<8x64xf32> to vector<8x8xf32>
    %85 = vector.extract_strided_slice %3 {offsets = [0, 56], sizes = [8, 8], strides = [1, 1]} : vector<8x64xf32> to vector<8x8xf32>
    %cst_43 = arith.constant dense<0.000000e+00> : vector<8x8xf32>
    %86 = tpu.matmul %83, %84, %cst_43 {dimension_numbers = #tpu.dot_dimension_numbers<[1], [1], [0], [0], [0, 0, 1, 0], [], []>} : vector<8x8xf32>, vector<8x8xf32>, vector<8x8xf32> -> vector<8x8xf32>
    %cst_44 = arith.constant -1.000000e+09 : f32
    %87 = vector.broadcast %cst_44 : f32 to vector<8x8xf32>
    %88 = arith.select %7, %86, %87 : vector<8x8xi1>, vector<8x8xf32>
    %cst_45 = arith.constant dense<0xFF800000> : vector<8xf32>
    %89 = vector.multi_reduction <maximumf>, %88, %cst_45 [1] : vector<8x8xf32> to vector<8xf32>
    %90 = vector.shape_cast %89 : vector<8xf32> to vector<8x1xf32>
    %91 = vector.broadcast %90 : vector<8x1xf32> to vector<8x8xf32>
    %92 = arith.subf %88, %91 : vector<8x8xf32>
    %93 = math.exp %92 : vector<8x8xf32>
    %cst_46 = arith.constant dense<0.000000e+00> : vector<8xf32>
    %94 = vector.multi_reduction <add>, %93, %cst_46 [1] : vector<8x8xf32> to vector<8xf32>
    %95 = vector.shape_cast %94 : vector<8xf32> to vector<8x1xf32>
    %96 = tpu.reciprocal %95 {approx = true} : vector<8x1xf32> -> vector<8x1xf32>
    %97 = vector.broadcast %96 : vector<8x1xf32> to vector<8x8xf32>
    %98 = arith.mulf %93, %97 : vector<8x8xf32>
    %c0_47 = arith.constant 0 : index
    %c3 = arith.constant 3 : index
    %c0_48 = arith.constant 0 : index
    %c0_49 = arith.constant 0 : index
    %99 = vector.load %arg8[%c0_47, %c3, %c0_48, %c0_49] : memref<1x4x8x8xf32, #tpu.memory_space<vmem>>, vector<1x1x8x8xf32>
    %100 = vector.shape_cast %99 : vector<1x1x8x8xf32> to vector<8x8xf32>
    %101 = vector.shape_cast %98 : vector<8x8xf32> to vector<1x1x8x8xf32>
    tpu.vector_store %arg8[%c0_47, %c3, %c0_48, %c0_49], %101 {strides = array<i32>} : memref<1x4x8x8xf32, #tpu.memory_space<vmem>>, vector<1x1x8x8xf32>,
    %cst_50 = arith.constant dense<0.000000e+00> : vector<8x8xf32>
    %102 = tpu.matmul %98, %85, %cst_50 {dimension_numbers = #tpu.dot_dimension_numbers<[1], [0], [0], [1], [0, 0, 1, 1], [], []>} : vector<8x8xf32>, vector<8x8xf32>, vector<8x8xf32> -> vector<8x8xf32>
    %103 = vector.extract_strided_slice %8 {offsets = [24, 0], sizes = [8, 32], strides = [1, 1]} : vector<32x32xf32> to vector<8x32xf32>
    %cst_51 = arith.constant dense<0.000000e+00> : vector<8x32xf32>
    %104 = tpu.matmul %102, %103, %cst_51 {dimension_numbers = #tpu.dot_dimension_numbers<[1], [0], [0], [1], [0, 0, 1, 1], [], []>} : vector<8x8xf32>, vector<8x32xf32>, vector<8x32xf32> -> vector<8x32xf32>
    %105 = arith.addf %82, %104 : vector<8x32xf32>
    %c0_52 = arith.constant 0 : index
    %c0_53 = arith.constant 0 : index
    %c0_54 = arith.constant 0 : index
    %106 = vector.load %arg7[%c0_52, %c0_53, %c0_54] : memref<1x8x32xf32, #tpu.memory_space<vmem>>, vector<1x8x32xf32>
    %107 = vector.shape_cast %106 : vector<1x8x32xf32> to vector<8x32xf32>
    %108 = vector.shape_cast %105 : vector<8x32xf32> to vector<1x8x32xf32>
    tpu.vector_store %arg7[%c0_52, %c0_53, %c0_54], %108 {strides = array<i32>} : memref<1x8x32xf32, #tpu.memory_space<vmem>>, vector<1x8x32xf32>,
    return
  }
  func.func @transform_0(%arg0: i32) -> (i32, i32, i32) {
    %c0_i32 = arith.constant 0 : i32
    %c0_i32_0 = arith.constant 0 : i32
    %c0_i32_1 = arith.constant 0 : i32
    return %arg0, %c0_i32, %c0_i32_0 : i32, i32, i32
  }
  func.func @transform_1(%arg0: i32) -> (i32, i32, i32) {
    %c0_i32 = arith.constant 0 : i32
    %c0_i32_0 = arith.constant 0 : i32
    %c0_i32_1 = arith.constant 0 : i32
    return %arg0, %c0_i32, %c0_i32_0 : i32, i32, i32
  }
  func.func @transform_2(%arg0: i32) -> (i32, i32, i32) {
    %c0_i32 = arith.constant 0 : i32
    %c0_i32_0 = arith.constant 0 : i32
    %c0_i32_1 = arith.constant 0 : i32
    return %arg0, %c0_i32, %c0_i32_0 : i32, i32, i32
  }
  func.func @transform_3(%arg0: i32) -> (i32, i32) {
    %c0_i32 = arith.constant 0 : i32
    %c0_i32_0 = arith.constant 0 : i32
    %c0_i32_1 = arith.constant 0 : i32
    return %c0_i32, %c0_i32_0 : i32, i32
  }
  func.func @transform_4(%arg0: i32) -> (i32, i32) {
    %c0_i32 = arith.constant 0 : i32
    %c0_i32_0 = arith.constant 0 : i32
    %c0_i32_1 = arith.constant 0 : i32
    return %c0_i32, %c0_i32_0 : i32, i32
  }
  func.func @transform_5(%arg0: i32) -> (i32, i32, i32) {
    %c0_i32 = arith.constant 0 : i32
    %c0_i32_0 = arith.constant 0 : i32
    %c0_i32_1 = arith.constant 0 : i32
    return %arg0, %c0_i32, %c0_i32_0 : i32, i32, i32
  }
  func.func @transform_6(%arg0: i32) -> (i32, i32, i32) {
    %c0_i32 = arith.constant 0 : i32
    %c0_i32_0 = arith.constant 0 : i32
    %c0_i32_1 = arith.constant 0 : i32
    return %arg0, %c0_i32, %c0_i32_0 : i32, i32, i32
  }
  func.func @transform_7(%arg0: i32) -> (i32, i32, i32, i32) {
    %c0_i32 = arith.constant 0 : i32
    %c0_i32_0 = arith.constant 0 : i32
    %c0_i32_1 = arith.constant 0 : i32
    %c0_i32_2 = arith.constant 0 : i32
    return %arg0, %c0_i32, %c0_i32_0, %c0_i32_1 : i32, i32, i32, i32
  }
}

</mosaic_0001>

<bundles_post_ra>
// kernel: decoder_layer.8
= control target key start
LH: loop header
LB: loop body
LE: loop exit
PB: predicated region body
PF: predicated region fallthrough
CT: control target
= control target key end

     0   :  { %10 = vsyncpa [#allocation3], 0  ;;  %s553_s0 = inlined_call_operand.hbm [shape: f32[16,32], index: 0, kind: input, shape index: {}]   ;;  %s554_s1 = inlined_call_operand.hbm [shape: f32[1,32], index: 1, kind: input, shape index: {}]   ;;  %s555_s2 = inlined_call_operand.hbm [shape: f32[1,32], index: 2, kind: input, shape index: {}]   ;;  %s556_s3 = inlined_call_operand.hbm [shape: f32[32,32], index: 3, kind: input, shape index: {}]   ;;  %s557_s4 = inlined_call_operand.hbm [shape: f32[1,32], index: 4, kind: input, shape index: {}]   ;;  %s558_s5 = inlined_call_operand.hbm [shape: f32[16,32], index: 5, kind: output, shape index: {}]  }
   0x1   :  { %11 = vsyncpa [#allocation6], 0 }
   0x2   :  { %12 = vsyncpa [#allocation9], 0 }
   0x3   :  { %13 = vsyncpa [#allocation4], 0  ;;  %s426_s18 = smov [#allocation5]   ;;  %s286_s22 = scalar_lea.hbm %s554_s1, 16 }
   0x4   :  { %s32_s19 = sshll.u32 %s426_s18, 4  ;;  %p287_p0 = scmp.ne.s32.totalorder %s554_s1, %s286_s22  ;;  %s33_s19 = int_to_ptr.vmem [resolvable:$true] %s32_s19 }
   0x5   :  { %p290_p1 = scmp.lt.u32.totalorder %s286_s22, %s554_s1 }
   0x7   :  { %p292_p2 = pnand %p290_p1, %p287_p0 }
   0x9   :  { %295 = shalt.err (!%p292_p2)
}
   0xa   :  { %s296_s27 = scalar_lea.vmem %s33_s19, 16  ;;  %s300_s28 = scalar_lea.vmem %s33_s19, 32 }
   0xb   :  { %p297_p3 = scmp.ne.s32.totalorder %s33_s19, %s296_s27  ;;  %p301_p4 = scmp.lt.s32.totalorder %s33_s19, %s33_s19 }
   0xc   :  { %p302_p5 = scmp.lt.s32.totalorder %s300_s28, %s296_s27 }
   0xe   :  { %p303_p6 = por %p302_p5, %p301_p4 }
  0x10   :  { %p304_p7 = pnand %p303_p6, %p297_p3 }
  0x12   :  { %307 = shalt.err (!%p304_p7)
}
  0x13   :  { %35 = dma.hbm_to_vmem [thread:$0]  %s554_s1, 16, %s33_s19, [#allocation6]  }
  0x14   :  { %s427_s6 = smov [#allocation8]   ;;  %s428_s8 = smov [#allocation2]  }
  0x15   :  { %s51_s7 = sshll.u32 %s427_s6, 4  ;;  %s19_s9 = sshll.u32 %s428_s8, 4  ;;  %s52_s7 = int_to_ptr.vmem [resolvable:$true] %s51_s7  ;;  %s20_s9 = int_to_ptr.vmem [resolvable:$true] %s19_s9 }
  0x16   :  { %s308_s12 = scalar_lea.hbm %s556_s3, 512 }
  0x17   :  { %p309_p8 = scmp.ne.s32.totalorder %s556_s3, %s308_s12  ;;  %p312_p9 = scmp.lt.u32.totalorder %s308_s12, %s556_s3 }
  0x19   :  { %p314_p10 = pnand %p312_p9, %p309_p8 }
  0x1b   :  { %317 = shalt.err (!%p314_p10)
}
  0x1c   :  { %s318_s1 = scalar_lea.vmem %s52_s7, 512  ;;  %p323_p12 = scmp.lt.s32.totalorder %s52_s7, %s52_s7 }
  0x1d   :  { %p319_p11 = scmp.ne.s32.totalorder %s52_s7, %s318_s1  ;;  %p324_p13 = scmp.lt.s32.totalorder %s318_s1, %s318_s1 }
  0x1f   :  { %p325_p0 = por %p324_p13, %p323_p12 }
  0x21   :  { %p326_p1 = pnand %p325_p0, %p319_p11 }
  0x23   :  { %329 = shalt.err (!%p326_p1)
}
  0x24   :  { %s429_s17 = smov 128   ;;  %s430_s18 = smov 8  }
  0x25   :  { %57 = dma.hbm_to_vmem [thread:$0]  %s556_s3, 512, %s52_s7, [#allocation9], %s429_s17, %s429_s17, %s430_s18  }
  0x26   :  { %s330_s23 = scalar_lea.hbm %s553_s0, 256 }
  0x27   :  { %p331_p2 = scmp.ne.s32.totalorder %s553_s0, %s330_s23  ;;  %p334_p3 = scmp.lt.u32.totalorder %s330_s23, %s553_s0 }
  0x29   :  { %p336_p4 = pnand %p334_p3, %p331_p2 }
  0x2b   :  { %339 = shalt.err (!%p336_p4)
}
  0x2c   :  { %s340_s28 = scalar_lea.vmem %s20_s9, 256  ;;  %p345_p6 = scmp.lt.s32.totalorder %s20_s9, %s20_s9 }
  0x2d   :  { %p341_p5 = scmp.ne.s32.totalorder %s20_s9, %s340_s28  ;;  %p346_p7 = scmp.lt.s32.totalorder %s340_s28, %s340_s28 }
  0x2f   :  { %p347_p8 = por %p346_p7, %p345_p6 }
  0x31   :  { %p348_p9 = pnand %p347_p8, %p341_p5 }
  0x33   :  { %351 = shalt.err (!%p348_p9)
}
  0x34   :  { %25 = dma.hbm_to_vmem [thread:$0]  %s553_s0, 256, %s20_s9, [#allocation3], %s429_s17, %s429_s17, %s430_s18  }
  0x35   :  { %s431_s30 = smov [#allocation7]   ;;  %s432_s7 = smov [#allocation10]  }
  0x36   :  { %s42_s6 = sshll.u32 %s431_s30, 4  ;;  %s64_s8 = sshll.u32 %s432_s7, 4  ;;  %s43_s6 = int_to_ptr.vmem [resolvable:$true] %s42_s6  ;;  %s65_s8 = int_to_ptr.vmem [resolvable:$true] %s64_s8 }
  0x37   :  { %s352_s12 = scalar_lea.hbm %s555_s2, 16 }
  0x38   :  { %p353_p10 = scmp.ne.s32.totalorder %s555_s2, %s352_s12  ;;  %p356_p11 = scmp.lt.u32.totalorder %s352_s12, %s555_s2 }
  0x3a   :  { %p358_p12 = pnand %p356_p11, %p353_p10 }
  0x3c   :  { %361 = shalt.err (!%p358_p12)
}
  0x3d   :  { %s362_s0 = scalar_lea.vmem %s43_s6, 16  ;;  %s366_s9 = scalar_lea.vmem %s43_s6, 32 }
  0x3e   :  { %p363_p13 = scmp.ne.s32.totalorder %s43_s6, %s362_s0  ;;  %p367_p0 = scmp.lt.s32.totalorder %s43_s6, %s43_s6 }
  0x3f   :  { %p368_p1 = scmp.lt.s32.totalorder %s366_s9, %s362_s0 }
  0x41   :  { %p369_p2 = por %p368_p1, %p367_p0 }
  0x43   :  { %p370_p3 = pnand %p369_p2, %p363_p13 }
  0x45   :  { %373 = shalt.err (!%p370_p3)
}
  0x46   :  { %45 = dma.hbm_to_vmem [thread:$0]  %s555_s2, 16, %s43_s6, [#allocation6]  }
  0x47   :  { %s374_s22 = scalar_lea.hbm %s557_s4, 16 }
  0x48   :  { %p375_p4 = scmp.ne.s32.totalorder %s557_s4, %s374_s22  ;;  %p378_p5 = scmp.lt.u32.totalorder %s374_s22, %s557_s4 }
  0x4a   :  { %p380_p6 = pnand %p378_p5, %p375_p4 }
  0x4c   :  { %383 = shalt.err (!%p380_p6)
}
  0x4d   :  { %s384_s27 = scalar_lea.vmem %s65_s8, 16  ;;  %s388_s28 = scalar_lea.vmem %s65_s8, 32 }
  0x4e   :  { %p385_p7 = scmp.ne.s32.totalorder %s65_s8, %s384_s27  ;;  %p389_p8 = scmp.lt.s32.totalorder %s65_s8, %s65_s8 }
  0x4f   :  { %p390_p9 = scmp.lt.s32.totalorder %s388_s28, %s384_s27 }
  0x51   :  { %p391_p10 = por %p390_p9, %p389_p8 }
  0x53   :  { %p392_p11 = pnand %p391_p10, %p385_p7 }
  0x55   :  { %395 = shalt.err (!%p392_p11)
}
  0x56   :  { %67 = dma.hbm_to_vmem [thread:$0]  %s557_s4, 16, %s65_s8, [#allocation9]  }
  0x57   :  { %418 = dma.done.wait [#allocation3], 256  }
  0x58   :  { %419 = vsyncadd [#allocation3], 4294967040 }
  0x59   :  { %420 = dma.done.wait [#allocation6], 32  }
  0x5a   :  { %421 = vsyncadd [#allocation6], 4294967264 }
  0x5b   :  { %422 = dma.done.wait [#allocation9], 528  }
  0x5c   :  { %423 = vsyncadd [#allocation9], 4294966768  ;;  %vm85_vm0 = vcmask 261120   ;;  %v83_v0 = vld [vmem:[#allocation2] sm:$0xff]  ;;  %v84_v1 = vld [vmem:[#allocation2 + $0x8] sm:$0xff]  ;;  %s433_s4 = smov [#allocation11]  }
  0x5d   :  { %v86_v2 = vsel %vm85_vm0, %v83_v0, 0.0  ;;  %v89_v3 = vsel %vm85_vm0, %v84_v1, 0.0  ;;  %v131_v14 = vld [vmem:[#allocation8] sm:$0xff]  ;;  %v132_v15 = vld [vmem:[#allocation8 + $0x8] sm:$0xff]  ;;  %v133_v16 = vld [vmem:[#allocation8 + $0x10] sm:$0xff]  ;;  %s230_s29 = sshll.u32 %s433_s4, 4  ;;  %s231_s29 = int_to_ptr.vmem [resolvable:$true] %s230_s29 }
  0x5e   :  { %87 = vadd.xlane.f32.xlu0 %v86_v2  ;;  %v266_v17 = vpack.c.bf16 %v132_v15, %v131_v14  ;;  %v134_v18 = vld [vmem:[#allocation8 + $0x18] sm:$0xff]  ;;  %v246_v36 = vld [vmem:[#allocation10] ss:$0 sm:$0xff]  ;;  %s396_s30 = scalar_lea.vmem %s231_s29, 256  ;;  %p401_p13 = scmp.lt.s32.totalorder %s231_s29, %s231_s29 }
  0x5f   :  { %v270_v19 = vpack.c.bf16 %v134_v18, %v133_v16  ;;  %v244_v27 = vld [vmem:[#allocation5] ss:$0 sm:$0xff]  ;;  %v245_v29 = vld [vmem:[#allocation7] ss:$0 sm:$0xff]  ;;  %p397_p12 = scmp.ne.s32.totalorder %s231_s29, %s396_s30  ;;  %p402_p0 = scmp.lt.s32.totalorder %s396_s30, %s396_s30 }
  0x60   :  { %267 = vmatprep.subr.bf16.mxu0 %v266_v17 }
  0x61   :  { %269 = vmatpush3.bf16.msra.mxu0 %v266_v17  ;;  %p403_p1 = por %p402_p0, %p401_p13 }
  0x62   :  { %90 = vadd.xlane.f32.xlu0 %v89_v3  ;;  %271 = vmatprep.subr.bf16.mxu0 %v270_v19 }
  0x63   :  { %p404_p2 = pnand %p403_p1, %p397_p12 }
  0x65   :  { %273 = vmatpush3.bf16.msra.mxu0 %v270_v19 }
  0xeb   :  { %v88_v4 = vpop.xlane.xlu0 %87 }
  0xec   :  { %v93_v5 = vmul.f32 0.03125, %v88_v4 }
  0xee   :  { %v95_v6 = vsub.f32 %v83_v0, %v93_v5 }
  0xef   :  { %v91_v7 = vpop.xlane.xlu0 %90 }
  0xf0   :  { %v94_v8 = vmul.f32 0.03125, %v91_v7  ;;  %v97_v9 = vmul.f32 %v95_v6, %v95_v6 }
  0xf2   :  { %v96_v10 = vsub.f32 %v84_v1, %v94_v8  ;;  %v99_v11 = vsel %vm85_vm0, %v97_v9, 0.0 }
  0xf3   :  { %100 = vadd.xlane.f32.xlu1 %v99_v11 }
  0xf4   :  { %v98_v12 = vmul.f32 %v96_v10, %v96_v10 }
  0xf6   :  { %v102_v13 = vsel %vm85_vm0, %v98_v12, 0.0 }
  0xf7   :  { %103 = vadd.xlane.f32.xlu1 %v102_v13 }
 0x180   :  { %v101_v20 = vpop.xlane.xlu1 %100 }
 0x181   :  { %v105_v21 = vmul.f32 0.03125, %v101_v20 }
 0x183   :  { %v107_v22 = vadd.f32 1e-05, %v105_v21 }
 0x184   :  { %v104_v23 = vpop.xlane.xlu1 %103 }
 0x185   :  { %282 = vrsqrt.f32 %v107_v22  ;;  %v106_v24 = vmul.f32 0.03125, %v104_v23 }
 0x187   :  { %v108_v25 = vadd.f32 1e-05, %v106_v24 }
 0x189   :  { %284 = vrsqrt.f32 %v108_v25 }
 0x18f   :  { %v283_v26 = vpop.eup %282 }
 0x190   :  { %v111_v28 = vmul.f32 %v283_v26, %v95_v6 }
 0x192   :  { %v120_v30 = vmul.f32 %v244_v27, %v111_v28 }
 0x193   :  { %v285_v31 = vpop.eup %284 }
 0x194   :  { %v112_v32 = vmul.f32 %v285_v31, %v96_v10  ;;  %v129_v33 = vadd.f32 %v245_v29, %v120_v30 }
 0x196   :  { %v121_v34 = vmul.f32 %v244_v27, %v112_v32  ;;  %263 = vmatprep.mubr.msk.f32.mxu0 %vm85_vm0, %v129_v33 }
 0x198   :  { %v130_v35 = vadd.f32 %v245_v29, %v121_v34 }
 0x19a   :  { %264 = vmatmul.mubr.msk.f32.vlgmr.msra.gmra.mrb[0].mxu0 %vm85_vm0, %v130_v35 }
 0x26d   :  { %v265_v37 = vpop.f32.mrb[0].mxu0 }
 0x26e   :  { %v220_v38 = vadd.f32 %v265_v37, %v246_v36  ;;  %v214_v39 = vpop.f32.mrb[1].mxu0 }
 0x26f   :  { %v215_v40 = vadd.f32 %v246_v36, %v214_v39 }
 0x270   :  { %224 = vst.msk [vmem:[#allocation11 + $0x8] sm:$0xff] %vm85_vm0, %v220_v38 }
 0x271   :  { %223 = vst.msk [vmem:[#allocation11] sm:$0xff] %vm85_vm0, %v215_v40 }
 0x272   :  { %407 = shalt.err (!%p404_p2)
}
 0x273   :  { %s408_s8 = scalar_lea.hbm %s558_s5, 256 }
 0x274   :  { %p409_p3 = scmp.ne.s32.totalorder %s558_s5, %s408_s8  ;;  %p412_p4 = scmp.lt.u32.totalorder %s408_s8, %s558_s5 }
 0x276   :  { %p414_p5 = pnand %p412_p4, %p409_p3 }
 0x278   :  { %417 = shalt.err (!%p414_p5)
}
 0x279   :  { %236 = dma.vmem_to_hbm [thread:$0]  %s231_s29, 256, %s558_s5, [#allocation4], %s429_s17, %s429_s17, %s430_s18  }
 0x27a   :  { %424 = dma.done.wait [#allocation4], 256  }
 0x27b   :  { %425 = vsyncadd [#allocation4], 4294967040 }
 0x27c   :  { %240 = vsyncpa [#allocation3], 1 }
 0x27d   :  { %241 = vsyncpa [#allocation6], 1 }
 0x27e   :  { %242 = vsyncpa [#allocation9], 1 }
 0x27f   :  { %243 = vsyncpa [#allocation4], 1 }

// kernel: decoder_layer.6
= control target key start
LH: loop header
LB: loop body
LE: loop exit
PB: predicated region body
PF: predicated region fallthrough
CT: control target
= control target key end

     0   :  { %10 = vsyncpa [#allocation3], 0  ;;  %s552_s0 = inlined_call_operand.hbm [shape: f32[16,32], index: 0, kind: input, shape index: {}]   ;;  %s553_s1 = inlined_call_operand.hbm [shape: f32[1,32], index: 1, kind: input, shape index: {}]   ;;  %s554_s2 = inlined_call_operand.hbm [shape: f32[1,32], index: 2, kind: input, shape index: {}]   ;;  %s555_s3 = inlined_call_operand.hbm [shape: f32[32,96], index: 3, kind: input, shape index: {}]   ;;  %s556_s4 = inlined_call_operand.hbm [shape: f32[1,96], index: 4, kind: input, shape index: {}]   ;;  %s557_s5 = inlined_call_operand.hbm [shape: f32[16,96], index: 5, kind: output, shape index: {}]  }
   0x1   :  { %11 = vsyncpa [#allocation6], 0 }
   0x2   :  { %12 = vsyncpa [#allocation9], 0 }
   0x3   :  { %13 = vsyncpa [#allocation4], 0  ;;  %s427_s18 = smov [#allocation5]   ;;  %s287_s22 = scalar_lea.hbm %s553_s1, 16 }
   0x4   :  { %s32_s19 = sshll.u32 %s427_s18, 4  ;;  %p288_p0 = scmp.ne.s32.totalorder %s553_s1, %s287_s22  ;;  %s33_s19 = int_to_ptr.vmem [resolvable:$true] %s32_s19 }
   0x5   :  { %p291_p1 = scmp.lt.u32.totalorder %s287_s22, %s553_s1 }
   0x7   :  { %p293_p2 = pnand %p291_p1, %p288_p0 }
   0x9   :  { %296 = shalt.err (!%p293_p2)
}
   0xa   :  { %s297_s27 = scalar_lea.vmem %s33_s19, 16  ;;  %s301_s28 = scalar_lea.vmem %s33_s19, 32 }
   0xb   :  { %p298_p3 = scmp.ne.s32.totalorder %s33_s19, %s297_s27  ;;  %p302_p4 = scmp.lt.s32.totalorder %s33_s19, %s33_s19 }
   0xc   :  { %p303_p5 = scmp.lt.s32.totalorder %s301_s28, %s297_s27 }
   0xe   :  { %p304_p6 = por %p303_p5, %p302_p4 }
  0x10   :  { %p305_p7 = pnand %p304_p6, %p298_p3 }
  0x12   :  { %308 = shalt.err (!%p305_p7)
}
  0x13   :  { %35 = dma.hbm_to_vmem [thread:$0]  %s553_s1, 16, %s33_s19, [#allocation6]  }
  0x14   :  { %s428_s6 = smov [#allocation8]   ;;  %s429_s8 = smov [#allocation2]  }
  0x15   :  { %s51_s7 = sshll.u32 %s428_s6, 4  ;;  %s19_s9 = sshll.u32 %s429_s8, 4  ;;  %s52_s7 = int_to_ptr.vmem [resolvable:$true] %s51_s7  ;;  %s20_s9 = int_to_ptr.vmem [resolvable:$true] %s19_s9 }
  0x16   :  { %s309_s12 = scalar_lea.hbm %s555_s3, 512 }
  0x17   :  { %p310_p8 = scmp.ne.s32.totalorder %s555_s3, %s309_s12  ;;  %p313_p9 = scmp.lt.u32.totalorder %s309_s12, %s555_s3 }
  0x19   :  { %p315_p10 = pnand %p313_p9, %p310_p8 }
  0x1b   :  { %318 = shalt.err (!%p315_p10)
}
  0x1c   :  { %s319_s1 = scalar_lea.vmem %s52_s7, 512  ;;  %p324_p12 = scmp.lt.s32.totalorder %s52_s7, %s52_s7 }
  0x1d   :  { %p320_p11 = scmp.ne.s32.totalorder %s52_s7, %s319_s1  ;;  %p325_p13 = scmp.lt.s32.totalorder %s319_s1, %s319_s1 }
  0x1f   :  { %p326_p0 = por %p325_p13, %p324_p12 }
  0x21   :  { %p327_p1 = pnand %p326_p0, %p320_p11 }
  0x23   :  { %330 = shalt.err (!%p327_p1)
}
  0x24   :  { %s430_s17 = smov 128   ;;  %s431_s18 = smov 8  }
  0x25   :  { %57 = dma.hbm_to_vmem [thread:$0]  %s555_s3, 512, %s52_s7, [#allocation9], %s430_s17, %s430_s17, %s431_s18  }
  0x26   :  { %s331_s23 = scalar_lea.hbm %s552_s0, 256 }
  0x27   :  { %p332_p2 = scmp.ne.s32.totalorder %s552_s0, %s331_s23  ;;  %p335_p3 = scmp.lt.u32.totalorder %s331_s23, %s552_s0 }
  0x29   :  { %p337_p4 = pnand %p335_p3, %p332_p2 }
  0x2b   :  { %340 = shalt.err (!%p337_p4)
}
  0x2c   :  { %s341_s28 = scalar_lea.vmem %s20_s9, 256  ;;  %p346_p6 = scmp.lt.s32.totalorder %s20_s9, %s20_s9 }
  0x2d   :  { %p342_p5 = scmp.ne.s32.totalorder %s20_s9, %s341_s28  ;;  %p347_p7 = scmp.lt.s32.totalorder %s341_s28, %s341_s28 }
  0x2f   :  { %p348_p8 = por %p347_p7, %p346_p6 }
  0x31   :  { %p349_p9 = pnand %p348_p8, %p342_p5 }
  0x33   :  { %352 = shalt.err (!%p349_p9)
}
  0x34   :  { %25 = dma.hbm_to_vmem [thread:$0]  %s552_s0, 256, %s20_s9, [#allocation3], %s430_s17, %s430_s17, %s431_s18  }
  0x35   :  { %s432_s30 = smov [#allocation7]   ;;  %s433_s7 = smov [#allocation10]  }
  0x36   :  { %s42_s6 = sshll.u32 %s432_s30, 4  ;;  %s64_s8 = sshll.u32 %s433_s7, 4  ;;  %s43_s6 = int_to_ptr.vmem [resolvable:$true] %s42_s6  ;;  %s65_s8 = int_to_ptr.vmem [resolvable:$true] %s64_s8 }
  0x37   :  { %s353_s12 = scalar_lea.hbm %s554_s2, 16 }
  0x38   :  { %p354_p10 = scmp.ne.s32.totalorder %s554_s2, %s353_s12  ;;  %p357_p11 = scmp.lt.u32.totalorder %s353_s12, %s554_s2 }
  0x3a   :  { %p359_p12 = pnand %p357_p11, %p354_p10 }
  0x3c   :  { %362 = shalt.err (!%p359_p12)
}
  0x3d   :  { %s363_s0 = scalar_lea.vmem %s43_s6, 16  ;;  %s367_s9 = scalar_lea.vmem %s43_s6, 32 }
  0x3e   :  { %p364_p13 = scmp.ne.s32.totalorder %s43_s6, %s363_s0  ;;  %p368_p0 = scmp.lt.s32.totalorder %s43_s6, %s43_s6 }
  0x3f   :  { %p369_p1 = scmp.lt.s32.totalorder %s367_s9, %s363_s0 }
  0x41   :  { %p370_p2 = por %p369_p1, %p368_p0 }
  0x43   :  { %p371_p3 = pnand %p370_p2, %p364_p13 }
  0x45   :  { %374 = shalt.err (!%p371_p3)
}
  0x46   :  { %45 = dma.hbm_to_vmem [thread:$0]  %s554_s2, 16, %s43_s6, [#allocation6]  }
  0x47   :  { %s375_s22 = scalar_lea.hbm %s556_s4, 16 }
  0x48   :  { %p376_p4 = scmp.ne.s32.totalorder %s556_s4, %s375_s22  ;;  %p379_p5 = scmp.lt.u32.totalorder %s375_s22, %s556_s4 }
  0x4a   :  { %p381_p6 = pnand %p379_p5, %p376_p4 }
  0x4c   :  { %384 = shalt.err (!%p381_p6)
}
  0x4d   :  { %s385_s27 = scalar_lea.vmem %s65_s8, 16  ;;  %s389_s28 = scalar_lea.vmem %s65_s8, 32 }
  0x4e   :  { %p386_p7 = scmp.ne.s32.totalorder %s65_s8, %s385_s27  ;;  %p390_p8 = scmp.lt.s32.totalorder %s65_s8, %s65_s8 }
  0x4f   :  { %p391_p9 = scmp.lt.s32.totalorder %s389_s28, %s385_s27 }
  0x51   :  { %p392_p10 = por %p391_p9, %p390_p8 }
  0x53   :  { %p393_p11 = pnand %p392_p10, %p386_p7 }
  0x55   :  { %396 = shalt.err (!%p393_p11)
}
  0x56   :  { %67 = dma.hbm_to_vmem [thread:$0]  %s556_s4, 16, %s65_s8, [#allocation9]  }
  0x57   :  { %419 = dma.done.wait [#allocation3], 256  }
  0x58   :  { %420 = vsyncadd [#allocation3], 4294967040 }
  0x59   :  { %421 = dma.done.wait [#allocation6], 32  }
  0x5a   :  { %422 = vsyncadd [#allocation6], 4294967264 }
  0x5b   :  { %423 = dma.done.wait [#allocation9], 528  }
  0x5c   :  { %424 = vsyncadd [#allocation9], 4294966768  ;;  %vm85_vm0 = vcmask 261120   ;;  %v83_v0 = vld [vmem:[#allocation2] sm:$0xff]  ;;  %v84_v1 = vld [vmem:[#allocation2 + $0x8] sm:$0xff]  ;;  %s434_s4 = smov [#allocation11]  }
  0x5d   :  { %v86_v2 = vsel %vm85_vm0, %v83_v0, 0.0  ;;  %v89_v3 = vsel %vm85_vm0, %v84_v1, 0.0  ;;  %v131_v14 = vld [vmem:[#allocation8] sm:$0xff]  ;;  %v132_v15 = vld [vmem:[#allocation8 + $0x8] sm:$0xff]  ;;  %v133_v16 = vld [vmem:[#allocation8 + $0x10] sm:$0xff]  ;;  %s231_s29 = sshll.u32 %s434_s4, 4  ;;  %s232_s29 = int_to_ptr.vmem [resolvable:$true] %s231_s29 }
  0x5e   :  { %87 = vadd.xlane.f32.xlu0 %v86_v2  ;;  %v267_v17 = vpack.c.bf16 %v132_v15, %v131_v14  ;;  %v134_v18 = vld [vmem:[#allocation8 + $0x18] sm:$0xff]  ;;  %v247_v36 = vld [vmem:[#allocation10] ss:$0 sm:$0xff]  ;;  %vm223_vm1 = vcmask 785408   ;;  %s397_s30 = scalar_lea.vmem %s232_s29, 256  ;;  %p402_p13 = scmp.lt.s32.totalorder %s232_s29, %s232_s29 }
  0x5f   :  { %v271_v19 = vpack.c.bf16 %v134_v18, %v133_v16  ;;  %v245_v27 = vld [vmem:[#allocation5] ss:$0 sm:$0xff]  ;;  %v246_v29 = vld [vmem:[#allocation7] ss:$0 sm:$0xff]  ;;  %p398_p12 = scmp.ne.s32.totalorder %s232_s29, %s397_s30  ;;  %p403_p0 = scmp.lt.s32.totalorder %s397_s30, %s397_s30 }
  0x60   :  { %268 = vmatprep.subr.bf16.mxu0 %v267_v17 }
  0x61   :  { %270 = vmatpush3.bf16.msra.mxu0 %v267_v17  ;;  %p404_p1 = por %p403_p0, %p402_p13 }
  0x62   :  { %90 = vadd.xlane.f32.xlu0 %v89_v3  ;;  %272 = vmatprep.subr.bf16.mxu0 %v271_v19 }
  0x63   :  { %p405_p2 = pnand %p404_p1, %p398_p12 }
  0x65   :  { %274 = vmatpush3.bf16.msra.mxu0 %v271_v19 }
  0xeb   :  { %v88_v4 = vpop.xlane.xlu0 %87 }
  0xec   :  { %v93_v5 = vmul.f32 0.03125, %v88_v4 }
  0xee   :  { %v95_v6 = vsub.f32 %v83_v0, %v93_v5 }
  0xef   :  { %v91_v7 = vpop.xlane.xlu0 %90 }
  0xf0   :  { %v94_v8 = vmul.f32 0.03125, %v91_v7  ;;  %v97_v9 = vmul.f32 %v95_v6, %v95_v6 }
  0xf2   :  { %v96_v10 = vsub.f32 %v84_v1, %v94_v8  ;;  %v99_v11 = vsel %vm85_vm0, %v97_v9, 0.0 }
  0xf3   :  { %100 = vadd.xlane.f32.xlu1 %v99_v11 }
  0xf4   :  { %v98_v12 = vmul.f32 %v96_v10, %v96_v10 }
  0xf6   :  { %v102_v13 = vsel %vm85_vm0, %v98_v12, 0.0 }
  0xf7   :  { %103 = vadd.xlane.f32.xlu1 %v102_v13 }
 0x180   :  { %v101_v20 = vpop.xlane.xlu1 %100 }
 0x181   :  { %v105_v21 = vmul.f32 0.03125, %v101_v20 }
 0x183   :  { %v107_v22 = vadd.f32 1e-05, %v105_v21 }
 0x184   :  { %v104_v23 = vpop.xlane.xlu1 %103 }
 0x185   :  { %283 = vrsqrt.f32 %v107_v22  ;;  %v106_v24 = vmul.f32 0.03125, %v104_v23 }
 0x187   :  { %v108_v25 = vadd.f32 1e-05, %v106_v24 }
 0x189   :  { %285 = vrsqrt.f32 %v108_v25 }
 0x18f   :  { %v284_v26 = vpop.eup %283 }
 0x190   :  { %v111_v28 = vmul.f32 %v284_v26, %v95_v6 }
 0x192   :  { %v120_v30 = vmul.f32 %v245_v27, %v111_v28 }
 0x193   :  { %v286_v31 = vpop.eup %285 }
 0x194   :  { %v112_v32 = vmul.f32 %v286_v31, %v96_v10  ;;  %v129_v33 = vadd.f32 %v246_v29, %v120_v30 }
 0x196   :  { %v121_v34 = vmul.f32 %v245_v27, %v112_v32  ;;  %264 = vmatprep.mubr.msk.f32.mxu0 %vm85_vm0, %v129_v33 }
 0x198   :  { %v130_v35 = vadd.f32 %v246_v29, %v121_v34 }
 0x19a   :  { %265 = vmatmul.mubr.msk.f32.vlgmr.msra.gmra.mrb[0].mxu0 %vm85_vm0, %v130_v35 }
 0x26d   :  { %v266_v37 = vpop.f32.mrb[0].mxu0 }
 0x26e   :  { %v220_v38 = vadd.f32 %v266_v37, %v247_v36  ;;  %v214_v39 = vpop.f32.mrb[1].mxu0 }
 0x26f   :  { %v215_v40 = vadd.f32 %v247_v36, %v214_v39 }
 0x270   :  { %225 = vst.msk [vmem:[#allocation11 + $0x8] sm:$0xff] %vm223_vm1, %v220_v38 }
 0x271   :  { %224 = vst.msk [vmem:[#allocation11] sm:$0xff] %vm223_vm1, %v215_v40 }
 0x272   :  { %408 = shalt.err (!%p405_p2)
}
 0x273   :  { %s409_s8 = scalar_lea.hbm %s557_s5, 256 }
 0x274   :  { %p410_p3 = scmp.ne.s32.totalorder %s557_s5, %s409_s8  ;;  %p413_p4 = scmp.lt.u32.totalorder %s409_s8, %s557_s5 }
 0x276   :  { %p415_p5 = pnand %p413_p4, %p410_p3 }
 0x278   :  { %418 = shalt.err (!%p415_p5)
}
 0x279   :  { %237 = dma.vmem_to_hbm [thread:$0]  %s232_s29, 256, %s557_s5, [#allocation4], %s430_s17, %s430_s17, %s431_s18  }
 0x27a   :  { %425 = dma.done.wait [#allocation4], 256  }
 0x27b   :  { %426 = vsyncadd [#allocation4], 4294967040 }
 0x27c   :  { %241 = vsyncpa [#allocation3], 1 }
 0x27d   :  { %242 = vsyncpa [#allocation6], 1 }
 0x27e   :  { %243 = vsyncpa [#allocation9], 1 }
 0x27f   :  { %244 = vsyncpa [#allocation4], 1 }

// kernel: decoder_layer.9
= control target key start
LH: loop header
LB: loop body
LE: loop exit
PB: predicated region body
PF: predicated region fallthrough
CT: control target
= control target key end

     0   :  { %8 = vsyncpa [#allocation3], 0  ;;  %s388_s0 = inlined_call_operand.hbm [shape: f32[16,32], index: 0, kind: input, shape index: {}]   ;;  %s389_s1 = inlined_call_operand.hbm [shape: f32[32,64], index: 1, kind: input, shape index: {}]   ;;  %s390_s2 = inlined_call_operand.hbm [shape: f32[1,64], index: 2, kind: input, shape index: {}]   ;;  %s391_s3 = inlined_call_operand.hbm [shape: f32[16,64], index: 3, kind: output, shape index: {}]  }
   0x1   :  { %9 = vsyncpa [#allocation6], 0 }
   0x2   :  { %10 = vsyncpa [#allocation4], 0  ;;  %s298_s12 = smov [#allocation5]   ;;  %s299_s14 = smov [#allocation2]  }
   0x3   :  { %s28_s13 = sshll.u32 %s298_s12, 4  ;;  %s16_s15 = sshll.u32 %s299_s14, 4  ;;  %s29_s13 = int_to_ptr.vmem [resolvable:$true] %s28_s13  ;;  %s324_s15 = int_to_ptr.vmem [resolvable:$true] %s16_s15 }
   0x4   :  { %s204_s18 = scalar_lea.hbm %s389_s1, 512 }
   0x5   :  { %p205_p0 = scmp.ne.s32.totalorder %s389_s1, %s204_s18  ;;  %p208_p1 = scmp.lt.u32.totalorder %s204_s18, %s389_s1 }
   0x7   :  { %p210_p2 = pnand %p208_p1, %p205_p0 }
   0x9   :  { %213 = shalt.err (!%p210_p2)
}
   0xa   :  { %s214_s23 = scalar_lea.vmem %s29_s13, 512  ;;  %p219_p4 = scmp.lt.s32.totalorder %s29_s13, %s29_s13 }
   0xb   :  { %p215_p3 = scmp.ne.s32.totalorder %s29_s13, %s214_s23  ;;  %p220_p5 = scmp.lt.s32.totalorder %s214_s23, %s214_s23 }
   0xd   :  { %p221_p6 = por %p220_p5, %p219_p4 }
   0xf   :  { %p222_p7 = pnand %p221_p6, %p215_p3 }
  0x11   :  { %225 = shalt.err (!%p222_p7)
}
  0x12   :  { %s300_s24 = smov 128   ;;  %s301_s25 = smov 8  }
  0x13   :  { %34 = dma.hbm_to_vmem [thread:$0]  %s389_s1, 512, %s29_s13, [#allocation6], %s300_s24, %s300_s24, %s301_s25  }
  0x14   :  { %s226_s30 = scalar_lea.hbm %s388_s0, 256 }
  0x15   :  { %p227_p8 = scmp.ne.s32.totalorder %s388_s0, %s226_s30  ;;  %p230_p9 = scmp.lt.u32.totalorder %s226_s30, %s388_s0 }
  0x17   :  { %p232_p10 = pnand %p230_p9, %p227_p8 }
  0x19   :  { %235 = shalt.err (!%p232_p10)
}
  0x1a   :  { %s236_s8 = scalar_lea.vmem %s324_s15, 256  ;;  %p241_p12 = scmp.lt.s32.totalorder %s324_s15, %s324_s15 }
  0x1b   :  { %p237_p11 = scmp.ne.s32.totalorder %s324_s15, %s236_s8  ;;  %p242_p13 = scmp.lt.s32.totalorder %s236_s8, %s236_s8 }
  0x1d   :  { %p243_p0 = por %p242_p13, %p241_p12 }
  0x1f   :  { %p244_p1 = pnand %p243_p0, %p237_p11 }
  0x21   :  { %247 = shalt.err (!%p244_p1)
}
  0x22   :  { %22 = dma.hbm_to_vmem [thread:$0]  %s388_s0, 256, %s324_s15, [#allocation3], %s300_s24, %s300_s24, %s301_s25  }
  0x23   :  { %s302_s10 = smov [#allocation7]   ;;  %s248_s14 = scalar_lea.hbm %s390_s2, 16 }
  0x24   :  { %s41_s11 = sshll.u32 %s302_s10, 4  ;;  %p249_p2 = scmp.ne.s32.totalorder %s390_s2, %s248_s14  ;;  %s42_s11 = int_to_ptr.vmem [resolvable:$true] %s41_s11 }
  0x25   :  { %p252_p3 = scmp.lt.u32.totalorder %s248_s14, %s390_s2 }
  0x27   :  { %p254_p4 = pnand %p252_p3, %p249_p2 }
  0x29   :  { %257 = shalt.err (!%p254_p4)
}
  0x2a   :  { %s258_s20 = scalar_lea.vmem %s42_s11, 16  ;;  %s262_s0 = scalar_lea.vmem %s42_s11, 32 }
  0x2b   :  { %p259_p5 = scmp.ne.s32.totalorder %s42_s11, %s258_s20  ;;  %p263_p6 = scmp.lt.s32.totalorder %s42_s11, %s42_s11 }
  0x2c   :  { %p264_p7 = scmp.lt.s32.totalorder %s262_s0, %s258_s20 }
  0x2e   :  { %p265_p8 = por %p264_p7, %p263_p6 }
  0x30   :  { %p266_p9 = pnand %p265_p8, %p259_p5 }
  0x32   :  { %269 = shalt.err (!%p266_p9)
}
  0x33   :  { %44 = dma.hbm_to_vmem [thread:$0]  %s390_s2, 16, %s42_s11, [#allocation6]  }
  0x34   :  { %292 = dma.done.wait [#allocation3], 256  }
  0x35   :  { %293 = vsyncadd [#allocation3], 4294967040 }
  0x36   :  { %294 = dma.done.wait [#allocation6], 528  }
  0x37   :  { %295 = vsyncadd [#allocation6], 4294966768  ;;  %vm67_vm0 = vcmask 261120   ;;  %v56_v0 = vld [vmem:[#allocation5] sm:$0xff]  ;;  %v57_v1 = vld [vmem:[#allocation5 + $0x8] sm:$0xff]  ;;  %s303_s2 = smov [#allocation8]  }
  0x38   :  { %v58_v2 = vld [vmem:[#allocation5 + $0x10] sm:$0xff]  ;;  %v190_v3 = vpack.c.bf16 %v57_v1, %v56_v0  ;;  %v59_v4 = vld [vmem:[#allocation5 + $0x18] sm:$0xff]  ;;  %v170_v8 = vld [vmem:[#allocation7] ss:$0 sm:$0xff]  ;;  %s157_s22 = sshll.u32 %s303_s2, 4  ;;  %vm149_vm1 = vcmask 523264   ;;  %s158_s22 = int_to_ptr.vmem [resolvable:$true] %s157_s22 }
  0x39   :  { %v54_v5 = vld [vmem:[#allocation2] sm:$0xff]  ;;  %v194_v6 = vpack.c.bf16 %v59_v4, %v58_v2  ;;  %v55_v7 = vld [vmem:[#allocation2 + $0x8] sm:$0xff]  ;;  %s270_s23 = scalar_lea.vmem %s158_s22, 256  ;;  %p275_p11 = scmp.lt.s32.totalorder %s158_s22, %s158_s22 }
  0x3a   :  { %187 = vmatprep.mubr.msk.f32.mxu0 %vm67_vm0, %v54_v5  ;;  %191 = vmatprep.subr.bf16.mxu0 %v190_v3  ;;  %p271_p10 = scmp.ne.s32.totalorder %s158_s22, %s270_s23  ;;  %p276_p12 = scmp.lt.s32.totalorder %s270_s23, %s270_s23 }
  0x3b   :  { %193 = vmatpush3.bf16.msra.mxu0 %v190_v3 }
  0x3c   :  { %195 = vmatprep.subr.bf16.mxu0 %v194_v6  ;;  %p277_p13 = por %p276_p12, %p275_p11 }
  0x3e   :  { %p278_p0 = pnand %p277_p13, %p271_p10 }
  0x3f   :  { %197 = vmatpush3.bf16.msra.mxu0 %v194_v6 }
  0x42   :  { %188 = vmatmul.mubr.msk.f32.vlgmr.msra.gmra.mrb[0].mxu0 %vm67_vm0, %v55_v7 }
 0x115   :  { %v189_v9 = vpop.f32.mrb[0].mxu0 }
 0x116   :  { %v146_v10 = vadd.f32 %v189_v9, %v170_v8  ;;  %v140_v11 = vpop.f32.mrb[1].mxu0 }
 0x117   :  { %v141_v12 = vadd.f32 %v170_v8, %v140_v11 }
 0x118   :  { %151 = vst.msk [vmem:[#allocation8 + $0x8] sm:$0xff] %vm149_vm1, %v146_v10 }
 0x119   :  { %150 = vst.msk [vmem:[#allocation8] sm:$0xff] %vm149_vm1, %v141_v12 }
 0x11a   :  { %281 = shalt.err (!%p278_p0)
}
 0x11b   :  { %s282_s28 = scalar_lea.hbm %s391_s3, 256 }
 0x11c   :  { %p283_p1 = scmp.ne.s32.totalorder %s391_s3, %s282_s28  ;;  %p286_p2 = scmp.lt.u32.totalorder %s282_s28, %s391_s3 }
 0x11e   :  { %p288_p3 = pnand %p286_p2, %p283_p1 }
 0x120   :  { %291 = shalt.err (!%p288_p3)
}
 0x121   :  { %163 = dma.vmem_to_hbm [thread:$0]  %s158_s22, 256, %s391_s3, [#allocation4], %s300_s24, %s300_s24, %s301_s25  }
 0x122   :  { %296 = dma.done.wait [#allocation4], 256  }
 0x123   :  { %297 = vsyncadd [#allocation4], 4294967040 }
 0x124   :  { %167 = vsyncpa [#allocation3], 1 }
 0x125   :  { %168 = vsyncpa [#allocation6], 1 }
 0x126   :  { %169 = vsyncpa [#allocation4], 1 }

// kernel: decoder_layer.7
= control target key start
LH: loop header
LB: loop body
LE: loop exit
PB: predicated region body
PF: predicated region fallthrough
CT: control target
= control target key end

     0   :  { %s2378_s0 = inlined_call_operand.hbm [shape: f32[2,8,96], index: 0, kind: input, shape index: {}]   ;;  %s2379_s1 = inlined_call_operand.hbm [shape: f32[2,8,8], index: 1, kind: input, shape index: {}]   ;;  %s2380_s2 = inlined_call_operand.hbm [shape: f32[32,32], index: 2, kind: input, shape index: {}]   ;;  %s2381_s3 = inlined_call_operand.hbm [shape: f32[1,32], index: 3, kind: input, shape index: {}]   ;;  %s2382_s4 = inlined_call_operand.hbm [shape: f32[2,8,32], index: 4, kind: input, shape index: {}]   ;;  %s2383_s5 = inlined_call_operand.hbm [shape: f32[2,8,32], index: 5, kind: output, shape index: {}]  }
   0x1   :  { %2396 = sst [smem:[#allocation19_spill]] %s2378_s0 }
   0x2   :  { %2397 = sst [smem:[#allocation20_spill]] %s2380_s2 }
   0x3   :  { %10 = vsyncpa [#allocation3], 0 }
   0x4   :  { %12 = vsyncpa [#allocation3 + $0x1], 0 }
   0x5   :  { %13 = vsyncpa [#allocation6], 0 }
   0x6   :  { %15 = vsyncpa [#allocation6 + $0x1], 0 }
   0x7   :  { %16 = vsyncpa [#allocation9], 0 }
   0x8   :  { %17 = vsyncpa [#allocation4], 0 }
   0x9   :  { %19 = vsyncpa [#allocation4 + $0x1], 0  ;;  %s1981_s18 = smov 0   ;;  %s1983_s19 = smov 0  }
   0xa   :  { %s1985_s20 = smov 0   ;;  %s1987_s21 = smov 0  }
   0xb LB: > { %s2002_s22 = sadd.s32 4294967295, %s1928_s21   ;;  %s1462_s23 = sadd.s32 4294967294, %s1928_s21   ;;  %s1928_s21 = sphi %s1987_s21, %s2429_s21   ;;  %s1924_s20 = sphi %s1985_s20, %s2428_s20   ;;  %s1920_s19 = sphi %s1983_s19, %s2427_s19   ;;  %s1916_s18 = sphi %s1981_s18, %s2426_s18  }
   0xc   : > { %p45_p0 = scmp.ne.s32.totalorder %s1920_s19, %s1916_s18  ;;  %p2384_p1 = scmp.eq.s32.totalorder %s2002_s22, 0 }
   0xd   : > { %p169_p3 = scmp.eq.s32.totalorder %s1462_s23, 1  ;;  %p1463_p5 = scmp.ge.s32.totalorder %s1928_s21, 1 }
   0xe   : > { %p2011_p4 = por %p2384_p1, %p45_p0  ;;  %p176_p7 = scmp.lt.s32.totalorder %s1928_s21, 3 }
   0xf   : > { %p2016_p6 = por %p169_p3, %p45_p0  ;;  %s1930_s27 = smov [#allocation7]  }
  0x10   : > { %s2398_s24 = scalar_select %p2011_p4, 1, 0 }
  0x11   : > { %s2399_s25 = scalar_select %p2016_p6, 1, 0 }
  0x12   : > { %p2021_p8 = pnand %p1463_p5, %p176_p7  ;;  %s188_s28 = sshll.u32 %s1930_s27, 4  ;;  %s2025_s28 = int_to_ptr.vmem [resolvable:$true] %s188_s28 }
  0x13   : > { %s2037_s30 = sadd.s32 1, %s1928_s21   ;;  %s32_s6 = sadd.s32 1, %s1924_s20 }
  0x14   : > { %s2400_s26 = scalar_select %p2021_p8, 1, 0 }
  0x15   : > { %p1608_p9 = pneg %p2021_p8  ;;  %s29_s7 = ssub.s32 %s1928_s21, %s2037_s30 }
  0x16   : > { %s2402_s2 = sld [smem:[#allocation20_spill]] }
  0x17   : > { %p2032_p11 = pnand %p1608_p9, %p2384_p1 }
  0x19   : > { %s2401_s29 = scalar_select %p2032_p11, 1, 0 }
  0x1a   : > { %p2385_p13 = pneg %p2032_p11 }
  0x1c   : > { %s1700_s10 = scalar_lea.hbm %s2402_s2, 512 }
  0x1d   : > { %p1701_p12 = scmp.ne.s32.totalorder %s2402_s2, %s1700_s10  ;;  %p1707_p5 = scmp.lt.u32.totalorder %s1700_s10, %s2402_s2 }
  0x1f   : > { %p1703_p0 = pnand %p2385_p13, %p1701_p12 }
  0x21   : > { %p1704_p3 = pneg %p1703_p0 }
  0x23   : > { %p1709_p7 = pnand %p1707_p5, %p1704_p3 }
  0x25   : > { %1712 = shalt.err (!%p1709_p7)
}
  0x26   : > { %s1713_s15 = scalar_lea.vmem %s2025_s28, 512  ;;  %p1721_p2 = scmp.lt.s32.totalorder %s2025_s28, %s2025_s28 }
  0x27   : > { %p1714_p9 = scmp.ne.s32.totalorder %s2025_s28, %s1713_s15  ;;  %p1722_p12 = scmp.lt.s32.totalorder %s1713_s15, %s1713_s15 }
  0x29   : > { %p1716_p10 = pnand %p1714_p9, %p2385_p13  ;;  %p1723_p0 = por %p1722_p12, %p1721_p2 }
  0x2b   : > { %p1717_p1 = pneg %p1716_p10 }
  0x2d   : > { %p1724_p6 = pnand %p1723_p0, %p1717_p1 }
  0x2f   : > { %1727 = shalt.err (!%p1724_p6)
}
  0x30   : > { %s1931_s16 = smov 128   ;;  %s1932_s17 = smov 8  }
  0x31   : > { %1611 = dma.hbm_to_vmem [thread:$0]  (!%p2032_p11), %s2402_s2, 512, %s2025_s28, [#allocation6], %s1931_s16, %s1931_s16, %s1932_s17  }
  0x32   : > { %p30_p1 = scmp.eq.s32.totalorder %s29_s7, 0  ;;  %p39_p2 = scmp.ne.s32.totalorder %s1924_s20, %s1920_s19 }
  0x33   : > { %p40_p6 = scmp.eq.s32.totalorder %s1928_s21, 0  ;;  %p1631_p10 = scmp.lt.s32.totalorder %s1928_s21, 2 }
  0x34   : > { %s2074_s8 = scalar_select %p30_p1, %s1924_s20, %s32_s6  }
  0x35   : > { %p41_p3 = por %p40_p6, %p39_p2  ;;  %p2404_p5 = scmp.eq.s32.totalorder %s2002_s22, 1 }
  0x36   : > { %2403 = sst [smem:[#allocation18_spill]] %s2074_s8  ;;  %s2387_s10 = sand.u32 1, %s1928_s21  }
  0x37   : > { %p2078_p7 = por %p2404_p5, %p39_p2  ;;  %s215_s11 = sand.u32 1, %s1924_s20  }
  0x38   : > { %s2084_s12 = sshll.u32 %s215_s11, 3  ;;  %s2087_s13 = sshll.u32 %s1928_s21, 7 }
  0x39   : > { %s2405_s9 = scalar_select %p2078_p7, 1, 0 }
  0x3a   : > { %s2406_s0 = sld [smem:[#allocation19_spill]]  ;;  %s217_s6 = scalar_lea.vmem [#allocation2], %s2084_s12 }
  0x3b   : > { %s224_s15 = sshll.u32 %s217_s6, 4  ;;  %p2098_p9 = pnand %p1631_p10, %p41_p3  ;;  %s2096_s15 = int_to_ptr.vmem [resolvable:$true] %s224_s15 }
  0x3c   : > { %s1933_s17 = smov [#allocation8]   ;;  %s2106_s27 = scalar_lea.sflag [#allocation3], %s2387_s10 }
  0x3d   : > { %s2407_s16 = scalar_select %p2098_p9, 1, 0 }
  0x3e   : > { %s2102_s23 = sshll.u32 %s1933_s17, 4  ;;  %p2112_p0 = pneg %p2098_p9  ;;  %s203_s23 = int_to_ptr.vmem [resolvable:$true] %s2102_s23 }
  0x40   : > { %s2093_s14 = scalar_lea.hbm %s2406_s0, %s2087_s13  ;;  %s1733_s2 = scalar_lea.hbm %s2406_s0, 256 }
  0x41   : > { %s1728_s11 = scalar_lea.hbm %s2093_s14, 128  ;;  %p1734_p6 = scmp.lt.u32.totalorder %s2093_s14, %s2406_s0 }
  0x42   : > { %p1729_p12 = scmp.ne.s32.totalorder %s2093_s14, %s1728_s11  ;;  %p1735_p10 = scmp.lt.u32.totalorder %s1733_s2, %s1728_s11 }
  0x43   : > { %s2408_s28 = scalar_select %p2112_p0, 1, 0 }
  0x44   : > { %p1731_p1 = pnand %p2112_p0, %p1729_p12  ;;  %p1736_p3 = por %p1735_p10, %p1734_p6 }
  0x45   : > { %p1737_p5 = scmp.lt.u32.totalorder %s1728_s11, %s2093_s14 }
  0x46   : > { %p1732_p2 = pneg %p1731_p1 }
  0x47   : > { %p1738_p13 = por %p1737_p5, %p1736_p3 }
  0x49   : > { %p1739_p7 = pnand %p1738_p13, %p1732_p2 }
  0x4b   : > { %1742 = shalt.err (!%p1739_p7)
}
  0x4c   : > { %s1743_s10 = scalar_lea.vmem %s2096_s15, 128  ;;  %s1934_s7 = smov [#allocation2]  }
  0x4d   : > { %p1744_p12 = scmp.ne.s32.totalorder %s2096_s15, %s1743_s10  ;;  %s1748_s6 = sshll.u32 %s1934_s7, 4  ;;  %s1749_s6 = int_to_ptr.vmem [resolvable:$false] %s1748_s6 }
  0x4e   : > { %s1750_s8 = scalar_lea.vmem %s1749_s6, 256  ;;  %p1751_p8 = scmp.lt.s32.totalorder %s2096_s15, %s1749_s6 }
  0x4f   : > { %p1746_p1 = pnand %p1744_p12, %p2112_p0  ;;  %p1752_p11 = scmp.lt.s32.totalorder %s1750_s8, %s1743_s10 }
  0x51   : > { %p1747_p4 = pneg %p1746_p1  ;;  %p1753_p6 = por %p1752_p11, %p1751_p8 }
  0x53   : > { %p1754_p10 = pnand %p1753_p6, %p1747_p4 }
  0x55   : > { %1757 = shalt.err (!%p1754_p10)
}
  0x56   : > { %1618 = dma.hbm_to_vmem [thread:$0]  (!%p2098_p9), %s2093_s14, 128, %s2096_s15, %s2106_s27  }
  0x57   : > { %s1758_s17 = scalar_lea.hbm %s2381_s3, 16  ;;  %p2409_p8 = scmp.ne.s32.totalorder %s2401_s29, 0 }
  0x58   : > { %p1759_p13 = scmp.ne.s32.totalorder %s2381_s3, %s1758_s17  ;;  %p1765_p2 = scmp.lt.u32.totalorder %s1758_s17, %s2381_s3 }
  0x59   : > { %p2410_p4 = pneg %p2409_p8 }
  0x5b   : > { %p1761_p11 = pnand %p1759_p13, %p2410_p4 }
  0x5d   : > { %p1762_p7 = pneg %p1761_p11 }
  0x5f   : > { %p1767_p3 = pnand %p1765_p2, %p1762_p7 }
  0x61   : > { %1770 = shalt.err (!%p1767_p3)
}
  0x62   : > { %s1771_s14 = scalar_lea.vmem %s203_s23, 16  ;;  %p2411_p12 = pmov %p2410_p4 }
  0x63   : > { %p1772_p5 = scmp.ne.s32.totalorder %s203_s23, %s1771_s14  ;;  %s1778_s15 = scalar_lea.vmem %s203_s23, 32 }
  0x64   : > { %p1779_p10 = scmp.lt.s32.totalorder %s203_s23, %s203_s23  ;;  %p1780_p9 = scmp.lt.s32.totalorder %s1778_s15, %s1771_s14 }
  0x65   : > { %p1774_p1 = pnand %p1772_p5, %p2411_p12 }
  0x66   : > { %p1781_p0 = por %p1780_p9, %p1779_p10 }
  0x67   : > { %p1775_p6 = pneg %p1774_p1 }
  0x69   : > { %p1782_p4 = pnand %p1781_p0, %p1775_p6 }
  0x6b   : > { %1785 = shalt.err (!%p1782_p4)
}
  0x6c   : > { %1614 = dma.hbm_to_vmem [thread:$0]  (!%p2409_p8), %s2381_s3, 16, %s203_s23, [#allocation9]  }
  0x6d   : > { %s2161_s17 = scalar_lea.hbm %s2379_s1, %s2087_s13  ;;  %s235_s7 = scalar_lea.vmem [#allocation5], %s2084_s12 }
  0x6e   : > { %s242_s10 = sshll.u32 %s235_s7, 4  ;;  %s2412_s29 = sand.u32 1, %s1928_s21   ;;  %s243_s10 = int_to_ptr.vmem [resolvable:$true] %s242_s10 }
  0x6f   : > { %s232_s6 = scalar_lea.sflag [#allocation6], %s2412_s29  ;;  %s1786_s14 = scalar_lea.hbm %s2161_s17, 128 }
  0x70   : > { %p1787_p9 = scmp.ne.s32.totalorder %s2161_s17, %s1786_s14  ;;  %p2413_p0 = scmp.ne.s32.totalorder %s2408_s28, 0 }
  0x71   : > { %s1791_s0 = scalar_lea.hbm %s2379_s1, 256  ;;  %p1792_p8 = scmp.lt.u32.totalorder %s2161_s17, %s2379_s1 }
  0x72   : > { %p1789_p13 = pnand %p1787_p9, %p2413_p0  ;;  %p1793_p7 = scmp.lt.u32.totalorder %s1791_s0, %s1786_s14 }
  0x73   : > { %p1795_p3 = scmp.lt.u32.totalorder %s1786_s14, %s2161_s17 }
  0x74   : > { %p1790_p11 = pneg %p1789_p13  ;;  %p1794_p2 = por %p1793_p7, %p1792_p8 }
  0x76   : > { %p1796_p5 = por %p1795_p3, %p1794_p2 }
  0x78   : > { %p1797_p12 = pnand %p1796_p5, %p1790_p11 }
  0x7a   : > { %1800 = shalt.err (!%p1797_p12)
}
  0x7b   : > { %s1801_s11 = scalar_lea.vmem %s243_s10, 128  ;;  %s1935_s7 = smov [#allocation5]  }
  0x7c   : > { %p1802_p1 = scmp.ne.s32.totalorder %s243_s10, %s1801_s11  ;;  %s1806_s29 = sshll.u32 %s1935_s7, 4  ;;  %s1807_s29 = int_to_ptr.vmem [resolvable:$false] %s1806_s29 }
  0x7d   : > { %s1808_s23 = scalar_lea.vmem %s1807_s29, 256  ;;  %p1809_p4 = scmp.lt.s32.totalorder %s243_s10, %s1807_s29 }
  0x7e   : > { %p1804_p6 = pnand %p1802_p1, %p2413_p0  ;;  %p1810_p9 = scmp.lt.s32.totalorder %s1808_s23, %s1801_s11 }
  0x80   : > { %p1805_p10 = pneg %p1804_p6  ;;  %p1811_p13 = por %p1810_p9, %p1809_p4 }
  0x82   : > { %p1812_p7 = pnand %p1811_p13, %p1805_p10 }
  0x84   : > { %1815 = shalt.err (!%p1812_p7)
}
  0x85   : > { %p2414_p8 = scmp.ne.s32.totalorder %s2407_s16, 0  ;;  %s2187_s0 = scalar_lea.hbm %s2382_s4, %s2087_s13 }
  0x86   : > { %s253_s8 = scalar_lea.vmem [#allocation10], %s2084_s12  ;;  %s1816_s11 = scalar_lea.hbm %s2187_s0, 128 }
  0x87   : > { %1621 = dma.hbm_to_vmem [thread:$0]  (!%p2414_p8), %s2161_s17, 128, %s243_s10, %s232_s6  }
  0x88   : > { %s260_s2 = sshll.u32 %s253_s8, 4  ;;  %p1817_p11 = scmp.ne.s32.totalorder %s2187_s0, %s1816_s11  ;;  %s261_s2 = int_to_ptr.vmem [resolvable:$true] %s260_s2 }
  0x89   : > { %s1821_s17 = scalar_lea.hbm %s2382_s4, 256  ;;  %p1822_p5 = scmp.lt.u32.totalorder %s2187_s0, %s2382_s4 }
  0x8a   : > { %p1819_p2 = pnand %p1817_p11, %p2413_p0  ;;  %p1823_p12 = scmp.lt.u32.totalorder %s1821_s17, %s1816_s11 }
  0x8b   : > { %p1825_p6 = scmp.lt.u32.totalorder %s1816_s11, %s2187_s0 }
  0x8c   : > { %p1820_p3 = pneg %p1819_p2  ;;  %p1824_p1 = por %p1823_p12, %p1822_p5 }
  0x8e   : > { %p1826_p10 = por %p1825_p6, %p1824_p1 }
  0x90   : > { %p1827_p4 = pnand %p1826_p10, %p1820_p3 }
  0x92   : > { %1830 = shalt.err (!%p1827_p4)
}
  0x93   : > { %s1831_s12 = scalar_lea.vmem %s261_s2, 128  ;;  %s1936_s13 = smov [#allocation10]  }
  0x94   : > { %p1832_p9 = scmp.ne.s32.totalorder %s261_s2, %s1831_s12  ;;  %s1836_s23 = sshll.u32 %s1936_s13, 4  ;;  %s1837_s23 = int_to_ptr.vmem [resolvable:$false] %s1836_s23 }
  0x95   : > { %s1838_s14 = scalar_lea.vmem %s1837_s23, 256  ;;  %p1839_p11 = scmp.lt.s32.totalorder %s261_s2, %s1837_s23 }
  0x96   : > { %p1834_p13 = pnand %p1832_p9, %p2413_p0  ;;  %p1840_p2 = scmp.lt.s32.totalorder %s1838_s14, %s1831_s12 }
  0x98   : > { %p1835_p7 = pneg %p1834_p13  ;;  %p1841_p8 = por %p1840_p2, %p1839_p11 }
  0x9a   : > { %p1842_p5 = pnand %p1841_p8, %p1835_p7 }
  0x9c   : > { %1845 = shalt.err (!%p1842_p5)
}
  0x9d   : > { %p2415_p12 = scmp.ne.s32.totalorder %s2407_s16, 0  ;;  %p2416_p3 = scmp.ne.s32.totalorder %s2400_s26, 0 }
  0x9e   : > { %s271_s28 = sand.u32 (!%p2416_p3), 1, %s2002_s22   ;;  %s273_s15 = sand.u32 (!%p2416_p3), 1, %s1920_s19  }
  0x9f   : > { %1624 = dma.hbm_to_vmem [thread:$0]  (!%p2415_p12), %s2187_s0, 128, %s261_s2, %s2106_s27  }
  0xa0   : > { %269 = sbr.rel (%p2416_p3) target bundleno = 2333 (0x91d), region = 40  ;;  %s2214_s8 = sshll.u32 (!%p2416_p3), %s273_s15, 3 }
  0xa1   : > { %s272_s11 = scalar_lea.sflag (!%p2416_p3), [#allocation3], %s271_s28  ;;  %s275_s7 = scalar_lea.vmem (!%p2416_p3), [#allocation2], %s2214_s8 }
  0xa2   : > { %p2417_p0 = scmp.ne.s32.totalorder (!%p2416_p3), %s2398_s24, 0 }
  0xa7   : > { %1891 = dma.done.wait (%p2417_p0), %s272_s11, 128  }
  0xa8   : > { %1893 = vsyncadd (%p2417_p0), %s272_s11, 4294967168  ;;  %s281_s26 = scalar_lea.sflag [#allocation6], %s271_s28  ;;  %s284_s16 = scalar_lea.vmem [#allocation5], %s2214_s8 }
  0xa9   : > { %1895 = dma.done.wait (%p2417_p0), %s281_s26, 128  }
  0xaa   : > { %1897 = vsyncadd (%p2417_p0), %s281_s26, 4294967168  ;;  %p2418_p8 = scmp.eq.s32.totalorder %s2002_s22, 0 }
  0xac   : > { %1899 = dma.done.wait (%p2418_p8), [#allocation6], 512   ;;  %p2419_p1 = pmov %p2418_p8 }
  0xae   : > { %1901 = vsyncadd (%p2419_p1), [#allocation6], 4294966784  ;;  %p2420_p6 = pmov %p2419_p1 }
  0xaf   : > { %p2421_p10 = pmov %p2419_p1 }
  0xb0   : > { %1903 = dma.done.wait (%p2420_p6), [#allocation9], 16  }
  0xb1   : > { %1905 = vsyncadd (%p2421_p10), [#allocation9], 4294967280  ;;  %s301_s27 = scalar_lea.vmem [#allocation10], %s2214_s8 }
  0xb2   : > { %1907 = dma.done.wait (%p2417_p0), %s272_s11, 128  }
  0xb3   : > { %1909 = vsyncadd (%p2417_p0), %s272_s11, 4294967168  ;;  %v1937_v0 = vmov 0.0   ;;  %vm1938_vm0 = vmmov 0   ;;  %v2245_v1 = vld [vmem:[%s275_s7] sm:$0xff]  ;;  %s1939_s0 = smov 96   ;;  %vm357_vm1 = vcmask 64512  }
  0xb4   : > { %1525 = vmatprep.subr.mxu0 %v1937_v0  ;;  %1527 = vmatprep.mubr.msk.f32.mxu0 %vm1938_vm0, %v1937_v0  ;;  %s1940_s24 = smov 64   ;;  %s1941_s2 = smov 88   ;;  %v2260_v3 = vld [vmem:[%s284_s16] sm:$0xff]  ;;  %v341_v21 = vld [vmem:[#allocation7] sm:$0xff]  ;;  %v342_v52 = vld [vmem:[#allocation7 + $0x8] sm:$0xff]  ;;  %vm1314_vm3 = vcmask 261120  }
  0xb5   : > { %1535 = vmatprep.subr.mxu1 %v1937_v0  ;;  %1537 = vmatprep.mubr.msk.f32.mxu1 %vm1938_vm0, %v1937_v0  ;;  %s1942_s29 = smov 120   ;;  %s1943_s17 = smov 80   ;;  %vm340_vm2 = vcmp.gt.f32.partialorder %v2260_v3, 0.0  ;;  %v343_v59 = vld [vmem:[#allocation7 + $0x10] sm:$0xff] }
  0xb6   : > { %355 = vrot.lane.b32.xlu0 %v2245_v1, %s1939_s0  ;;  %444 = vrot.lane.b32.xlu1 %v2245_v1, %s1940_s24  ;;  %s1944_s10 = smov 112   ;;  %s1945_s6 = smov 48  }
  0xb7   : > { %1536 = vmatpush3.msra.mxu1 %v341_v21  ;;  %s1946_s12 = smov 72   ;;  %s1947_s13 = smov 104  }
  0xb8   : > { %1545 = vmatprep.subr.mxu1 %v1937_v0  ;;  %s1948_s23 = smov 56   ;;  %s1949_s14 = smov 40  }
  0xb9   : > { %s1498_s28 = sshll.u32 %s2002_s22, 7  ;;  %s337_s11 = scalar_lea.vmem [#allocation11], %s2214_s8 }
  0xba   : > { %596 = vrot.lane.b32.xlu1 %v2245_v1, %s1941_s2  ;;  %s1330_s7 = sshll.u32 %s337_s11, 4  ;;  %s2333_s0 = scalar_lea.hbm %s2383_s5, %s1498_s28  ;;  %s2335_s7 = int_to_ptr.vmem [resolvable:$true] %s1330_s7 }
  0xbb   : > { %s1846_s22 = scalar_lea.vmem %s2335_s7, 128  ;;  %p2422_p9 = scmp.ne.s32.totalorder %s2405_s9, 0 }
  0xbc   : > { %p1847_p4 = scmp.ne.s32.totalorder %s2335_s7, %s1846_s22  ;;  %s1950_s8 = smov [#allocation11]  }
  0xbd   : > { %s1850_s24 = sshll.u32 %s1950_s8, 4  ;;  %s1851_s24 = int_to_ptr.vmem [resolvable:$false] %s1850_s24 }
  0xbe   : > { %594 = vrot.lane.b32.xlu1 %v2245_v1, %s1942_s29  ;;  %p1848_p13 = pnand %p1847_p4, %p2422_p9  ;;  %s1852_s2 = scalar_lea.vmem %s1851_s24, 256 }
  0xbf   : > { %p1853_p11 = scmp.lt.s32.totalorder %s2335_s7, %s1851_s24  ;;  %p1854_p2 = scmp.lt.s32.totalorder %s1852_s2, %s1846_s22 }
  0xc0   : > { %p1849_p7 = pneg %p1848_p13 }
  0xc1   : > { %p1855_p5 = por %p1854_p2, %p1853_p11 }
  0xc2   : > { %836 = vrot.lane.b32.xlu1 %v2245_v1, %s1943_s17 }
  0xc3   : > { %p1856_p12 = pnand %p1855_p5, %p1849_p7 }
 0x128   : > { %v356_v2 = vpop.permute.xlu0 %355  ;;  %v445_v8 = vpop.permute.xlu1 %444 }
 0x129   : > { %1526 = vmatpush3.xpose.msk.msra.mxu0 %vm357_vm1, %v356_v2 }
 0x12a   : > { %1530 = vmatprep.subr.mxu0 %v1937_v0 }
 0x12c   : > { %1528 = vmatmul.mubr.msk.f32.vlgmr.msra.gmra.mrb[0].mxu0 %vm357_vm1, %v2245_v1  ;;  %v597_v14 = vpop.permute.xlu1 %596 }
 0x12d   : > { %1532 = vmatprep.mubr.msk.f32.mxu0 %vm1938_vm0, %v1937_v0  ;;  %1531 = vmatpush3.msra.mxu0 %v445_v8 }
 0x12e   : > { %1540 = vmatprep.subr.mxu0 %v1937_v0 }
 0x130   : > { %v595_v15 = vpop.permute.xlu1 %594 }
 0x134   : > { %v837_v16 = vpop.permute.xlu1 %836 }
 0x1ff   : > { %v428_v4 = vpop.f32.mrb[0].mxu0 }
 0x200   : > { %v432_v5 = vsel %vm340_vm2, %v428_v4, -1e+09  ;;  %v1529_v6 = vpop.f32.mrb[1].mxu0 }
 0x201   : > { %v433_v7 = vsel %vm357_vm1, %v432_v5, -inf }
 0x202   : > { %434 = vmax.xlane.f32.xlu0 %v433_v7 }
 0x28f   : > { %v435_v9 = vpop.xlane.xlu0 %434 }
 0x290   : > { %v436_v10 = vsub.f32 %v432_v5, %v435_v9  ;;  %v344_v9 = vld [vmem:[#allocation7 + $0x18] sm:$0xff] }
 0x292   : > { %v437_v11 = vmul.f32 1.442695, %v436_v10 }
 0x294   : > { %1684 = vpow2.f32 %v437_v11  ;;  %v345_v11 = vld [vmem:[%s301_s27] sm:$0xff]  ;;  %s1317_s27 = scalar_lea.sflag [#allocation4], %s273_s15 }
 0x29e   : > { %v1685_v12 = vpop.eup %1684 }
 0x29f   : > { %v439_v13 = vsel %vm357_vm1, %v1685_v12, 0.0 }
 0x2a0   : > { %440 = vadd.xlane.f32.xlu1 %v439_v13 }
 0x2b1   : > { %834 = vrot.lane.b32.xlu1 %v2245_v1, %s1944_s10 }
 0x32d   : > { %v441_v17 = vpop.xlane.xlu1 %440 }
 0x32e   : > { %1686 = vrcp.f32 %v441_v17 }
 0x331   : > { %v835_v20 = vpop.permute.xlu1 %834 }
 0x338   : > { %v1687_v18 = vpop.eup %1686 }
 0x339   : > { %v443_v19 = vmul.f32 %v1687_v18, %v1685_v12  ;;  %v1480_v12 = vld [vmem:[#allocation8] ss:$0 sm:$0xff] }
 0x33a   : > { %v353_v13 = vadd.f32 %v1480_v12, %v345_v11 }
 0x33b   : > { %1533 = vmatmul.mubr.msk.f32.vlgmr.msra.gmra.mrb[2].mxu0 %vm357_vm1, %v443_v19 }
 0x33c   : > { %1541 = vmatpush3.xpose.msk.msra.mxu0 %vm357_vm1, %v597_v14  ;;  %1542 = vmatprep.mubr.msk.f32.mxu0 %vm1938_vm0, %v1937_v0 }
 0x33d   : > { %1555 = vmatprep.subr.mxu0 %v1937_v0 }
 0x33f   : > { %1543 = vmatmul.mubr.msk.f32.vlgmr.msra.gmra.mrb[4].mxu0 %vm357_vm1, %v595_v15 }
 0x340   : > { %1556 = vmatpush3.xpose.msk.msra.mxu0 %vm357_vm1, %v837_v16  ;;  %1557 = vmatprep.mubr.msk.f32.mxu0 %vm1938_vm0, %v1937_v0 }
 0x341   : > { %1560 = vmatprep.subr.mxu0 %v1937_v0 }
 0x343   : > { %1558 = vmatmul.mubr.msk.f32.vlgmr.msra.gmra.mrb[6].mxu0 %vm357_vm1, %v835_v20 }
 0x344   : > { %1562 = vmatprep.mubr.msk.f32.mxu0 %vm1938_vm0, %v1937_v0 }
 0x40e   : > { %v516_v22 = vpop.f32.mrb[2].mxu0 }
 0x40f   : > { %v1534_v23 = vpop.f32.mrb[3].mxu0  ;;  %1538 = vmatmul.mubr.msk.f32.vlgmr.msra.gmra.mrb[0].mxu1 %vm357_vm1, %v516_v22 }
 0x410   : > { %1547 = vmatprep.mubr.msk.f32.mxu1 %vm1938_vm0, %v1937_v0 }
 0x412   : > { %v668_v24 = vpop.f32.mrb[4].mxu0 }
 0x413   : > { %v1544_v25 = vpop.f32.mrb[5].mxu0  ;;  %v672_v30 = vsel %vm340_vm2, %v668_v24, -1e+09 }
 0x414   : > { %v673_v31 = vsel %vm357_vm1, %v672_v30, -inf }
 0x416   : > { %v908_v26 = vpop.f32.mrb[6].mxu0 }
 0x417   : > { %v912_v27 = vsel %vm340_vm2, %v908_v26, -1e+09  ;;  %v1559_v28 = vpop.f32.mrb[7].mxu0 }
 0x418   : > { %v913_v29 = vsel %vm357_vm1, %v912_v27, -inf }
 0x419   : > { %914 = vmax.xlane.f32.xlu0 %v913_v29 }
 0x42f   : > { %924 = vrot.lane.b32.xlu0 %v2245_v1, %s1945_s6 }
 0x433   : > { %1076 = vrot.lane.b32.xlu0 %v2245_v1, %s1946_s12 }
 0x437   : > { %1074 = vrot.lane.b32.xlu0 %v2245_v1, %s1947_s13 }
 0x456   : > { %674 = vmax.xlane.f32.xlu0 %v673_v31 }
 0x4a6   : > { %v915_v32 = vpop.xlane.xlu0 %914 }
 0x4a7   : > { %v916_v33 = vsub.f32 %v912_v27, %v915_v32 }
 0x4a9   : > { %v917_v34 = vmul.f32 1.442695, %v916_v33 }
 0x4aa   : > { %v925_v35 = vpop.permute.xlu0 %924 }
 0x4ab   : > { %1688 = vpow2.f32 %v917_v34  ;;  %1561 = vmatpush3.msra.mxu0 %v925_v35 }
 0x4ac   : > { %1570 = vmatprep.subr.mxu0 %v1937_v0 }
 0x4ae   : > { %v1077_v38 = vpop.permute.xlu0 %1076 }
 0x4b2   : > { %v1075_v39 = vpop.permute.xlu0 %1074 }
 0x4b5   : > { %v1689_v36 = vpop.eup %1688 }
 0x4b6   : > { %v919_v37 = vsel %vm357_vm1, %v1689_v36, 0.0 }
 0x4b7   : > { %920 = vadd.xlane.f32.xlu1 %v919_v37 }
 0x4e3   : > { %v675_v40 = vpop.xlane.xlu0 %674 }
 0x4e4   : > { %v676_v41 = vsub.f32 %v672_v30, %v675_v40 }
 0x4e6   : > { %v677_v42 = vmul.f32 1.442695, %v676_v41 }
 0x4e8   : > { %1690 = vpow2.f32 %v677_v42 }
 0x4f2   : > { %v1691_v43 = vpop.eup %1690 }
 0x4f3   : > { %v679_v44 = vsel %vm357_vm1, %v1691_v43, 0.0 }
 0x4f4   : > { %680 = vadd.xlane.f32.xlu1 %v679_v44 }
 0x505   : > { %684 = vrot.lane.b32.xlu1 %v2245_v1, %s1948_s23 }
 0x544   : > { %v921_v45 = vpop.xlane.xlu1 %920 }
 0x545   : > { %1692 = vrcp.f32 %v921_v45 }
 0x54f   : > { %v1693_v46 = vpop.eup %1692 }
 0x550   : > { %v923_v47 = vmul.f32 %v1693_v46, %v1689_v36 }
 0x552   : > { %1563 = vmatmul.mubr.msk.f32.vlgmr.msra.gmra.mrb[8].mxu0 %vm357_vm1, %v923_v47 }
 0x553   : > { %1571 = vmatpush3.xpose.msk.msra.mxu0 %vm357_vm1, %v1077_v38  ;;  %1572 = vmatprep.mubr.msk.f32.mxu0 %vm1938_vm0, %v1937_v0 }
 0x556   : > { %1573 = vmatmul.mubr.msk.f32.vlgmr.msra.gmra.mrb[10].mxu0 %vm357_vm1, %v1075_v39 }
 0x581   : > { %v681_v48 = vpop.xlane.xlu1 %680 }
 0x582   : > { %1694 = vrcp.f32 %v681_v48 }
 0x585   : > { %v685_v49 = vpop.permute.xlu1 %684 }
 0x586   : > { %1546 = vmatpush3.msra.mxu1 %v685_v49 }
 0x587   : > { %1550 = vmatprep.subr.mxu1 %v1937_v0 }
 0x58c   : > { %v1695_v50 = vpop.eup %1694 }
 0x58d   : > { %v683_v51 = vmul.f32 %v1695_v50, %v1691_v43 }
 0x58f   : > { %1548 = vmatmul.mubr.msk.f32.vlgmr.msra.gmra.mrb[2].mxu1 %vm357_vm1, %v683_v51 }
 0x590   : > { %1552 = vmatprep.mubr.msk.f32.mxu1 %vm1938_vm0, %v1937_v0  ;;  %1551 = vmatpush3.msra.mxu1 %v342_v52 }
 0x591   : > { %1565 = vmatprep.subr.mxu1 %v1937_v0 }
 0x625   : > { %v996_v53 = vpop.f32.mrb[8].mxu0 }
 0x626   : > { %v1564_v54 = vpop.f32.mrb[9].mxu0 }
 0x629   : > { %v1148_v55 = vpop.f32.mrb[10].mxu0 }
 0x62a   : > { %v1152_v56 = vsel %vm340_vm2, %v1148_v55, -1e+09  ;;  %v1574_v57 = vpop.f32.mrb[11].mxu0 }
 0x62b   : > { %v1153_v58 = vsel %vm357_vm1, %v1152_v56, -inf }
 0x62c   : > { %1154 = vmax.xlane.f32.xlu1 %v1153_v58 }
 0x662   : > { %v756_v60 = vpop.f32.mrb[2].mxu1 }
 0x663   : > { %v1549_v61 = vpop.f32.mrb[3].mxu1  ;;  %1553 = vmatmul.mubr.msk.f32.vlgmr.msra.gmra.mrb[0].mxu1 %vm357_vm1, %v756_v60 }
 0x664   : > { %1566 = vmatpush3.msra.mxu1 %v343_v59  ;;  %1567 = vmatprep.mubr.msk.f32.mxu1 %vm1938_vm0, %v1937_v0 }
 0x665   : > { %1575 = vmatprep.subr.mxu1 %v1937_v0 }
 0x66b   : > { %1568 = vmatmul.mubr.msk.f32.vlgmr.msra.gmra.mrb[0].mxu1 %vm357_vm1, %v996_v53 }
 0x66c   : > { %1577 = vmatprep.mubr.msk.f32.mxu1 %vm1938_vm0, %v1937_v0 }
 0x6b9   : > { %v1155_v62 = vpop.xlane.xlu1 %1154 }
 0x6ba   : > { %v1156_v63 = vsub.f32 %v1152_v56, %v1155_v62 }
 0x6bc   : > { %v1157_v2 = vmul.f32 1.442695, %v1156_v63 }
 0x6be   : > { %1696 = vpow2.f32 %v1157_v2 }
 0x6c8   : > { %v1697_v3 = vpop.eup %1696 }
 0x6c9   : > { %v1159_v4 = vsel %vm357_vm1, %v1697_v3, 0.0 }
 0x6ca   : > { %1160 = vadd.xlane.f32.xlu0 %v1159_v4 }
 0x6e0   : > { %1164 = vrot.lane.b32.xlu0 %v2245_v1, %s1949_s14 }
 0x757   : > { %v1161_v5 = vpop.xlane.xlu0 %1160 }
 0x758   : > { %1698 = vrcp.f32 %v1161_v5 }
 0x75b   : > { %v1165_v6 = vpop.permute.xlu0 %1164 }
 0x75c   : > { %1576 = vmatpush3.msra.mxu1 %v1165_v6 }
 0x75d   : > { %1580 = vmatprep.subr.mxu1 %v1937_v0 }
 0x762   : > { %v1699_v7 = vpop.eup %1698 }
 0x763   : > { %v1163_v8 = vmul.f32 %v1699_v7, %v1697_v3 }
 0x765   : > { %1578 = vmatmul.mubr.msk.f32.vlgmr.msra.gmra.mrb[4].mxu1 %vm357_vm1, %v1163_v8 }
 0x766   : > { %1581 = vmatpush3.msra.mxu1 %v344_v9  ;;  %1582 = vmatprep.mubr.msk.f32.mxu1 %vm1938_vm0, %v1937_v0 }
 0x838   : > { %v1236_v10 = vpop.f32.mrb[4].mxu1 }
 0x839   : > { %v1579_v1 = vpop.f32.mrb[5].mxu1  ;;  %1583 = vmatmul.mubr.msk.f32.vlgmr.msra.gmra.mrb[0].mxu1 %vm357_vm1, %v1236_v10 }
 0x90c   : > { %v1309_v14 = vpop.f32.mrb[0].mxu1 }
 0x90d   : > { %v1585_v15 = vadd.f32 %v1309_v14, %v353_v13  ;;  %v1584_v16 = vpop.f32.mrb[1].mxu1 }
 0x90f   : > { %1315 = vst.msk [vmem:[%s337_s11] sm:$0xff] %vm1314_vm3, %v1585_v15 }
 0x910   : > { %1859 = shalt.err (!%p1856_p12)
}
 0x911   : > { %s1860_s15 = scalar_lea.hbm %s2333_s0, 128  ;;  %s1864_s10 = scalar_lea.hbm %s2383_s5, 256 }
 0x912   : > { %p1861_p3 = scmp.ne.s32.totalorder %s2333_s0, %s1860_s15  ;;  %p1865_p1 = scmp.lt.u32.totalorder %s2333_s0, %s2383_s5 }
 0x913   : > { %p1866_p6 = scmp.lt.u32.totalorder %s1864_s10, %s1860_s15  ;;  %p1868_p4 = scmp.lt.u32.totalorder %s1860_s15, %s2333_s0 }
 0x914   : > { %p1862_p0 = pnand %p1861_p3, %p2422_p9 }
 0x915   : > { %p1867_p10 = por %p1866_p6, %p1865_p1 }
 0x916   : > { %p1863_p8 = pneg %p1862_p0 }
 0x917   : > { %p1869_p13 = por %p1868_p4, %p1867_p10 }
 0x919   : > { %p1870_p7 = pnand %p1869_p13, %p1863_p8 }
 0x91b   : > { %1873 = shalt.err (!%p1870_p7)
}
 0x91c   : > { %1606 = dma.vmem_to_hbm [thread:$0]  (%p2422_p9), %s2335_s7, 128, %s2333_s0, %s1317_s27  }
 0x91d PF: > { %s1342_s13 = sand.u32 1, %s1916_s18   ;;  %p2423_p11 = scmp.ne.s32.totalorder %s2399_s25, 0 }
 0x91e   : > { %p2424_p2 = scmp.ge.s32.totalorder %s1928_s21, 2  ;;  %s1343_s23 = scalar_lea.sflag [#allocation4], %s1342_s13 }
 0x920   : > { %p1626_p5 = pnand %p2424_p2, %p2423_p11 }
 0x922   : > { %1911 = dma.done.wait (!%p1626_p5), %s1343_s23, 128  }
 0x923   : > { %1913 = vsyncadd (!%p1626_p5), %s1343_s23, 4294967168  ;;  %s2425_s14 = sld [smem:[#allocation18_spill]]  ;;  %p22_p12 = scmp.ge.s32.totalorder %s2037_s30, 4  }
 0x924   : > { %s2426_s18 = smov %s1920_s19  ;;  %s2427_s19 = smov %s1924_s20 }
 0x925   : > { %s2429_s21 = smov %s2037_s30  ;;  %24 = sbr.rel (!%p22_p12) target bundleno = 11 (0xb), region = 117 }
 0x929   : > { %s2428_s20 = smov %s2425_s14 }
 0x92c   :  { %1348 = vsyncpa [#allocation3], 1 }
 0x92d   :  { %1350 = vsyncpa [#allocation3 + $0x1], 1 }
 0x92e   :  { %1351 = vsyncpa [#allocation6], 1 }
 0x92f   :  { %1353 = vsyncpa [#allocation6 + $0x1], 1 }
 0x930   :  { %1354 = vsyncpa [#allocation9], 1 }
 0x931   :  { %1355 = vsyncpa [#allocation4], 1 }
 0x932   :  { %1357 = vsyncpa [#allocation4 + $0x1], 1 }

// kernel: decoder_layer.11
= control target key start
LH: loop header
LB: loop body
LE: loop exit
PB: predicated region body
PF: predicated region fallthrough
CT: control target
= control target key end

     0   :  { %12 = vsyncpa [#allocation3], 0  ;;  %s880_s0 = inlined_call_operand.hbm [shape: f32[16,32], index: 0, kind: input, shape index: {}]   ;;  %s881_s1 = inlined_call_operand.hbm [shape: f32[1,32], index: 1, kind: input, shape index: {}]   ;;  %s882_s2 = inlined_call_operand.hbm [shape: f32[1,32], index: 2, kind: input, shape index: {}]   ;;  %s883_s3 = inlined_call_operand.hbm [shape: f32[32,128], index: 3, kind: input, shape index: {}]   ;;  %s884_s4 = inlined_call_operand.hbm [shape: f32[1,128], index: 4, kind: input, shape index: {}]   ;;  %s885_s5 = inlined_call_operand.hbm [shape: f32[128,32], index: 5, kind: input, shape index: {}]   ;;  %s886_s6 = inlined_call_operand.hbm [shape: f32[1,32], index: 6, kind: input, shape index: {}]   ;;  %s887_s7 = inlined_call_operand.hbm [shape: f32[16,32], index: 7, kind: output, shape index: {}]  }
   0x1   :  { %13 = vsyncpa [#allocation6], 0 }
   0x2   :  { %14 = vsyncpa [#allocation9], 0 }
   0x3   :  { %15 = vsyncpa [#allocation12], 0 }
   0x4   :  { %16 = vsyncpa [#allocation4], 0  ;;  %s694_s24 = smov [#allocation5]   ;;  %s508_s28 = scalar_lea.hbm %s881_s1, 16 }
   0x5   :  { %s35_s25 = sshll.u32 %s694_s24, 4  ;;  %p509_p0 = scmp.ne.s32.totalorder %s881_s1, %s508_s28  ;;  %s36_s25 = int_to_ptr.vmem [resolvable:$true] %s35_s25 }
   0x6   :  { %p512_p1 = scmp.lt.u32.totalorder %s508_s28, %s881_s1 }
   0x8   :  { %p514_p2 = pnand %p512_p1, %p509_p0 }
   0xa   :  { %517 = shalt.err (!%p514_p2)
}
   0xb   :  { %s518_s10 = scalar_lea.vmem %s36_s25, 16  ;;  %s522_s11 = scalar_lea.vmem %s36_s25, 32 }
   0xc   :  { %p519_p3 = scmp.ne.s32.totalorder %s36_s25, %s518_s10  ;;  %p523_p4 = scmp.lt.s32.totalorder %s36_s25, %s36_s25 }
   0xd   :  { %p524_p5 = scmp.lt.s32.totalorder %s522_s11, %s518_s10 }
   0xf   :  { %p525_p6 = por %p524_p5, %p523_p4 }
  0x11   :  { %p526_p7 = pnand %p525_p6, %p519_p3 }
  0x13   :  { %529 = shalt.err (!%p526_p7)
}
  0x14   :  { %38 = dma.hbm_to_vmem [thread:$0]  %s881_s1, 16, %s36_s25, [#allocation6]  }
  0x15   :  { %s695_s14 = smov [#allocation8]   ;;  %s696_s16 = smov [#allocation11]  }
  0x16   :  { %s54_s15 = sshll.u32 %s695_s14, 4  ;;  %s76_s17 = sshll.u32 %s696_s16, 4  ;;  %s55_s15 = int_to_ptr.vmem [resolvable:$true] %s54_s15  ;;  %s77_s17 = int_to_ptr.vmem [resolvable:$true] %s76_s17 }
  0x17   :  { %s530_s20 = scalar_lea.hbm %s883_s3, 512 }
  0x18   :  { %p531_p8 = scmp.ne.s32.totalorder %s883_s3, %s530_s20  ;;  %p534_p9 = scmp.lt.u32.totalorder %s530_s20, %s883_s3 }
  0x1a   :  { %p536_p10 = pnand %p534_p9, %p531_p8 }
  0x1c   :  { %539 = shalt.err (!%p536_p10)
}
  0x1d   :  { %s540_s1 = scalar_lea.vmem %s55_s15, 512  ;;  %p545_p12 = scmp.lt.s32.totalorder %s55_s15, %s55_s15 }
  0x1e   :  { %p541_p11 = scmp.ne.s32.totalorder %s55_s15, %s540_s1  ;;  %p546_p13 = scmp.lt.s32.totalorder %s540_s1, %s540_s1 }
  0x20   :  { %p547_p0 = por %p546_p13, %p545_p12 }
  0x22   :  { %p548_p1 = pnand %p547_p0, %p541_p11 }
  0x24   :  { %551 = shalt.err (!%p548_p1)
}
  0x25   :  { %s697_s25 = smov 128   ;;  %s698_s26 = smov 8  }
  0x26   :  { %60 = dma.hbm_to_vmem [thread:$0]  %s883_s3, 512, %s55_s15, [#allocation9], %s697_s25, %s697_s25, %s698_s26  }
  0x27   :  { %s552_s8 = scalar_lea.hbm %s885_s5, 2048 }
  0x28   :  { %p553_p2 = scmp.ne.s32.totalorder %s885_s5, %s552_s8  ;;  %p556_p3 = scmp.lt.u32.totalorder %s552_s8, %s885_s5 }
  0x2a   :  { %p558_p4 = pnand %p556_p3, %p553_p2 }
  0x2c   :  { %561 = shalt.err (!%p558_p4)
}
  0x2d   :  { %s562_s13 = scalar_lea.vmem %s77_s17, 2048  ;;  %p567_p6 = scmp.lt.s32.totalorder %s77_s17, %s77_s17 }
  0x2e   :  { %p563_p5 = scmp.ne.s32.totalorder %s77_s17, %s562_s13  ;;  %p568_p7 = scmp.lt.s32.totalorder %s562_s13, %s562_s13 }
  0x30   :  { %p569_p8 = por %p568_p7, %p567_p6 }
  0x32   :  { %p570_p9 = pnand %p569_p8, %p563_p5 }
  0x34   :  { %573 = shalt.err (!%p570_p9)
}
  0x35   :  { %82 = dma.hbm_to_vmem [thread:$0]  %s885_s5, 2048, %s77_s17, [#allocation12], %s697_s25, %s697_s25, %s698_s26  }
  0x36   :  { %s699_s15 = smov [#allocation2]   ;;  %s700_s18 = smov [#allocation7]  }
  0x37   :  { %s22_s16 = sshll.u32 %s699_s15, 4  ;;  %s45_s19 = sshll.u32 %s700_s18, 4  ;;  %s23_s16 = int_to_ptr.vmem [resolvable:$true] %s22_s16  ;;  %s46_s19 = int_to_ptr.vmem [resolvable:$true] %s45_s19 }
  0x38   :  { %s574_s22 = scalar_lea.hbm %s880_s0, 256 }
  0x39   :  { %p575_p10 = scmp.ne.s32.totalorder %s880_s0, %s574_s22  ;;  %p578_p11 = scmp.lt.u32.totalorder %s574_s22, %s880_s0 }
  0x3b   :  { %p580_p12 = pnand %p578_p11, %p575_p10 }
  0x3d   :  { %583 = shalt.err (!%p580_p12)
}
  0x3e   :  { %s584_s5 = scalar_lea.vmem %s23_s16, 256  ;;  %p589_p0 = scmp.lt.s32.totalorder %s23_s16, %s23_s16 }
  0x3f   :  { %p585_p13 = scmp.ne.s32.totalorder %s23_s16, %s584_s5  ;;  %p590_p1 = scmp.lt.s32.totalorder %s584_s5, %s584_s5 }
  0x41   :  { %p591_p2 = por %p590_p1, %p589_p0 }
  0x43   :  { %p592_p3 = pnand %p591_p2, %p585_p13 }
  0x45   :  { %595 = shalt.err (!%p592_p3)
}
  0x46   :  { %28 = dma.hbm_to_vmem [thread:$0]  %s880_s0, 256, %s23_s16, [#allocation3], %s697_s25, %s697_s25, %s698_s26  }
  0x47   :  { %s596_s8 = scalar_lea.hbm %s882_s2, 16 }
  0x48   :  { %p597_p4 = scmp.ne.s32.totalorder %s882_s2, %s596_s8  ;;  %p600_p5 = scmp.lt.u32.totalorder %s596_s8, %s882_s2 }
  0x4a   :  { %p602_p6 = pnand %p600_p5, %p597_p4 }
  0x4c   :  { %605 = shalt.err (!%p602_p6)
}
  0x4d   :  { %s606_s13 = scalar_lea.vmem %s46_s19, 16  ;;  %s610_s3 = scalar_lea.vmem %s46_s19, 32 }
  0x4e   :  { %p607_p7 = scmp.ne.s32.totalorder %s46_s19, %s606_s13  ;;  %p611_p8 = scmp.lt.s32.totalorder %s46_s19, %s46_s19 }
  0x4f   :  { %p612_p9 = scmp.lt.s32.totalorder %s610_s3, %s606_s13 }
  0x51   :  { %p613_p10 = por %p612_p9, %p611_p8 }
  0x53   :  { %p614_p11 = pnand %p613_p10, %p607_p7 }
  0x55   :  { %617 = shalt.err (!%p614_p11)
}
  0x56   :  { %48 = dma.hbm_to_vmem [thread:$0]  %s882_s2, 16, %s46_s19, [#allocation6]  }
  0x57   :  { %s701_s15 = smov [#allocation10]   ;;  %s702_s18 = smov [#allocation13]  }
  0x58   :  { %s67_s16 = sshll.u32 %s701_s15, 4  ;;  %s89_s20 = sshll.u32 %s702_s18, 4  ;;  %s68_s16 = int_to_ptr.vmem [resolvable:$true] %s67_s16  ;;  %s90_s20 = int_to_ptr.vmem [resolvable:$true] %s89_s20 }
  0x59   :  { %s618_s23 = scalar_lea.hbm %s884_s4, 16 }
  0x5a   :  { %p619_p12 = scmp.ne.s32.totalorder %s884_s4, %s618_s23  ;;  %p622_p13 = scmp.lt.u32.totalorder %s618_s23, %s884_s4 }
  0x5c   :  { %p624_p0 = pnand %p622_p13, %p619_p12 }
  0x5e   :  { %627 = shalt.err (!%p624_p0)
}
  0x5f   :  { %s628_s2 = scalar_lea.vmem %s68_s16, 16  ;;  %s632_s19 = scalar_lea.vmem %s68_s16, 32 }
  0x60   :  { %p629_p1 = scmp.ne.s32.totalorder %s68_s16, %s628_s2  ;;  %p633_p2 = scmp.lt.s32.totalorder %s68_s16, %s68_s16 }
  0x61   :  { %p634_p3 = scmp.lt.s32.totalorder %s632_s19, %s628_s2 }
  0x63   :  { %p635_p4 = por %p634_p3, %p633_p2 }
  0x65   :  { %p636_p5 = pnand %p635_p4, %p629_p1 }
  0x67   :  { %639 = shalt.err (!%p636_p5)
}
  0x68   :  { %70 = dma.hbm_to_vmem [thread:$0]  %s884_s4, 16, %s68_s16, [#allocation9]  }
  0x69   :  { %s640_s8 = scalar_lea.hbm %s886_s6, 16 }
  0x6a   :  { %p641_p6 = scmp.ne.s32.totalorder %s886_s6, %s640_s8  ;;  %p644_p7 = scmp.lt.u32.totalorder %s640_s8, %s886_s6 }
  0x6c   :  { %p646_p8 = pnand %p644_p7, %p641_p6 }
  0x6e   :  { %649 = shalt.err (!%p646_p8)
}
  0x6f   :  { %s650_s13 = scalar_lea.vmem %s90_s20, 16  ;;  %s654_s3 = scalar_lea.vmem %s90_s20, 32 }
  0x70   :  { %p651_p9 = scmp.ne.s32.totalorder %s90_s20, %s650_s13  ;;  %p655_p10 = scmp.lt.s32.totalorder %s90_s20, %s90_s20 }
  0x71   :  { %p656_p11 = scmp.lt.s32.totalorder %s654_s3, %s650_s13 }
  0x73   :  { %p657_p12 = por %p656_p11, %p655_p10 }
  0x75   :  { %p658_p13 = pnand %p657_p12, %p651_p9 }
  0x77   :  { %661 = shalt.err (!%p658_p13)
}
  0x78   :  { %92 = dma.hbm_to_vmem [thread:$0]  %s886_s6, 16, %s90_s20, [#allocation12]  }
  0x79   :  { %684 = dma.done.wait [#allocation3], 256  }
  0x7a   :  { %685 = vsyncadd [#allocation3], 4294967040 }
  0x7b   :  { %686 = dma.done.wait [#allocation6], 32  }
  0x7c   :  { %687 = vsyncadd [#allocation6], 4294967264 }
  0x7d   :  { %688 = dma.done.wait [#allocation9], 528  }
  0x7e   :  { %689 = vsyncadd [#allocation9], 4294966768 }
  0x7f   :  { %690 = dma.done.wait [#allocation12], 2064  }
  0x80   :  { %691 = vsyncadd [#allocation12], 4294965232  ;;  %vm116_vm0 = vcmask 261120   ;;  %v837_v0 = vld [vmem:[#allocation2] sm:$0xff]  ;;  %v839_v1 = vld [vmem:[#allocation2 + $0x8] sm:$0xff]  ;;  %s703_s6 = smov [#allocation14]  }
  0x81   :  { %v117_v2 = vsel %vm116_vm0, %v837_v0, 0.0  ;;  %v120_v3 = vsel %vm116_vm0, %v839_v1, 0.0  ;;  %v162_v14 = vld [vmem:[#allocation8] sm:$0xff]  ;;  %v163_v15 = vld [vmem:[#allocation8 + $0x8] sm:$0xff]  ;;  %v164_v16 = vld [vmem:[#allocation8 + $0x10] sm:$0xff]  ;;  %s363_s14 = sshll.u32 %s703_s6, 4  ;;  %s364_s14 = int_to_ptr.vmem [resolvable:$true] %s363_s14 }
  0x82   :  { %118 = vadd.xlane.f32.xlu0 %v117_v2  ;;  %v454_v17 = vpack.c.bf16 %v163_v15, %v162_v14  ;;  %v165_v18 = vld [vmem:[#allocation8 + $0x18] sm:$0xff]  ;;  %v256_v20 = vld [vmem:[#allocation11] sm:$0xff]  ;;  %v257_v21 = vld [vmem:[#allocation11 + $0x8] sm:$0xff]  ;;  %s662_s15 = scalar_lea.vmem %s364_s14, 256  ;;  %p667_p1 = scmp.lt.s32.totalorder %s364_s14, %s364_s14 }
  0x83   :  { %v458_v19 = vpack.c.bf16 %v165_v18, %v164_v16  ;;  %v258_v22 = vld [vmem:[#allocation11 + $0x10] sm:$0xff]  ;;  %v462_v23 = vpack.c.bf16 %v257_v21, %v256_v20  ;;  %v259_v24 = vld [vmem:[#allocation11 + $0x18] sm:$0xff]  ;;  %v260_v26 = vld [vmem:[#allocation11 + $0x20] sm:$0xff]  ;;  %p663_p0 = scmp.ne.s32.totalorder %s364_s14, %s662_s15  ;;  %p668_p2 = scmp.lt.s32.totalorder %s662_s15, %s662_s15 }
  0x84   :  { %455 = vmatprep.subr.bf16.mxu0 %v454_v17  ;;  %v466_v25 = vpack.c.bf16 %v259_v24, %v258_v22  ;;  %v261_v27 = vld [vmem:[#allocation11 + $0x28] sm:$0xff]  ;;  %v262_v29 = vld [vmem:[#allocation11 + $0x30] sm:$0xff]  ;;  %v263_v30 = vld [vmem:[#allocation11 + $0x38] sm:$0xff] }
  0x85   :  { %457 = vmatpush3.bf16.msra.mxu0 %v454_v17  ;;  %463 = vmatprep.subr.bf16.mxu1 %v462_v23  ;;  %v470_v28 = vpack.c.bf16 %v261_v27, %v260_v26  ;;  %v474_v31 = vpack.c.bf16 %v263_v30, %v262_v29  ;;  %v264_v32 = vld [vmem:[#allocation11 + $0x40] sm:$0xff]  ;;  %v265_v33 = vld [vmem:[#allocation11 + $0x48] sm:$0xff]  ;;  %v266_v35 = vld [vmem:[#allocation11 + $0x50] sm:$0xff]  ;;  %p669_p3 = por %p668_p2, %p667_p1 }
  0x86   :  { %121 = vadd.xlane.f32.xlu0 %v120_v3  ;;  %459 = vmatprep.subr.bf16.mxu0 %v458_v19  ;;  %v478_v34 = vpack.c.bf16 %v265_v33, %v264_v32  ;;  %v267_v36 = vld [vmem:[#allocation11 + $0x58] sm:$0xff]  ;;  %v268_v38 = vld [vmem:[#allocation11 + $0x60] sm:$0xff]  ;;  %v269_v39 = vld [vmem:[#allocation11 + $0x68] sm:$0xff] }
  0x87   :  { %465 = vmatpush3.bf16.msra.mxu1 %v462_v23  ;;  %v482_v37 = vpack.c.bf16 %v267_v36, %v266_v35  ;;  %v486_v40 = vpack.c.bf16 %v269_v39, %v268_v38  ;;  %v378_v48 = vld [vmem:[#allocation5] ss:$0 sm:$0xff]  ;;  %v379_v50 = vld [vmem:[#allocation7] ss:$0 sm:$0xff]  ;;  %v270_v57 = vld [vmem:[#allocation11 + $0x70] sm:$0xff]  ;;  %p670_p4 = pnand %p669_p3, %p663_p0 }
  0x88   :  { %467 = vmatprep.subr.bf16.mxu1 %v466_v25  ;;  %v271_v58 = vld [vmem:[#allocation11 + $0x78] sm:$0xff] }
  0x89   :  { %461 = vmatpush3.bf16.msra.mxu0 %v458_v19  ;;  %v490_v59 = vpack.c.bf16 %v271_v58, %v270_v57  ;;  %v380_v60 = vld [vmem:[#allocation10] ss:$0 sm:$0xff] }
  0x8b   :  { %469 = vmatpush3.bf16.msra.mxu1 %v466_v25 }
  0x8c   :  { %471 = vmatprep.subr.bf16.mxu1 %v470_v28 }
  0x8f   :  { %473 = vmatpush3.bf16.msra.mxu1 %v470_v28 }
  0x90   :  { %475 = vmatprep.subr.bf16.mxu1 %v474_v31 }
  0x93   :  { %477 = vmatpush3.bf16.msra.mxu1 %v474_v31 }
  0x94   :  { %479 = vmatprep.subr.bf16.mxu1 %v478_v34 }
  0x97   :  { %481 = vmatpush3.bf16.msra.mxu1 %v478_v34 }
  0x98   :  { %483 = vmatprep.subr.bf16.mxu1 %v482_v37 }
  0x9b   :  { %485 = vmatpush3.bf16.msra.mxu1 %v482_v37 }
  0x9c   :  { %487 = vmatprep.subr.bf16.mxu1 %v486_v40 }
  0x9f   :  { %489 = vmatpush3.bf16.msra.mxu1 %v486_v40 }
  0xa0   :  { %491 = vmatprep.subr.bf16.mxu1 %v490_v59 }
  0xa3   :  { %493 = vmatpush3.bf16.msra.mxu1 %v490_v59 }
 0x10f   :  { %v119_v4 = vpop.xlane.xlu0 %118 }
 0x110   :  { %v124_v5 = vmul.f32 0.03125, %v119_v4 }
 0x112   :  { %v846_v6 = vsub.f32 %v837_v0, %v124_v5  ;;  %v383_v5 = vld [vmem:[#allocation13] ss:$0 sm:$0xff] }
 0x113   :  { %v122_v7 = vpop.xlane.xlu0 %121 }
 0x114   :  { %v125_v8 = vmul.f32 0.03125, %v122_v7  ;;  %v128_v9 = vmul.f32 %v846_v6, %v846_v6 }
 0x116   :  { %v851_v10 = vsub.f32 %v839_v1, %v125_v8  ;;  %v130_v11 = vsel %vm116_vm0, %v128_v9, 0.0 }
 0x117   :  { %131 = vadd.xlane.f32.xlu1 %v130_v11 }
 0x118   :  { %v129_v12 = vmul.f32 %v851_v10, %v851_v10 }
 0x11a   :  { %v133_v13 = vsel %vm116_vm0, %v129_v12, 0.0 }
 0x11b   :  { %134 = vadd.xlane.f32.xlu1 %v133_v13 }
 0x1a4   :  { %v132_v41 = vpop.xlane.xlu1 %131 }
 0x1a5   :  { %v136_v42 = vmul.f32 0.03125, %v132_v41 }
 0x1a7   :  { %v138_v43 = vadd.f32 1e-05, %v136_v42 }
 0x1a8   :  { %v135_v44 = vpop.xlane.xlu1 %134 }
 0x1a9   :  { %504 = vrsqrt.f32 %v138_v43  ;;  %v137_v45 = vmul.f32 0.03125, %v135_v44 }
 0x1ab   :  { %v139_v46 = vadd.f32 1e-05, %v137_v45 }
 0x1ad   :  { %506 = vrsqrt.f32 %v139_v46 }
 0x1b3   :  { %v505_v47 = vpop.eup %504 }
 0x1b4   :  { %v142_v49 = vmul.f32 %v505_v47, %v846_v6 }
 0x1b6   :  { %v151_v51 = vmul.f32 %v378_v48, %v142_v49 }
 0x1b7   :  { %v507_v52 = vpop.eup %506 }
 0x1b8   :  { %v143_v53 = vmul.f32 %v507_v52, %v851_v10  ;;  %v160_v54 = vadd.f32 %v379_v50, %v151_v51 }
 0x1ba   :  { %v152_v55 = vmul.f32 %v378_v48, %v143_v53  ;;  %416 = vmatprep.mubr.msk.f32.mxu0 %vm116_vm0, %v160_v54 }
 0x1bc   :  { %v161_v56 = vadd.f32 %v379_v50, %v152_v55 }
 0x1be   :  { %417 = vmatmul.mubr.msk.f32.vlgmr.msra.gmra.mrb[0].mxu0 %vm116_vm0, %v161_v56 }
 0x291   :  { %v418_v61 = vpop.f32.mrb[0].mxu0 }
 0x292   :  { %v251_v62 = vadd.f32 %v418_v61, %v380_v60  ;;  %v245_v63 = vpop.f32.mrb[1].mxu0 }
 0x293   :  { %v246_v2 = vadd.f32 %v380_v60, %v245_v63 }
 0x294   :  { %v255_v4 = vmax.f32 %v251_v62, 0.0 }
 0x295   :  { %v254_v3 = vmax.f32 %v246_v2, 0.0 }
 0x297   :  { %451 = vmatprep.mubr.f32.mxu1 %v254_v3 }
 0x298   :  { %452 = vmatmul.mubr.f32.vlgmr.msra.gmra.mrb[0].mxu1 %v255_v4 }
 0x36b   :  { %v453_v6 = vpop.f32.mrb[0].mxu1 }
 0x36c   :  { %v351_v7 = vadd.f32 %v453_v6, %v383_v5  ;;  %v345_v8 = vpop.f32.mrb[1].mxu1 }
 0x36d   :  { %v346_v9 = vadd.f32 %v383_v5, %v345_v8 }
 0x36e   :  { %v355_v10 = vadd.f32 %v351_v7, %v839_v1 }
 0x36f   :  { %v354_v11 = vadd.f32 %v346_v9, %v837_v0 }
 0x370   :  { %357 = vst.msk [vmem:[#allocation14 + $0x8] sm:$0xff] %vm116_vm0, %v355_v10 }
 0x371   :  { %356 = vst.msk [vmem:[#allocation14] sm:$0xff] %vm116_vm0, %v354_v11 }
 0x372   :  { %673 = shalt.err (!%p670_p4)
}
 0x373   :  { %s674_s20 = scalar_lea.hbm %s887_s7, 256 }
 0x374   :  { %p675_p5 = scmp.ne.s32.totalorder %s887_s7, %s674_s20  ;;  %p678_p6 = scmp.lt.u32.totalorder %s674_s20, %s887_s7 }
 0x376   :  { %p680_p7 = pnand %p678_p6, %p675_p5 }
 0x378   :  { %683 = shalt.err (!%p680_p7)
}
 0x379   :  { %369 = dma.vmem_to_hbm [thread:$0]  %s364_s14, 256, %s887_s7, [#allocation4], %s697_s25, %s697_s25, %s698_s26  }
 0x37a   :  { %692 = dma.done.wait [#allocation4], 256  }
 0x37b   :  { %693 = vsyncadd [#allocation4], 4294967040 }
 0x37c   :  { %373 = vsyncpa [#allocation3], 1 }
 0x37d   :  { %374 = vsyncpa [#allocation6], 1 }
 0x37e   :  { %375 = vsyncpa [#allocation9], 1 }
 0x37f   :  { %376 = vsyncpa [#allocation12], 1 }
 0x380   :  { %377 = vsyncpa [#allocation4], 1 }

// kernel: decoder_layer.10
= control target key start
LH: loop header
LB: loop body
LE: loop exit
PB: predicated region body
PF: predicated region fallthrough
CT: control target
= control target key end

     0   :  { %s2715_s0 = inlined_call_operand.hbm [shape: f32[2,8,32], index: 0, kind: input, shape index: {}]   ;;  %s2716_s1 = inlined_call_operand.hbm [shape: f32[2,8,64], index: 1, kind: input, shape index: {}]   ;;  %s2717_s2 = inlined_call_operand.hbm [shape: f32[2,8,8], index: 2, kind: input, shape index: {}]   ;;  %s2718_s3 = inlined_call_operand.hbm [shape: f32[32,32], index: 3, kind: input, shape index: {}]   ;;  %s2719_s4 = inlined_call_operand.hbm [shape: f32[1,32], index: 4, kind: input, shape index: {}]   ;;  %s2720_s5 = inlined_call_operand.hbm [shape: f32[2,8,32], index: 5, kind: input, shape index: {}]   ;;  %s2721_s6 = inlined_call_operand.hbm [shape: f32[2,8,32], index: 6, kind: output, shape index: {0}]   ;;  %s2722_s7 = inlined_call_operand.hbm [shape: f32[2,4,8,8], index: 7, kind: output, shape index: {1}]  }
   0x1   :  { %2738 = sst [smem:[#allocation26_spill]] %s2716_s1 }
   0x2   :  { %2739 = sst [smem:[#allocation27_spill]] %s2718_s3 }
   0x3   :  { %13 = vsyncpa [#allocation3], 0 }
   0x4   :  { %15 = vsyncpa [#allocation3 + $0x1], 0 }
   0x5   :  { %16 = vsyncpa [#allocation6], 0 }
   0x6   :  { %18 = vsyncpa [#allocation6 + $0x1], 0 }
   0x7   :  { %19 = vsyncpa [#allocation9], 0 }
   0x8   :  { %20 = vsyncpa [#allocation12], 0 }
   0x9   :  { %22 = vsyncpa [#allocation12 + $0x1], 0 }
   0xa   :  { %23 = vsyncpa [#allocation4], 0 }
   0xb   :  { %25 = vsyncpa [#allocation4 + $0x1], 0 }
   0xc   :  { %26 = vsyncpa [#allocation15], 0 }
   0xd   :  { %28 = vsyncpa [#allocation15 + $0x1], 0  ;;  %s2253_s24 = smov 0   ;;  %s2255_s25 = smov 0  }
   0xe   :  { %s2257_s26 = smov 0   ;;  %s2259_s27 = smov 0  }
   0xf LB: > { %2740 = sst [smem:[#allocation22_spill]] %s2186_s26  ;;  %s2274_s28 = sadd.s32 4294967295, %s2190_s27   ;;  %s2190_s27 = sphi %s2259_s27, %s2769_s27   ;;  %s2186_s26 = sphi %s2257_s26, %s2771_s26   ;;  %s2182_s25 = sphi %s2255_s25, %s2773_s25   ;;  %s2178_s24 = sphi %s2253_s24, %s2772_s24  }
  0x10   : > { %2741 = sst [smem:[#allocation23_spill]] %s2190_s27  ;;  %s1647_s29 = sadd.s32 4294967294, %s2190_s27  }
  0x11   : > { %p54_p0 = scmp.ne.s32.totalorder %s2182_s25, %s2178_s24  ;;  %p2723_p1 = scmp.eq.s32.totalorder %s2274_s28, 0 }
  0x12   : > { %p204_p3 = scmp.eq.s32.totalorder %s1647_s29, 1  ;;  %p1648_p5 = scmp.ge.s32.totalorder %s2190_s27, 1 }
  0x13   : > { %p2283_p4 = por %p2723_p1, %p54_p0  ;;  %p237_p7 = scmp.lt.s32.totalorder %s2190_s27, 3 }
  0x14   : > { %p2288_p6 = por %p204_p3, %p54_p0  ;;  %s2192_s10 = smov [#allocation8]  }
  0x15   : > { %s2742_s30 = scalar_select %p2283_p4, 1, 0 }
  0x16   : > { %s2743_s8 = scalar_select %p2288_p6, 1, 0 }
  0x17   : > { %p2293_p8 = pnand %p1648_p5, %p237_p7  ;;  %s249_s11 = sshll.u32 %s2192_s10, 4  ;;  %s2297_s11 = int_to_ptr.vmem [resolvable:$true] %s249_s11 }
  0x18   : > { %s2309_s13 = sadd.s32 1, %s2190_s27   ;;  %s41_s14 = sadd.s32 1, %s2186_s26 }
  0x19   : > { %s2744_s9 = scalar_select %p2293_p8, 1, 0 }
  0x1a   : > { %p1808_p9 = pneg %p2293_p8  ;;  %2746 = sst [smem:[#allocation24_spill]] %s2309_s13 }
  0x1b   : > { %s38_s15 = ssub.s32 %s2190_s27, %s2309_s13  ;;  %s2747_s3 = sld [smem:[#allocation27_spill]] }
  0x1c   : > { %p2304_p11 = pnand %p1808_p9, %p2723_p1 }
  0x1e   : > { %s2745_s12 = scalar_select %p2304_p11, 1, 0 }
  0x1f   : > { %p2727_p13 = pneg %p2304_p11 }
  0x21   : > { %s1904_s18 = scalar_lea.hbm %s2747_s3, 512 }
  0x22   : > { %p1905_p12 = scmp.ne.s32.totalorder %s2747_s3, %s1904_s18  ;;  %p1911_p5 = scmp.lt.u32.totalorder %s1904_s18, %s2747_s3 }
  0x24   : > { %p1907_p0 = pnand %p2727_p13, %p1905_p12 }
  0x26   : > { %p1908_p3 = pneg %p1907_p0 }
  0x28   : > { %p1913_p7 = pnand %p1911_p5, %p1908_p3 }
  0x2a   : > { %1916 = shalt.err (!%p1913_p7)
}
  0x2b   : > { %s1917_s23 = scalar_lea.vmem %s2297_s11, 512  ;;  %p1925_p2 = scmp.lt.s32.totalorder %s2297_s11, %s2297_s11 }
  0x2c   : > { %p1918_p9 = scmp.ne.s32.totalorder %s2297_s11, %s1917_s23  ;;  %p1926_p12 = scmp.lt.s32.totalorder %s1917_s23, %s1917_s23 }
  0x2e   : > { %p1920_p10 = pnand %p1918_p9, %p2727_p13  ;;  %p1927_p0 = por %p1926_p12, %p1925_p2 }
  0x30   : > { %p1921_p1 = pneg %p1920_p10 }
  0x32   : > { %p1928_p6 = pnand %p1927_p0, %p1921_p1 }
  0x34   : > { %1931 = shalt.err (!%p1928_p6)
}
  0x35   : > { %s2193_s29 = smov 128   ;;  %s2194_s10 = smov 8  }
  0x36   : > { %1811 = dma.hbm_to_vmem [thread:$0]  (!%p2304_p11), %s2747_s3, 512, %s2297_s11, [#allocation9], %s2193_s29, %s2193_s29, %s2194_s10  }
  0x37   : > { %p39_p1 = scmp.eq.s32.totalorder %s38_s15, 0  ;;  %p48_p2 = scmp.ne.s32.totalorder %s2186_s26, %s2182_s25 }
  0x38   : > { %p49_p6 = scmp.eq.s32.totalorder %s2190_s27, 0  ;;  %p1837_p10 = scmp.lt.s32.totalorder %s2190_s27, 2 }
  0x39   : > { %s2346_s18 = scalar_select %p39_p1, %s2186_s26, %s41_s14  }
  0x3a   : > { %p50_p3 = por %p49_p6, %p48_p2  ;;  %p2749_p5 = scmp.eq.s32.totalorder %s2274_s28, 1 }
  0x3b   : > { %2748 = sst [smem:[#allocation25_spill]] %s2346_s18  ;;  %s2355_s20 = sand.u32 1, %s2186_s26  }
  0x3c   : > { %p2350_p7 = por %p2749_p5, %p48_p2  ;;  %s2358_s21 = sshll.u32 %s2190_s27, 7 }
  0x3d   : > { %s2361_s22 = sshll.u32 %s2355_s20, 3  ;;  %p2363_p9 = pnand %p1837_p10, %p50_p3 }
  0x3e   : > { %s2750_s19 = scalar_select %p2350_p7, 1, 0 }
  0x3f   : > { %s2751_s11 = scalar_select %p2363_p9, 1, 0 }
  0x40   : > { %s292_s14 = sand.u32 1, %s2190_s27   ;;  %s2752_s1 = sld [smem:[#allocation26_spill]] }
  0x41   : > { %s296_s10 = scalar_lea.vmem [#allocation5], %s2361_s22  ;;  %s2377_s17 = scalar_lea.sflag [#allocation6], %s292_s14 }
  0x42   : > { %s303_s16 = sshll.u32 %s296_s10, 4  ;;  %p2383_p0 = pneg %p2363_p9  ;;  %s2375_s16 = int_to_ptr.vmem [resolvable:$true] %s303_s16 }
  0x44   : > { %s2753_s18 = scalar_select %p2383_p0, 1, 0 }
  0x46   : > { %s2372_s29 = scalar_lea.hbm %s2752_s1, %s2358_s21  ;;  %s1937_s26 = scalar_lea.hbm %s2752_s1, 256 }
  0x47   : > { %s1932_s3 = scalar_lea.hbm %s2372_s29, 128  ;;  %p1938_p6 = scmp.lt.u32.totalorder %s2372_s29, %s2752_s1 }
  0x48   : > { %p1933_p12 = scmp.ne.s32.totalorder %s2372_s29, %s1932_s3  ;;  %p1939_p10 = scmp.lt.u32.totalorder %s1937_s26, %s1932_s3 }
  0x49   : > { %p1941_p5 = scmp.lt.u32.totalorder %s1932_s3, %s2372_s29 }
  0x4a   : > { %p1935_p1 = pnand %p2383_p0, %p1933_p12  ;;  %p1940_p3 = por %p1939_p10, %p1938_p6 }
  0x4c   : > { %p1936_p2 = pneg %p1935_p1  ;;  %p1942_p13 = por %p1941_p5, %p1940_p3 }
  0x4e   : > { %p1943_p7 = pnand %p1942_p13, %p1936_p2 }
  0x50   : > { %1946 = shalt.err (!%p1943_p7)
}
  0x51   : > { %s1947_s14 = scalar_lea.vmem %s2375_s16, 128  ;;  %s2195_s15 = smov [#allocation5]  }
  0x52   : > { %p1948_p12 = scmp.ne.s32.totalorder %s2375_s16, %s1947_s14  ;;  %s1952_s23 = sshll.u32 %s2195_s15, 4  ;;  %s1953_s23 = int_to_ptr.vmem [resolvable:$false] %s1952_s23 }
  0x53   : > { %s1954_s13 = scalar_lea.vmem %s1953_s23, 256  ;;  %p1955_p8 = scmp.lt.s32.totalorder %s2375_s16, %s1953_s23 }
  0x54   : > { %p1950_p1 = pnand %p1948_p12, %p2383_p0  ;;  %p1956_p11 = scmp.lt.s32.totalorder %s1954_s13, %s1947_s14 }
  0x56   : > { %p1951_p4 = pneg %p1950_p1  ;;  %p1957_p6 = por %p1956_p11, %p1955_p8 }
  0x58   : > { %p1958_p10 = pnand %p1957_p6, %p1951_p4 }
  0x5a   : > { %1961 = shalt.err (!%p1958_p10)
}
  0x5b   : > { %1821 = dma.hbm_to_vmem [thread:$0]  (!%p2363_p9), %s2372_s29, 128, %s2375_s16, %s2377_s17  }
  0x5c   : > { %s2196_s3 = smov [#allocation10]   ;;  %s1962_s15 = scalar_lea.hbm %s2719_s4, 16 }
  0x5d   : > { %s263_s26 = sshll.u32 %s2196_s3, 4  ;;  %p1963_p8 = scmp.ne.s32.totalorder %s2719_s4, %s1962_s15  ;;  %s264_s26 = int_to_ptr.vmem [resolvable:$true] %s263_s26 }
  0x5e   : > { %p2754_p4 = scmp.ne.s32.totalorder %s2745_s12, 0  ;;  %p1969_p2 = scmp.lt.u32.totalorder %s1962_s15, %s2719_s4 }
  0x60   : > { %p2755_p11 = pneg %p2754_p4 }
  0x62   : > { %p1965_p13 = pnand %p1963_p8, %p2755_p11 }
  0x64   : > { %p1966_p7 = pneg %p1965_p13 }
  0x66   : > { %p1971_p3 = pnand %p1969_p2, %p1966_p7 }
  0x68   : > { %1974 = shalt.err (!%p1971_p3)
}
  0x69   : > { %s1975_s29 = scalar_lea.vmem %s264_s26, 16  ;;  %p2756_p12 = pmov %p2755_p11 }
  0x6a   : > { %p1976_p5 = scmp.ne.s32.totalorder %s264_s26, %s1975_s29  ;;  %s1982_s1 = scalar_lea.vmem %s264_s26, 32 }
  0x6b   : > { %p1983_p10 = scmp.lt.s32.totalorder %s264_s26, %s264_s26  ;;  %p1984_p9 = scmp.lt.s32.totalorder %s1982_s1, %s1975_s29 }
  0x6c   : > { %p1978_p1 = pnand %p1976_p5, %p2756_p12 }
  0x6d   : > { %p1985_p0 = por %p1984_p9, %p1983_p10 }
  0x6e   : > { %p1979_p6 = pneg %p1978_p1 }
  0x70   : > { %p1986_p8 = pnand %p1985_p0, %p1979_p6 }
  0x72   : > { %1989 = shalt.err (!%p1986_p8)
}
  0x73   : > { %1814 = dma.hbm_to_vmem [thread:$0]  (!%p2754_p4), %s2719_s4, 16, %s264_s26, [#allocation9]  }
  0x74   : > { %s2431_s15 = scalar_lea.hbm %s2715_s0, %s2358_s21  ;;  %s278_s23 = scalar_lea.vmem [#allocation2], %s2361_s22 }
  0x75   : > { %s285_s14 = sshll.u32 %s278_s23, 4  ;;  %s275_s12 = scalar_lea.sflag [#allocation3], %s2355_s20  ;;  %s286_s14 = int_to_ptr.vmem [resolvable:$true] %s285_s14 }
  0x76   : > { %s1990_s13 = scalar_lea.hbm %s2431_s15, 128  ;;  %p2757_p0 = scmp.ne.s32.totalorder %s2753_s18, 0 }
  0x77   : > { %p1991_p9 = scmp.ne.s32.totalorder %s2431_s15, %s1990_s13  ;;  %s1995_s1 = scalar_lea.hbm %s2715_s0, 256 }
  0x78   : > { %p1996_p4 = scmp.lt.u32.totalorder %s2431_s15, %s2715_s0  ;;  %p1997_p7 = scmp.lt.u32.totalorder %s1995_s1, %s1990_s13 }
  0x79   : > { %p1993_p11 = pnand %p1991_p9, %p2757_p0  ;;  %p1999_p3 = scmp.lt.u32.totalorder %s1990_s13, %s2431_s15 }
  0x7a   : > { %p1998_p2 = por %p1997_p7, %p1996_p4 }
  0x7b   : > { %p1994_p13 = pneg %p1993_p11 }
  0x7c   : > { %p2000_p5 = por %p1999_p3, %p1998_p2 }
  0x7e   : > { %p2001_p12 = pnand %p2000_p5, %p1994_p13 }
  0x80   : > { %2004 = shalt.err (!%p2001_p12)
}
  0x81   : > { %s2005_s3 = scalar_lea.vmem %s286_s14, 128  ;;  %s2197_s10 = smov [#allocation2]  }
  0x82   : > { %p2006_p1 = scmp.ne.s32.totalorder %s286_s14, %s2005_s3  ;;  %s2010_s23 = sshll.u32 %s2197_s10, 4  ;;  %s2011_s23 = int_to_ptr.vmem [resolvable:$false] %s2010_s23 }
  0x83   : > { %s2012_s29 = scalar_lea.vmem %s2011_s23, 256  ;;  %p2013_p8 = scmp.lt.s32.totalorder %s286_s14, %s2011_s23 }
  0x84   : > { %p2008_p6 = pnand %p2006_p1, %p2757_p0  ;;  %p2014_p9 = scmp.lt.s32.totalorder %s2012_s29, %s2005_s3 }
  0x86   : > { %p2009_p10 = pneg %p2008_p6  ;;  %p2015_p11 = por %p2014_p9, %p2013_p8 }
  0x88   : > { %p2016_p4 = pnand %p2015_p11, %p2009_p10 }
  0x8a   : > { %2019 = shalt.err (!%p2016_p4)
}
  0x8b   : > { %p2758_p7 = scmp.ne.s32.totalorder %s2751_s11, 0  ;;  %s2456_s1 = scalar_lea.hbm %s2717_s2, %s2358_s21 }
  0x8c   : > { %s314_s27 = scalar_lea.vmem [#allocation7], %s2361_s22  ;;  %s2020_s3 = scalar_lea.hbm %s2456_s1, 128 }
  0x8d   : > { %1818 = dma.hbm_to_vmem [thread:$0]  (!%p2758_p7), %s2431_s15, 128, %s286_s14, %s275_s12  }
  0x8e   : > { %s321_s16 = sshll.u32 %s314_s27, 4  ;;  %p2021_p13 = scmp.ne.s32.totalorder %s2456_s1, %s2020_s3  ;;  %s322_s16 = int_to_ptr.vmem [resolvable:$true] %s321_s16 }
  0x8f   : > { %s2025_s15 = scalar_lea.hbm %s2717_s2, 256  ;;  %p2026_p5 = scmp.lt.u32.totalorder %s2456_s1, %s2717_s2 }
  0x90   : > { %p2023_p2 = pnand %p2021_p13, %p2757_p0  ;;  %p2027_p12 = scmp.lt.u32.totalorder %s2025_s15, %s2020_s3 }
  0x91   : > { %p2029_p6 = scmp.lt.u32.totalorder %s2020_s3, %s2456_s1 }
  0x92   : > { %p2024_p3 = pneg %p2023_p2  ;;  %p2028_p1 = por %p2027_p12, %p2026_p5 }
  0x94   : > { %p2030_p10 = por %p2029_p6, %p2028_p1 }
  0x96   : > { %p2031_p8 = pnand %p2030_p10, %p2024_p3 }
  0x98   : > { %2034 = shalt.err (!%p2031_p8)
}
  0x99   : > { %s2035_s29 = scalar_lea.vmem %s322_s16, 128  ;;  %s2198_s13 = smov [#allocation7]  }
  0x9a   : > { %p2036_p9 = scmp.ne.s32.totalorder %s322_s16, %s2035_s29  ;;  %s2040_s26 = sshll.u32 %s2198_s13, 4  ;;  %s2041_s26 = int_to_ptr.vmem [resolvable:$false] %s2040_s26 }
  0x9b   : > { %s2042_s27 = scalar_lea.vmem %s2041_s26, 256  ;;  %p2043_p13 = scmp.lt.s32.totalorder %s322_s16, %s2041_s26 }
  0x9c   : > { %p2038_p11 = pnand %p2036_p9, %p2757_p0  ;;  %p2044_p2 = scmp.lt.s32.totalorder %s2042_s27, %s2035_s29 }
  0x9e   : > { %p2039_p4 = pneg %p2038_p11  ;;  %p2045_p7 = por %p2044_p2, %p2043_p13 }
  0xa0   : > { %p2046_p5 = pnand %p2045_p7, %p2039_p4 }
  0xa2   : > { %2049 = shalt.err (!%p2046_p5)
}
  0xa3   : > { %p2759_p12 = scmp.ne.s32.totalorder %s2751_s11, 0  ;;  %s2481_s23 = scalar_lea.hbm %s2720_s5, %s2358_s21 }
  0xa4   : > { %s332_s15 = scalar_lea.vmem [#allocation11], %s2361_s22  ;;  %s329_s12 = scalar_lea.sflag [#allocation12], %s2355_s20 }
  0xa5   : > { %1824 = dma.hbm_to_vmem [thread:$0]  (!%p2759_p12), %s2456_s1, 128, %s322_s16, %s2377_s17  }
  0xa6   : > { %s339_s14 = sshll.u32 %s332_s15, 4  ;;  %s2050_s29 = scalar_lea.hbm %s2481_s23, 128  ;;  %s340_s14 = int_to_ptr.vmem [resolvable:$true] %s339_s14 }
  0xa7   : > { %p2051_p7 = scmp.ne.s32.totalorder %s2481_s23, %s2050_s29  ;;  %s2055_s1 = scalar_lea.hbm %s2720_s5, 256 }
  0xa8   : > { %p2056_p6 = scmp.lt.u32.totalorder %s2481_s23, %s2720_s5  ;;  %p2057_p10 = scmp.lt.u32.totalorder %s2055_s1, %s2050_s29 }
  0xa9   : > { %p2053_p3 = pnand %p2051_p7, %p2757_p0  ;;  %p2059_p9 = scmp.lt.u32.totalorder %s2050_s29, %s2481_s23 }
  0xaa   : > { %p2058_p8 = por %p2057_p10, %p2056_p6 }
  0xab   : > { %p2054_p1 = pneg %p2053_p3 }
  0xac   : > { %p2060_p11 = por %p2059_p9, %p2058_p8 }
  0xae   : > { %p2061_p4 = pnand %p2060_p11, %p2054_p1 }
  0xb0   : > { %2064 = shalt.err (!%p2061_p4)
}
  0xb1   : > { %s2065_s20 = scalar_lea.vmem %s340_s14, 128  ;;  %s2199_s22 = smov [#allocation11]  }
  0xb2   : > { %p2066_p13 = scmp.ne.s32.totalorder %s340_s14, %s2065_s20  ;;  %s2070_s26 = sshll.u32 %s2199_s22, 4  ;;  %s2071_s26 = int_to_ptr.vmem [resolvable:$false] %s2070_s26 }
  0xb3   : > { %s2072_s27 = scalar_lea.vmem %s2071_s26, 256  ;;  %p2073_p7 = scmp.lt.s32.totalorder %s340_s14, %s2071_s26 }
  0xb4   : > { %p2068_p2 = pnand %p2066_p13, %p2757_p0  ;;  %p2074_p3 = scmp.lt.s32.totalorder %s2072_s27, %s2065_s20 }
  0xb6   : > { %p2069_p5 = pneg %p2068_p2  ;;  %p2075_p12 = por %p2074_p3, %p2073_p7 }
  0xb8   : > { %p2076_p6 = pnand %p2075_p12, %p2069_p5 }
  0xba   : > { %2079 = shalt.err (!%p2076_p6)
}
  0xbb   : > { %p2760_p10 = scmp.ne.s32.totalorder %s2751_s11, 0  ;;  %p2761_p1 = scmp.ne.s32.totalorder %s2744_s9, 0 }
  0xbc   : > { %s2505_s18 = sand.u32 (!%p2761_p1), 1, %s2182_s25   ;;  %p2762_p0 = scmp.ne.s32.totalorder (!%p2761_p1), %s2742_s30, 0 }
  0xbd   : > { %1827 = dma.hbm_to_vmem [thread:$0]  (!%p2760_p10), %s2481_s23, 128, %s340_s14, %s329_s12  }
  0xbe   : > { %348 = sbr.rel (%p2761_p1) target bundleno = 2246 (0x8c6), region = 44  ;;  %s2508_s3 = sshll.u32 (!%p2761_p1), %s2505_s18, 3 }
  0xbf   : > { %s351_s10 = scalar_lea.sflag (!%p2761_p1), [#allocation3], %s2505_s18  ;;  %s354_s15 = scalar_lea.vmem (!%p2761_p1), [#allocation2], %s2508_s3 }
  0xc5   : > { %2153 = dma.done.wait (%p2762_p0), %s351_s10, 128  }
  0xc6   : > { %2155 = vsyncadd (%p2762_p0), %s351_s10, 4294967168  ;;  %s359_s9 = sand.u32 1, %s2274_s28   ;;  %s363_s23 = scalar_lea.vmem [#allocation5], %s2508_s3 }
  0xc7   : > { %s360_s11 = scalar_lea.sflag [#allocation6], %s359_s9 }
  0xc8   : > { %2157 = dma.done.wait (%p2762_p0), %s360_s11, 256  }
  0xc9   : > { %2159 = vsyncadd (%p2762_p0), %s360_s11, 4294967040  ;;  %s372_s14 = scalar_lea.vmem [#allocation7], %s2508_s3  ;;  %p2763_p12 = scmp.eq.s32.totalorder %s2274_s28, 0 }
  0xcb   : > { %2161 = dma.done.wait (%p2763_p12), [#allocation9], 528   ;;  %p2764_p8 = pmov %p2763_p12 }
  0xcc   : > { %s386_s12 = scalar_lea.sflag [#allocation12], %s2505_s18  ;;  %s389_s29 = scalar_lea.vmem [#allocation11], %s2508_s3 }
  0xcd   : > { %2163 = vsyncadd (%p2764_p8), [#allocation9], 4294966768 }
  0xce   : > { %2165 = dma.done.wait (%p2762_p0), %s386_s12, 128  }
  0xcf   : > { %2167 = vsyncadd (%p2762_p0), %s386_s12, 4294967168  ;;  %v2200_v0 = vmov 0.0   ;;  %vm2201_vm0 = vmmov 0   ;;  %vm457_vm1 = vcmask 64512   ;;  %v2539_v1 = vld [vmem:[%s363_s23] sm:$0xff]  ;;  %v2543_v2 = vld [vmem:[%s354_s15] sm:$0xff] }
  0xd0   : > { %1721 = vmatprep.subr.mxu0 %v2200_v0  ;;  %1723 = vmatprep.mubr.msk.f32.mxu0 %vm2201_vm0, %v2200_v0  ;;  %v2550_v3 = vld [vmem:[%s372_s14] sm:$0xff]  ;;  %s2202_s30 = smov 96   ;;  %s2203_s13 = smov 120   ;;  %v444_v21 = vld [vmem:[#allocation8] sm:$0xff]  ;;  %v445_v52 = vld [vmem:[#allocation8 + $0x8] sm:$0xff] }
  0xd1   : > { %1731 = vmatprep.subr.mxu1 %v2200_v0  ;;  %1733 = vmatprep.mubr.msk.f32.mxu1 %vm2201_vm0, %v2200_v0  ;;  %vm443_vm2 = vcmp.gt.f32.partialorder %v2550_v3, 0.0  ;;  %s2204_s17 = smov 112   ;;  %s1668_s1 = sshll.u32 %s2505_s18, 5  ;;  %v446_v59 = vld [vmem:[#allocation8 + $0x10] sm:$0xff] }
  0xd2   : > { %1722 = vmatpush3.xpose.msk.msra.mxu0 %vm457_vm1, %v2539_v1  ;;  %547 = vrot.lane.b32.xlu1 %v2539_v1, %s2202_s30  ;;  %s2564_s16 = scalar_lea.vmem [#allocation14], %s1668_s1  ;;  %s2205_s21 = smov 80  }
  0xd3   : > { %1726 = vmatprep.subr.mxu0 %v2200_v0  ;;  %1732 = vmatpush3.msra.mxu1 %v444_v21  ;;  %s2206_s20 = smov 104   ;;  %s2207_s22 = smov 88  }
  0xd4   : > { %1741 = vmatprep.subr.mxu1 %v2200_v0  ;;  %s2208_s26 = smov 72   ;;  %s1696_s27 = sshll.u32 %s2274_s28, 9 }
  0xd5   : > { %1724 = vmatmul.mubr.msk.f32.vlgmr.msra.gmra.mrb[0].mxu0 %vm457_vm1, %v2543_v2  ;;  %s1457_s10 = sshll.u32 %s2564_s16, 4  ;;  %s2636_s11 = scalar_lea.hbm %s2722_s7, %s1696_s27  ;;  %s2638_s10 = int_to_ptr.vmem [resolvable:$true] %s1457_s10 }
  0xd6   : > { %1728 = vmatprep.mubr.msk.f32.mxu0 %vm2201_vm0, %v2200_v0  ;;  %699 = vrot.lane.b32.xlu1 %v2539_v1, %s2203_s13  ;;  %s1431_s23 = scalar_lea.sflag [#allocation15], %s2505_s18  ;;  %s2080_s14 = scalar_lea.vmem %s2638_s10, 512 }
  0xd7   : > { %p2081_p9 = scmp.ne.s32.totalorder %s2638_s10, %s2080_s14  ;;  %p2765_p11 = scmp.ne.s32.totalorder %s2750_s19, 0 }
  0xd8   : > { %s2209_s12 = smov [#allocation14]  }
  0xd9   : > { %p2082_p4 = pnand %p2081_p9, %p2765_p11  ;;  %s2084_s30 = sshll.u32 %s2209_s12, 4  ;;  %s2085_s30 = int_to_ptr.vmem [resolvable:$false] %s2084_s30 }
  0xda   : > { %941 = vrot.lane.b32.xlu1 %v2539_v1, %s2204_s17  ;;  %p2087_p2 = scmp.lt.s32.totalorder %s2638_s10, %s2085_s30 }
  0xdb   : > { %p2083_p13 = pneg %p2082_p4 }
  0xde   : > { %939 = vrot.lane.b32.xlu1 %v2543_v2, %s2204_s17 }
 0x144   : > { %v548_v13 = vpop.permute.xlu1 %547 }
 0x145   : > { %1727 = vmatpush3.msra.mxu0 %v548_v13 }
 0x146   : > { %1736 = vmatprep.subr.mxu0 %v2200_v0 }
 0x148   : > { %v700_v15 = vpop.permute.xlu1 %699 }
 0x14c   : > { %v942_v18 = vpop.permute.xlu1 %941 }
 0x150   : > { %v940_v20 = vpop.permute.xlu1 %939 }
 0x1a8   : > { %v530_v4 = vpop.f32.mrb[0].mxu0 }
 0x1a9   : > { %v534_v5 = vsel %vm443_vm2, %v530_v4, -1e+09  ;;  %v1725_v6 = vpop.f32.mrb[1].mxu0 }
 0x1aa   : > { %v535_v7 = vsel %vm457_vm1, %v534_v5, -inf }
 0x1ab   : > { %536 = vmax.xlane.f32.xlu0 %v535_v7 }
 0x238   : > { %v537_v8 = vpop.xlane.xlu0 %536 }
 0x239   : > { %v538_v9 = vsub.f32 %v534_v5, %v537_v8 }
 0x23b   : > { %v539_v10 = vmul.f32 1.442695, %v538_v9  ;;  %v447_v9 = vld [vmem:[#allocation8 + $0x18] sm:$0xff] }
 0x23d   : > { %1888 = vpow2.f32 %v539_v10 }
 0x247   : > { %v1889_v11 = vpop.eup %1888 }
 0x248   : > { %v541_v12 = vsel %vm457_vm1, %v1889_v11, 0.0 }
 0x249   : > { %542 = vadd.xlane.f32.xlu0 %v541_v12 }
 0x25f   : > { %697 = vrot.lane.b32.xlu0 %v2543_v2, %s2203_s13  ;;  %s2086_s13 = scalar_lea.vmem %s2085_s30, 1024 }
 0x260   : > { %p2088_p5 = scmp.lt.s32.totalorder %s2086_s13, %s2080_s14 }
 0x262   : > { %p2089_p7 = por %p2088_p5, %p2087_p2 }
 0x264   : > { %p2090_p3 = pnand %p2089_p7, %p2083_p13 }
 0x2d6   : > { %v543_v14 = vpop.xlane.xlu0 %542 }
 0x2d7   : > { %1890 = vrcp.f32 %v543_v14 }
 0x2da   : > { %v698_v19 = vpop.permute.xlu0 %697 }
 0x2e1   : > { %v1891_v16 = vpop.eup %1890 }
 0x2e2   : > { %v545_v17 = vmul.f32 %v1891_v16, %v1889_v11 }
 0x2e4   : > { %546 = vst.msk [vmem:[%s2564_s16] sm:$0xff] %vm457_vm1, %v545_v17  ;;  %1729 = vmatmul.mubr.msk.f32.vlgmr.msra.gmra.mrb[2].mxu0 %vm457_vm1, %v545_v17 }
 0x2e5   : > { %1737 = vmatpush3.xpose.msk.msra.mxu0 %vm457_vm1, %v700_v15  ;;  %1738 = vmatprep.mubr.msk.f32.mxu0 %vm2201_vm0, %v2200_v0 }
 0x2e6   : > { %1751 = vmatprep.subr.mxu0 %v2200_v0 }
 0x2e8   : > { %1739 = vmatmul.mubr.msk.f32.vlgmr.msra.gmra.mrb[4].mxu0 %vm457_vm1, %v698_v19 }
 0x2e9   : > { %1752 = vmatpush3.xpose.msk.msra.mxu0 %vm457_vm1, %v942_v18  ;;  %1753 = vmatprep.mubr.msk.f32.mxu0 %vm2201_vm0, %v2200_v0 }
 0x2ea   : > { %1756 = vmatprep.subr.mxu0 %v2200_v0 }
 0x2ec   : > { %1754 = vmatmul.mubr.msk.f32.vlgmr.msra.gmra.mrb[6].mxu0 %vm457_vm1, %v940_v20 }
 0x2ed   : > { %1758 = vmatprep.mubr.msk.f32.mxu0 %vm2201_vm0, %v2200_v0 }
 0x3b7   : > { %v619_v22 = vpop.f32.mrb[2].mxu0 }
 0x3b8   : > { %v1730_v23 = vpop.f32.mrb[3].mxu0  ;;  %1734 = vmatmul.mubr.msk.f32.vlgmr.msra.gmra.mrb[0].mxu1 %vm457_vm1, %v619_v22 }
 0x3b9   : > { %1743 = vmatprep.mubr.msk.f32.mxu1 %vm2201_vm0, %v2200_v0 }
 0x3bb   : > { %v771_v24 = vpop.f32.mrb[4].mxu0 }
 0x3bc   : > { %v1740_v25 = vpop.f32.mrb[5].mxu0  ;;  %v775_v30 = vsel %vm443_vm2, %v771_v24, -1e+09 }
 0x3bd   : > { %v776_v31 = vsel %vm457_vm1, %v775_v30, -inf }
 0x3bf   : > { %v1013_v26 = vpop.f32.mrb[6].mxu0 }
 0x3c0   : > { %v1017_v27 = vsel %vm443_vm2, %v1013_v26, -1e+09  ;;  %v1755_v28 = vpop.f32.mrb[7].mxu0 }
 0x3c1   : > { %v1018_v29 = vsel %vm457_vm1, %v1017_v27, -inf }
 0x3c2   : > { %1019 = vmax.xlane.f32.xlu1 %v1018_v29 }
 0x3d3   : > { %1031 = vrot.lane.b32.xlu1 %v2539_v1, %s2205_s21 }
 0x3d7   : > { %1181 = vrot.lane.b32.xlu1 %v2543_v2, %s2206_s20 }
 0x3fb   : > { %777 = vmax.xlane.f32.xlu1 %v776_v31 }
 0x40c   : > { %789 = vrot.lane.b32.xlu1 %v2539_v1, %s2207_s22 }
 0x44f   : > { %v1020_v32 = vpop.xlane.xlu1 %1019 }
 0x450   : > { %v1021_v33 = vsub.f32 %v1017_v27, %v1020_v32 }
 0x452   : > { %v1022_v34 = vmul.f32 1.442695, %v1021_v33 }
 0x453   : > { %v1032_v35 = vpop.permute.xlu1 %1031 }
 0x454   : > { %1892 = vpow2.f32 %v1022_v34  ;;  %1757 = vmatpush3.msra.mxu0 %v1032_v35 }
 0x455   : > { %1766 = vmatprep.subr.mxu0 %v2200_v0 }
 0x457   : > { %v1182_v38 = vpop.permute.xlu1 %1181 }
 0x45e   : > { %v1893_v36 = vpop.eup %1892 }
 0x45f   : > { %v1024_v37 = vsel %vm457_vm1, %v1893_v36, 0.0 }
 0x460   : > { %1025 = vadd.xlane.f32.xlu0 %v1024_v37 }
 0x476   : > { %1183 = vrot.lane.b32.xlu0 %v2539_v1, %s2206_s20 }
 0x488   : > { %v778_v39 = vpop.xlane.xlu1 %777 }
 0x489   : > { %v779_v40 = vsub.f32 %v775_v30, %v778_v39 }
 0x48b   : > { %v780_v41 = vmul.f32 1.442695, %v779_v40 }
 0x48c   : > { %v790_v44 = vpop.permute.xlu1 %789 }
 0x48d   : > { %1894 = vpow2.f32 %v780_v41  ;;  %1742 = vmatpush3.msra.mxu1 %v790_v44 }
 0x48e   : > { %1746 = vmatprep.subr.mxu1 %v2200_v0 }
 0x497   : > { %v1895_v42 = vpop.eup %1894 }
 0x498   : > { %v782_v43 = vsel %vm457_vm1, %v1895_v42, 0.0 }
 0x499   : > { %783 = vadd.xlane.f32.xlu0 %v782_v43 }
 0x4ed   : > { %v1026_v45 = vpop.xlane.xlu0 %1025 }
 0x4ee   : > { %1896 = vrcp.f32 %v1026_v45 }
 0x4f1   : > { %v1184_v48 = vpop.permute.xlu0 %1183 }
 0x4f8   : > { %v1897_v46 = vpop.eup %1896 }
 0x4f9   : > { %v1028_v47 = vmul.f32 %v1897_v46, %v1893_v36 }
 0x4fb   : > { %1681 = vst.msk [vmem:[%s2564_s16 + $0x10] sm:$0xff] %vm457_vm1, %v1028_v47  ;;  %1759 = vmatmul.mubr.msk.f32.vlgmr.msra.gmra.mrb[8].mxu0 %vm457_vm1, %v1028_v47 }
 0x4fc   : > { %1767 = vmatpush3.xpose.msk.msra.mxu0 %vm457_vm1, %v1184_v48  ;;  %1768 = vmatprep.mubr.msk.f32.mxu0 %vm2201_vm0, %v2200_v0 }
 0x4ff   : > { %1769 = vmatmul.mubr.msk.f32.vlgmr.msra.gmra.mrb[10].mxu0 %vm457_vm1, %v1182_v38 }
 0x526   : > { %v784_v49 = vpop.xlane.xlu0 %783 }
 0x527   : > { %1898 = vrcp.f32 %v784_v49 }
 0x531   : > { %v1899_v50 = vpop.eup %1898 }
 0x532   : > { %v786_v51 = vmul.f32 %v1899_v50, %v1895_v42 }
 0x534   : > { %1676 = vst.msk [vmem:[%s2564_s16 + $0x8] sm:$0xff] %vm457_vm1, %v786_v51  ;;  %1744 = vmatmul.mubr.msk.f32.vlgmr.msra.gmra.mrb[2].mxu1 %vm457_vm1, %v786_v51 }
 0x535   : > { %1748 = vmatprep.mubr.msk.f32.mxu1 %vm2201_vm0, %v2200_v0  ;;  %1747 = vmatpush3.msra.mxu1 %v445_v52 }
 0x536   : > { %1761 = vmatprep.subr.mxu1 %v2200_v0 }
 0x5ce   : > { %v1103_v53 = vpop.f32.mrb[8].mxu0 }
 0x5cf   : > { %v1760_v54 = vpop.f32.mrb[9].mxu0 }
 0x5d2   : > { %v1255_v55 = vpop.f32.mrb[10].mxu0 }
 0x5d3   : > { %v1259_v56 = vsel %vm443_vm2, %v1255_v55, -1e+09  ;;  %v1770_v57 = vpop.f32.mrb[11].mxu0 }
 0x5d4   : > { %v1260_v58 = vsel %vm457_vm1, %v1259_v56, -inf }
 0x5d5   : > { %1261 = vmax.xlane.f32.xlu0 %v1260_v58 }
 0x607   : > { %v861_v60 = vpop.f32.mrb[2].mxu1 }
 0x608   : > { %v1745_v61 = vpop.f32.mrb[3].mxu1  ;;  %1749 = vmatmul.mubr.msk.f32.vlgmr.msra.gmra.mrb[0].mxu1 %vm457_vm1, %v861_v60 }
 0x609   : > { %1762 = vmatpush3.msra.mxu1 %v446_v59  ;;  %1763 = vmatprep.mubr.msk.f32.mxu1 %vm2201_vm0, %v2200_v0 }
 0x60a   : > { %1771 = vmatprep.subr.mxu1 %v2200_v0 }
 0x610   : > { %1764 = vmatmul.mubr.msk.f32.vlgmr.msra.gmra.mrb[0].mxu1 %vm457_vm1, %v1103_v53 }
 0x611   : > { %1773 = vmatprep.mubr.msk.f32.mxu1 %vm2201_vm0, %v2200_v0 }
 0x662   : > { %v1262_v62 = vpop.xlane.xlu0 %1261 }
 0x663   : > { %v1263_v63 = vsub.f32 %v1259_v56, %v1262_v62 }
 0x665   : > { %v1264_v2 = vmul.f32 1.442695, %v1263_v63 }
 0x667   : > { %1900 = vpow2.f32 %v1264_v2 }
 0x671   : > { %v1901_v3 = vpop.eup %1900 }
 0x672   : > { %v1266_v4 = vsel %vm457_vm1, %v1901_v3, 0.0 }
 0x673   : > { %1267 = vadd.xlane.f32.xlu0 %v1266_v4 }
 0x689   : > { %1273 = vrot.lane.b32.xlu0 %v2539_v1, %s2208_s26 }
 0x700   : > { %v1268_v5 = vpop.xlane.xlu0 %1267 }
 0x701   : > { %1902 = vrcp.f32 %v1268_v5 }
 0x704   : > { %v1274_v6 = vpop.permute.xlu0 %1273 }
 0x705   : > { %1772 = vmatpush3.msra.mxu1 %v1274_v6 }
 0x706   : > { %1776 = vmatprep.subr.mxu1 %v2200_v0 }
 0x70b   : > { %v1903_v7 = vpop.eup %1902 }
 0x70c   : > { %v1270_v8 = vmul.f32 %v1903_v7, %v1901_v3 }
 0x70e   : > { %1686 = vst.msk [vmem:[%s2564_s16 + $0x18] sm:$0xff] %vm457_vm1, %v1270_v8  ;;  %1774 = vmatmul.mubr.msk.f32.vlgmr.msra.gmra.mrb[4].mxu1 %vm457_vm1, %v1270_v8 }
 0x70f   : > { %1777 = vmatpush3.msra.mxu1 %v447_v9  ;;  %1778 = vmatprep.mubr.msk.f32.mxu1 %vm2201_vm0, %v2200_v0 }
 0x7e1   : > { %v1345_v1 = vpop.f32.mrb[4].mxu1 }
 0x7e2   : > { %v1775_v10 = vpop.f32.mrb[5].mxu1  ;;  %1779 = vmatmul.mubr.msk.f32.vlgmr.msra.gmra.mrb[0].mxu1 %vm457_vm1, %v1345_v1 }
 0x7e3   : > { %2093 = shalt.err (!%p2090_p3)
}
 0x7e4   : > { %s2094_s17 = scalar_lea.hbm %s2636_s11, 512  ;;  %s2098_s21 = scalar_lea.hbm %s2722_s7, 1024 }
 0x7e5   : > { %p2095_p6 = scmp.ne.s32.totalorder %s2636_s11, %s2094_s17  ;;  %p2099_p0 = scmp.lt.u32.totalorder %s2636_s11, %s2722_s7 }
 0x7e6   : > { %p2100_p12 = scmp.lt.u32.totalorder %s2098_s21, %s2094_s17  ;;  %p2102_p9 = scmp.lt.u32.totalorder %s2094_s17, %s2636_s11 }
 0x7e7   : > { %p2096_p10 = pnand %p2095_p6, %p2765_p11 }
 0x7e8   : > { %p2101_p8 = por %p2100_p12, %p2099_p0 }
 0x7e9   : > { %p2097_p1 = pneg %p2096_p10 }
 0x7ea   : > { %p2103_p4 = por %p2102_p9, %p2101_p8 }
 0x7ec   : > { %p2104_p13 = pnand %p2103_p4, %p2097_p1 }
 0x7ee   : > { %2107 = shalt.err (!%p2104_p13)
}
 0x7ef   : > { %s2210_s26 = smov 128   ;;  %s2211_s27 = smov 8   ;;  %v448_v0 = vld [vmem:[%s389_s29] sm:$0xff]  ;;  %v1669_v11 = vld [vmem:[#allocation10] ss:$0 sm:$0xff]  ;;  %vm1423_vm3 = vcmask 261120  }
 0x7f0   : > { %1805 = dma.vmem_to_hbm [thread:$0]  (%p2765_p11), %s2638_s10, 512, %s2636_s11, %s1431_s23, %s2210_s26, %s2210_s26, %s2211_s27   ;;  %v456_v12 = vadd.f32 %v1669_v11, %v448_v0 }
 0x7f1   : > { %s1691_s15 = sshll.u32 %s2274_s28, 7  ;;  %s432_s9 = scalar_lea.vmem [#allocation13], %s2508_s3 }
 0x7f2   : > { %s1444_s14 = sshll.u32 %s432_s9, 4  ;;  %s2671_s13 = scalar_lea.hbm %s2721_s6, %s1691_s15  ;;  %s2673_s14 = int_to_ptr.vmem [resolvable:$true] %s1444_s14 }
 0x7f3   : > { %s1426_s29 = scalar_lea.sflag [#allocation4], %s2505_s18  ;;  %s2108_s10 = scalar_lea.vmem %s2673_s14, 128 }
 0x7f4   : > { %p2109_p2 = scmp.ne.s32.totalorder %s2673_s14, %s2108_s10  ;;  %s2212_s28 = smov [#allocation13]  }
 0x7f5   : > { %s2112_s3 = sshll.u32 %s2212_s28, 4  ;;  %s2113_s3 = int_to_ptr.vmem [resolvable:$false] %s2112_s3 }
 0x7f6   : > { %p2110_p5 = pnand %p2109_p2, %p2765_p11  ;;  %s2114_s11 = scalar_lea.vmem %s2113_s3, 256 }
 0x7f7   : > { %p2115_p3 = scmp.lt.s32.totalorder %s2673_s14, %s2113_s3  ;;  %p2116_p6 = scmp.lt.s32.totalorder %s2114_s11, %s2108_s10 }
 0x7f8   : > { %p2111_p7 = pneg %p2110_p5 }
 0x7f9   : > { %p2117_p10 = por %p2116_p6, %p2115_p3 }
 0x7fb   : > { %p2118_p1 = pnand %p2117_p10, %p2111_p7 }
 0x8b5   : > { %v1418_v13 = vpop.f32.mrb[0].mxu1 }
 0x8b6   : > { %v1781_v14 = vadd.f32 %v1418_v13, %v456_v12  ;;  %v1780_v15 = vpop.f32.mrb[1].mxu1 }
 0x8b8   : > { %1424 = vst.msk [vmem:[%s432_s9] sm:$0xff] %vm1423_vm3, %v1781_v14 }
 0x8b9   : > { %2121 = shalt.err (!%p2118_p1)
}
 0x8ba   : > { %s2122_s18 = scalar_lea.hbm %s2671_s13, 128  ;;  %s2126_s1 = scalar_lea.hbm %s2721_s6, 256 }
 0x8bb   : > { %p2123_p0 = scmp.ne.s32.totalorder %s2671_s13, %s2122_s18  ;;  %p2127_p9 = scmp.lt.u32.totalorder %s2671_s13, %s2721_s6 }
 0x8bc   : > { %p2128_p4 = scmp.lt.u32.totalorder %s2126_s1, %s2122_s18  ;;  %p2130_p2 = scmp.lt.u32.totalorder %s2122_s18, %s2671_s13 }
 0x8bd   : > { %p2124_p12 = pnand %p2123_p0, %p2765_p11 }
 0x8be   : > { %p2129_p13 = por %p2128_p4, %p2127_p9 }
 0x8bf   : > { %p2125_p8 = pneg %p2124_p12 }
 0x8c0   : > { %p2131_p5 = por %p2130_p2, %p2129_p13 }
 0x8c2   : > { %p2132_p7 = pnand %p2131_p5, %p2125_p8 }
 0x8c4   : > { %2135 = shalt.err (!%p2132_p7)
}
 0x8c5   : > { %1804 = dma.vmem_to_hbm [thread:$0]  (%p2765_p11), %s2673_s14, 128, %s2671_s13, %s1426_s29  }
 0x8c6 PF: > { %s2766_s20 = sld [smem:[#allocation23_spill]]  ;;  %s1472_s22 = sand.u32 1, %s2178_s24  }
 0x8c7   : > { %p2767_p3 = scmp.ne.s32.totalorder %s2743_s8, 0  ;;  %s1473_s26 = scalar_lea.sflag [#allocation4], %s1472_s22 }
 0x8cc   : > { %p2768_p6 = scmp.ge.s32.totalorder %s2766_s20, 2 }
 0x8ce   : > { %p1829_p10 = pnand %p2768_p6, %p2767_p3 }
 0x8d0   : > { %2169 = dma.done.wait (!%p1829_p10), %s1473_s26, 128  }
 0x8d1   : > { %2171 = vsyncadd (!%p1829_p10), %s1473_s26, 4294967168  ;;  %s1482_s27 = scalar_lea.sflag [#allocation15], %s1472_s22 }
 0x8d2   : > { %2173 = dma.done.wait (!%p1829_p10), %s1482_s27, 512  }
 0x8d3   : > { %2175 = vsyncadd (!%p1829_p10), %s1482_s27, 4294966784  ;;  %s2769_s27 = sld [smem:[#allocation24_spill]]  ;;  %s2770_s19 = sld [smem:[#allocation22_spill]] }
 0x8d4   : > { %s2771_s26 = sld [smem:[#allocation25_spill]]  ;;  %s2772_s24 = smov %s2182_s25 }
 0x8d9   : > { %p31_p11 = scmp.ge.s32.totalorder %s2769_s27, 4   ;;  %s2773_s25 = smov %s2770_s19 }
 0x8db   :  { %33 = sbr.rel (!%p31_p11) target bundleno = 15 (0xf), region = 154 }
 0x8e2   :  { %1487 = vsyncpa [#allocation3], 1 }
 0x8e3   :  { %1489 = vsyncpa [#allocation3 + $0x1], 1 }
 0x8e4   :  { %1490 = vsyncpa [#allocation6], 1 }
 0x8e5   :  { %1492 = vsyncpa [#allocation6 + $0x1], 1 }
 0x8e6   :  { %1493 = vsyncpa [#allocation9], 1 }
 0x8e7   :  { %1494 = vsyncpa [#allocation12], 1 }
 0x8e8   :  { %1496 = vsyncpa [#allocation12 + $0x1], 1 }
 0x8e9   :  { %1497 = vsyncpa [#allocation4], 1 }
 0x8ea   :  { %1499 = vsyncpa [#allocation4 + $0x1], 1 }
 0x8eb   :  { %1500 = vsyncpa [#allocation15], 1 }
 0x8ec   :  { %1502 = vsyncpa [#allocation15 + $0x1], 1 }

</bundles_post_ra>
